<compile_context>
chip_gen: v5e
topology: v5e:2x2
jax: 0.10.0
libtpu: 0.0.40
codegen_flags: <defaults>
</compile_context>

<pallas_src>
import functools
import math

import jax
import jax.numpy as jnp
import numpy as np
from jax.experimental import pallas as pl
from jax.experimental.pallas import tpu as pltpu


# ---------------------------------------------------------------------------
# Host-side helpers
# ---------------------------------------------------------------------------

@functools.lru_cache(maxsize=None)
def _avg_matrix_np(seq_len: int, kernel_size: int) -> np.ndarray:
    """(L, L) matrix A with A @ x == moving_avg(kernel_size, stride=1)(x).

    The replicate padding (front = k-1-(k-1)//2, end = (k-1)//2, exactly as in
    the PyTorch moving_avg module) is folded into the band weights, so the
    kernel never materializes a padded copy of the sequence.
    # TODO(synk): for production L >> 128 switch to a banded / per-L-tile
    # formulation (O(L*k*C)) instead of this dense O(L^2*C) matrix.
    """
    k = kernel_size
    front = k - 1 - (k - 1) // 2
    a = np.zeros((seq_len, seq_len), dtype=np.float64)
    for t in range(seq_len):
        for j in range(k):
            i = min(max(t - front + j, 0), seq_len - 1)
            a[t, i] += 1.0
    return (a / k).astype(np.float32)


def _chip_info():
    """(vmem_capacity_bytes, tensorcores_per_chip) with conservative fallbacks."""
    vmem = 64 * 1024 * 1024          # v7x physical VMEM (smallest of the gens)
    cores = 1                        # v5e / v6e: one TensorCore per chip
    try:
        vmem = int(pltpu.get_tpu_info().vmem_capacity_bytes)
    except Exception:
        pass
    try:
        if "v7" in jax.devices()[0].device_kind.lower():
            cores = 2                # only v7x has 2 TensorCores per chip
    except Exception:
        pass
    return vmem, cores


def _pick_batch_tile(batch, per_batch_bytes, budget_bytes, min_grid):
    """Largest divisor of `batch` whose footprint fits `budget_bytes`, keeping
    >= min_grid grid steps when possible (min_grid = #TensorCores, so v7x's two
    cores both get work; single-core chips are NOT forced to split)."""
    cap = max(1, budget_bytes // max(per_batch_bytes, 1))
    if min_grid > 1 and batch >= min_grid:
        cap = min(cap, max(1, batch // min_grid))
    bt = max(1, min(batch, cap))
    while batch % bt:
        bt -= 1
    return bt


def _batch_spec(bt, *dims):
    return pl.BlockSpec((bt,) + tuple(dims), lambda i: (i,) + (0,) * len(dims))


def _full_spec(shape):
    nd = len(shape)
    return pl.BlockSpec(tuple(shape), lambda i: (0,) * nd)


# ---------------------------------------------------------------------------
# Fused DecoderLayer kernel (one batch tile per grid step)
# ---------------------------------------------------------------------------

def _decoder_layer_kernel(x_ref, cross_ref, avg_ref,
                          wq_s_ref, wk_s_ref, wv_s_ref, wo_s_ref,
                          wq_c_ref, wk_c_ref, wv_c_ref, wo_c_ref,
                          w1_ref, w2_ref, wp_ref,
                          x_out_ref, trend_out_ref, *, n_heads):
    f32, bf16 = jnp.float32, jnp.bfloat16
    bt, L, D = x_ref.shape
    c_out = trend_out_ref.shape[-1]
    dh = D // n_heads
    scale = 1.0 / math.sqrt(dh)

    a = avg_ref[...]                                    # (L, L) f32 banded averaging matrix
    wq_s, wk_s, wv_s, wo_s = (wq_s_ref[...], wk_s_ref[...],
                              wv_s_ref[...], wo_s_ref[...])
    wq_c, wk_c, wv_c, wo_c = (wq_c_ref[...], wk_c_ref[...],
                              wv_c_ref[...], wo_c_ref[...])
    w1, w2, wp = w1_ref[...], w2_ref[...], wp_ref[...]  # weights arrive in bf16

    def mha(x_in, kv_in, wq, wk, wv, wo):
        """Multi-head scaled-dot-product attention; dropout == identity (eval).

        Projections run batch-flattened (bt*L, D) @ (D, D) in bf16 on the MXU;
        the tiny per-head score/context einsums stay f32 and are batched over
        bt (single-leading-batch-dim dot_general, the documented-safe form)."""
        Lq, Lk = x_in.shape[1], kv_in.shape[1]
        xq = x_in.reshape(bt * Lq, D).astype(bf16)
        xkv = kv_in.reshape(bt * Lk, D).astype(bf16)
        q = jnp.dot(xq, wq, preferred_element_type=f32).reshape(bt, Lq, D)
        k = jnp.dot(xkv, wk, preferred_element_type=f32).reshape(bt, Lk, D)
        v = jnp.dot(xkv, wv, preferred_element_type=f32).reshape(bt, Lk, D)
        ctx_heads = []
        for h in range(n_heads):                        # static 4-way unroll
            sl = slice(h * dh, (h + 1) * dh)
            s = jnp.einsum("bqd,bkd->bqk", q[:, :, sl], k[:, :, sl],
                           preferred_element_type=f32) * scale
            s = s - jnp.max(s, axis=-1, keepdims=True)
            p = jnp.exp(s)
            # EUP reciprocal (approx) instead of a VALU divide.
            p = p * pl.reciprocal(jnp.sum(p, axis=-1, keepdims=True),
                                  approx=True)
            ctx_heads.append(jnp.einsum("bqk,bkd->bqd", p, v[:, :, sl],
                                        preferred_element_type=f32))
        ctx = jnp.concatenate(ctx_heads, axis=-1).reshape(bt * Lq, D)
        return jnp.dot(ctx.astype(bf16), wo,
                       preferred_element_type=f32).reshape(bt, Lq, D)

    def decomp(z):
        """series_decomp: mean = A @ z (one f32 MXU matmul per batch element —
        per-batch here is unavoidable); res = z - mean.  No padded temp."""
        mean = jnp.stack(
            [jnp.dot(a, z[b], preferred_element_type=f32) for b in range(bt)],
            axis=0)
        return z - mean, mean

    # --- stage 1: x = x + self_attention(x, x, x);  x, trend1 = decomp1(x) --
    x0 = x_ref[...].astype(f32)
    res1, trend1 = decomp(x0 + mha(x0, x0, wq_s, wk_s, wv_s, wo_s))

    # --- stage 2: x = x + cross_attention(x, cross, cross);  decomp2 --------
    cross = cross_ref[...].astype(f32)
    res2, trend2 = decomp(res1 + mha(res1, cross, wq_c, wk_c, wv_c, wo_c))

    # --- stage 3: pointwise FFN (conv1/conv2 are 1x1 convs) + decomp3 -------
    r2 = res2.reshape(bt * L, D).astype(bf16)
    hidden = jnp.maximum(jnp.dot(r2, w1, preferred_element_type=f32), 0.0)
    y = jnp.dot(hidden.astype(bf16), w2,
                preferred_element_type=f32).reshape(bt, L, D)
    res3, trend3 = decomp(res2 + y)
    x_out_ref[...] = res3.astype(x_out_ref.dtype)

    # --- residual_trend = CircularConv1d(k=3)(trend1 + trend2 + trend3) -----
    # out[l] = t[l-1]@wp0 + t[l]@wp1 + t[l+1]@wp2  (circular).  The three tap
    # matmuls run batch-flattened FIRST; the circular shift is applied to the
    # already-projected taps with pltpu.roll (XLU slot, no concat copies).
    t = (trend1 + trend2 + trend3).reshape(bt * L, D).astype(bf16)
    u_prev = jnp.dot(t, wp[0], preferred_element_type=f32).reshape(bt, L, c_out)
    u_mid = jnp.dot(t, wp[1], preferred_element_type=f32).reshape(bt, L, c_out)
    u_next = jnp.dot(t, wp[2], preferred_element_type=f32).reshape(bt, L, c_out)
    for b in range(bt):
        trend_out_ref[b] = (pltpu.roll(u_prev[b], shift=1, axis=0)
                            + u_mid[b]
                            + pltpu.roll(u_next[b], shift=L - 1, axis=0)
                            ).astype(trend_out_ref.dtype)


# ---------------------------------------------------------------------------
# pallas_call wrapper: whole DecoderLayer in one launch, grid over batch
# ---------------------------------------------------------------------------

_WEIGHT_ORDER = ("wq_s", "wk_s", "wv_s", "wo_s",
                 "wq_c", "wk_c", "wv_c", "wo_c",
                 "w1", "w2", "wp")


def decoder_layer_forward(x, cross, params, *, kernel_size, n_heads):
    B, L, D = x.shape
    Lc = cross.shape[1]
    d_ff = params["w1"].shape[1]
    c_out = params["wp"].shape[-1]

    avg_mat = jnp.asarray(_avg_matrix_np(L, kernel_size))   # cached per (L, k)

    # bf16 weights halve the weight DMA bytes; every matmul accumulates in f32.
    weights = [params[name].astype(jnp.bfloat16) for name in _WEIGHT_ORDER]

    # --- generation-aware batch tiling --------------------------------------
    vmem_bytes, n_cores = _chip_info()
    # per-batch-element footprint: double-buffered in/out blocks + generous
    # allowance for the f32 intermediates that live inside the fused body.
    per_batch = 4 * (2 * (2 * L * D + Lc * D + L * c_out)
                     + L * (12 * D + 2 * d_ff + 3 * c_out))
    fixed = 2 * 2 * (8 * D * D + 2 * D * d_ff + 3 * D * c_out) + 8 * L * L
    budget = max(2 << 20, int(0.35 * vmem_bytes) - fixed)
    bt = _pick_batch_tile(B, per_batch, budget, min_grid=n_cores)

    compiler_kwargs = dict(dimension_semantics=("parallel",))
    need = bt * per_batch + fixed
    if need > 16 * 1024 * 1024:            # above v5e's default scoped VMEM
        compiler_kwargs["vmem_limit_bytes"] = min(int(1.25 * need),
                                                  int(0.8 * vmem_bytes))

    kernel = functools.partial(_decoder_layer_kernel, n_heads=n_heads)
    in_specs = ([_batch_spec(bt, L, D),            # x
                 _batch_spec(bt, Lc, D),           # cross
                 _full_spec((L, L))]               # averaging matrix
                + [_full_spec(w.shape) for w in weights])
    out_specs = [_batch_spec(bt, L, D), _batch_spec(bt, L, c_out)]
    out_shape = (jax.ShapeDtypeStruct((B, L, D), x.dtype),
                 jax.ShapeDtypeStruct((B, L, c_out), x.dtype))

    x_out, residual_trend = pl.pallas_call(
        kernel,
        grid_spec=pltpu.PrefetchScalarGridSpec(
            num_scalar_prefetch=0,
            grid=(B // bt,),
            in_specs=in_specs,
            out_specs=out_specs),
        out_shape=out_shape,
        compiler_params=pltpu.CompilerParams(**compiler_kwargs),
    )(x, cross, avg_mat, *weights)
    return x_out, residual_trend


# ---------------------------------------------------------------------------
# Pure-JAX reference (mirrors the PyTorch module, eval mode, full f32)
# ---------------------------------------------------------------------------

def _decomp_ref(x, kernel_size):
    k = kernel_size
    front = k - 1 - (k - 1) // 2
    end = (k - 1) // 2
    xp = jnp.concatenate(
        [jnp.repeat(x[:, :1, :], front, axis=1), x,
         jnp.repeat(x[:, -1:, :], end, axis=1)], axis=1)
    L = x.shape[1]
    mean = jnp.mean(
        jnp.stack([xp[:, j:j + L, :] for j in range(k)], axis=0), axis=0)
    return x - mean, mean


def _mha_ref(q_in, kv_in, wq, wk, wv, wo, n_heads):
    B, lq, d = q_in.shape
    dh = d // n_heads
    q = (q_in @ wq).reshape(B, lq, n_heads, dh)
    k = (kv_in @ wk).reshape(B, -1, n_heads, dh)
    v = (kv_in @ wv).reshape(B, -1, n_heads, dh)
    s = jnp.einsum("bqhd,bkhd->bhqk", q, k) / math.sqrt(dh)
    p = jax.nn.softmax(s, axis=-1)
    ctx = jnp.einsum("bhqk,bkhd->bqhd", p, v).reshape(B, lq, d)
    return q_in + ctx @ wo


def decoder_layer_ref(x, cross, params, *, kernel_size, n_heads):
    x = _mha_ref(x, x, params["wq_s"], params["wk_s"], params["wv_s"],
                 params["wo_s"], n_heads)
    x, t1 = _decomp_ref(x, kernel_size)
    x = _mha_ref(x, cross, params["wq_c"], params["wk_c"], params["wv_c"],
                 params["wo_c"], n_heads)
    x, t2 = _decomp_ref(x, kernel_size)
    y = jnp.maximum(x @ params["w1"], 0.0) @ params["w2"]
    x, t3 = _decomp_ref(x + y, kernel_size)
    trend = t1 + t2 + t3
    wp = params["wp"]
    out = (jnp.roll(trend, 1, axis=1) @ wp[0]
           + trend @ wp[1]
           + jnp.roll(trend, -1, axis=1) @ wp[2])
    return x, out


# ---------------------------------------------------------------------------

if __name__ == "__main__":
    key = jax.random.PRNGKey(0)
    B, L, L_cross = 2, 32, 24
    d_model, n_heads, d_ff, c_out = 128, 4, 256, 128   # lane-dense channel dims
    kernel_size = 25                                    # Autoformer default

    keys = jax.random.split(key, 12)

    def w(k, shape, fan_in):
        return (jax.random.normal(k, shape, dtype=jnp.float32)
                / np.sqrt(fan_in)).astype(jnp.float32)

    params = {
        "wq_s": w(keys[0], (d_model, d_model), d_model),
        "wk_s": w(keys[1], (d_model, d_model), d_model),
        "wv_s": w(keys[2], (d_model, d_model), d_model),
        "wo_s": w(keys[3], (d_model, d_model), d_model),
        "wq_c": w(keys[4], (d_model, d_model), d_model),
        "wk_c": w(keys[5], (d_model, d_model), d_model),
        "wv_c": w(keys[6], (d_model, d_model), d_model),
        "wo_c": w(keys[7], (d_model, d_model), d_model),
        "w1": w(keys[8], (d_model, d_ff), d_model),           # conv1 (1x1, no bias)
        "w2": w(keys[9], (d_ff, d_model), d_ff),              # conv2 (1x1, no bias)
        "wp": w(keys[10], (3, d_model, c_out), 3 * d_model),  # projection, 3 taps
    }
    x = jax.random.normal(keys[11], (B, L, d_model), dtype=jnp.float32)
    cross = jax.random.normal(jax.random.PRNGKey(1), (B, L_cross, d_model),
                              dtype=jnp.float32)

    x_out, residual_trend = decoder_layer_forward(
        x, cross, params, kernel_size=kernel_size, n_heads=n_heads)
    jax.block_until_ready((x_out, residual_trend))

    x_ref, trend_ref = decoder_layer_ref(
        x, cross, params, kernel_size=kernel_size, n_heads=n_heads)
    # Tolerances sized for bf16 MXU operands inside the kernel vs. the pure-f32
    # reference (values are O(1); structural errors would exceed these by far).
    np.testing.assert_allclose(np.asarray(x_out), np.asarray(x_ref),
                               rtol=1e-1, atol=1e-1)
    np.testing.assert_allclose(np.asarray(residual_trend),
                               np.asarray(trend_ref), rtol=1e-1, atol=1e-1)

    print("KERNEL_OK")
</pallas_src>

<mosaic_0001>
module attributes {stable_mosaic.version = 11 : i64} {
  func.func @_decoder_layer_kernel(%arg0: i32, %arg1: memref<2x32x128xf32, #tpu.memory_space<vmem>>, %arg2: memref<2x24x128xf32, #tpu.memory_space<vmem>>, %arg3: memref<32x32xf32, #tpu.memory_space<vmem>>, %arg4: memref<128x128xbf16, #tpu.memory_space<vmem>>, %arg5: memref<128x128xbf16, #tpu.memory_space<vmem>>, %arg6: memref<128x128xbf16, #tpu.memory_space<vmem>>, %arg7: memref<128x128xbf16, #tpu.memory_space<vmem>>, %arg8: memref<128x128xbf16, #tpu.memory_space<vmem>>, %arg9: memref<128x128xbf16, #tpu.memory_space<vmem>>, %arg10: memref<128x128xbf16, #tpu.memory_space<vmem>>, %arg11: memref<128x128xbf16, #tpu.memory_space<vmem>>, %arg12: memref<128x256xbf16, #tpu.memory_space<vmem>>, %arg13: memref<256x128xbf16, #tpu.memory_space<vmem>>, %arg14: memref<3x128x128xbf16, #tpu.memory_space<vmem>>, %arg15: memref<2x32x128xf32, #tpu.memory_space<vmem>>, %arg16: memref<2x32x128xf32, #tpu.memory_space<vmem>>) attributes {dimension_semantics = [#tpu.dimension_semantics<parallel>], iteration_bounds = array<i64: 1>, scalar_prefetch = 0 : i64, scratch_operands = 0 : i64, tpu.core_type = #tpu.core_type<tc>, window_params = [{transform_indices = @transform_0, window_bounds = array<i64: 2, 32, 128>}, {transform_indices = @transform_1, window_bounds = array<i64: 2, 24, 128>}, {pipeline_mode = #tpu.pipeline_mode<synchronous>, transform_indices = @transform_2, window_bounds = array<i64: 32, 32>}, {pipeline_mode = #tpu.pipeline_mode<synchronous>, transform_indices = @transform_3, window_bounds = array<i64: 128, 128>}, {pipeline_mode = #tpu.pipeline_mode<synchronous>, transform_indices = @transform_4, window_bounds = array<i64: 128, 128>}, {pipeline_mode = #tpu.pipeline_mode<synchronous>, transform_indices = @transform_5, window_bounds = array<i64: 128, 128>}, {pipeline_mode = #tpu.pipeline_mode<synchronous>, transform_indices = @transform_6, window_bounds = array<i64: 128, 128>}, {pipeline_mode = #tpu.pipeline_mode<synchronous>, transform_indices = @transform_7, window_bounds = array<i64: 128, 128>}, {pipeline_mode = #tpu.pipeline_mode<synchronous>, transform_indices = @transform_8, window_bounds = array<i64: 128, 128>}, {pipeline_mode = #tpu.pipeline_mode<synchronous>, transform_indices = @transform_9, window_bounds = array<i64: 128, 128>}, {pipeline_mode = #tpu.pipeline_mode<synchronous>, transform_indices = @transform_10, window_bounds = array<i64: 128, 128>}, {pipeline_mode = #tpu.pipeline_mode<synchronous>, transform_indices = @transform_11, window_bounds = array<i64: 128, 256>}, {pipeline_mode = #tpu.pipeline_mode<synchronous>, transform_indices = @transform_12, window_bounds = array<i64: 256, 128>}, {pipeline_mode = #tpu.pipeline_mode<synchronous>, transform_indices = @transform_13, window_bounds = array<i64: 3, 128, 128>}, {transform_indices = @transform_14, window_bounds = array<i64: 2, 32, 128>}, {transform_indices = @transform_15, window_bounds = array<i64: 2, 32, 128>}]} {
    %c0 = arith.constant 0 : index
    %c0_0 = arith.constant 0 : index
    %0 = vector.load %arg3[%c0, %c0_0] : memref<32x32xf32, #tpu.memory_space<vmem>>, vector<32x32xf32>
    %c0_1 = arith.constant 0 : index
    %c0_2 = arith.constant 0 : index
    %1 = vector.load %arg4[%c0_1, %c0_2] : memref<128x128xbf16, #tpu.memory_space<vmem>>, vector<128x128xbf16>
    %c0_3 = arith.constant 0 : index
    %c0_4 = arith.constant 0 : index
    %2 = vector.load %arg5[%c0_3, %c0_4] : memref<128x128xbf16, #tpu.memory_space<vmem>>, vector<128x128xbf16>
    %c0_5 = arith.constant 0 : index
    %c0_6 = arith.constant 0 : index
    %3 = vector.load %arg6[%c0_5, %c0_6] : memref<128x128xbf16, #tpu.memory_space<vmem>>, vector<128x128xbf16>
    %c0_7 = arith.constant 0 : index
    %c0_8 = arith.constant 0 : index
    %4 = vector.load %arg7[%c0_7, %c0_8] : memref<128x128xbf16, #tpu.memory_space<vmem>>, vector<128x128xbf16>
    %c0_9 = arith.constant 0 : index
    %c0_10 = arith.constant 0 : index
    %5 = vector.load %arg8[%c0_9, %c0_10] : memref<128x128xbf16, #tpu.memory_space<vmem>>, vector<128x128xbf16>
    %c0_11 = arith.constant 0 : index
    %c0_12 = arith.constant 0 : index
    %6 = vector.load %arg9[%c0_11, %c0_12] : memref<128x128xbf16, #tpu.memory_space<vmem>>, vector<128x128xbf16>
    %c0_13 = arith.constant 0 : index
    %c0_14 = arith.constant 0 : index
    %7 = vector.load %arg10[%c0_13, %c0_14] : memref<128x128xbf16, #tpu.memory_space<vmem>>, vector<128x128xbf16>
    %c0_15 = arith.constant 0 : index
    %c0_16 = arith.constant 0 : index
    %8 = vector.load %arg11[%c0_15, %c0_16] : memref<128x128xbf16, #tpu.memory_space<vmem>>, vector<128x128xbf16>
    %c0_17 = arith.constant 0 : index
    %c0_18 = arith.constant 0 : index
    %9 = vector.load %arg12[%c0_17, %c0_18] : memref<128x256xbf16, #tpu.memory_space<vmem>>, vector<128x256xbf16>
    %c0_19 = arith.constant 0 : index
    %c0_20 = arith.constant 0 : index
    %10 = vector.load %arg13[%c0_19, %c0_20] : memref<256x128xbf16, #tpu.memory_space<vmem>>, vector<256x128xbf16>
    %c0_21 = arith.constant 0 : index
    %c0_22 = arith.constant 0 : index
    %c0_23 = arith.constant 0 : index
    %11 = vector.load %arg14[%c0_21, %c0_22, %c0_23] : memref<3x128x128xbf16, #tpu.memory_space<vmem>>, vector<3x128x128xbf16>
    %c0_24 = arith.constant 0 : index
    %c0_25 = arith.constant 0 : index
    %c0_26 = arith.constant 0 : index
    %12 = vector.load %arg1[%c0_24, %c0_25, %c0_26] : memref<2x32x128xf32, #tpu.memory_space<vmem>>, vector<2x32x128xf32>
    %13 = vector.shape_cast %12 : vector<2x32x128xf32> to vector<64x128xf32>
    %14 = arith.truncf %13 : vector<64x128xf32> to vector<64x128xbf16>
    %15 = vector.shape_cast %12 : vector<2x32x128xf32> to vector<64x128xf32>
    %16 = arith.truncf %15 : vector<64x128xf32> to vector<64x128xbf16>
    %cst = arith.constant dense<0.000000e+00> : vector<64x128xf32>
    %17 = tpu.matmul %14, %1, %cst {dimension_numbers = #tpu.dot_dimension_numbers<[1], [0], [0], [1], [0, 0, 1, 1], [], []>} : vector<64x128xbf16>, vector<128x128xbf16>, vector<64x128xf32> -> vector<64x128xf32>
    %18 = vector.shape_cast %17 : vector<64x128xf32> to vector<2x32x128xf32>
    %cst_27 = arith.constant dense<0.000000e+00> : vector<64x128xf32>
    %19 = tpu.matmul %16, %2, %cst_27 {dimension_numbers = #tpu.dot_dimension_numbers<[1], [0], [0], [1], [0, 0, 1, 1], [], []>} : vector<64x128xbf16>, vector<128x128xbf16>, vector<64x128xf32> -> vector<64x128xf32>
    %20 = vector.shape_cast %19 : vector<64x128xf32> to vector<2x32x128xf32>
    %cst_28 = arith.constant dense<0.000000e+00> : vector<64x128xf32>
    %21 = tpu.matmul %16, %3, %cst_28 {dimension_numbers = #tpu.dot_dimension_numbers<[1], [0], [0], [1], [0, 0, 1, 1], [], []>} : vector<64x128xbf16>, vector<128x128xbf16>, vector<64x128xf32> -> vector<64x128xf32>
    %22 = vector.shape_cast %21 : vector<64x128xf32> to vector<2x32x128xf32>
    %23 = vector.extract_strided_slice %18 {offsets = [0, 0, 0], sizes = [2, 32, 32], strides = [1, 1, 1]} : vector<2x32x128xf32> to vector<2x32x32xf32>
    %24 = vector.extract_strided_slice %20 {offsets = [0, 0, 0], sizes = [2, 32, 32], strides = [1, 1, 1]} : vector<2x32x128xf32> to vector<2x32x32xf32>
    "tpu.trace_start"() <{level = 10 : i32, message = "bqd,bkd->bqk"}> : () -> ()
    %cst_29 = arith.constant dense<0.000000e+00> : vector<2x32x32xf32>
    %25 = tpu.matmul %23, %24, %cst_29 {dimension_numbers = #tpu.dot_dimension_numbers<[2], [2], [1], [1], [0, 0, 0, 1, 1, 1], [0], [0]>} : vector<2x32x32xf32>, vector<2x32x32xf32>, vector<2x32x32xf32> -> vector<2x32x32xf32>
    "tpu.trace_stop"() : () -> ()
    %cst_30 = arith.constant 0.176776692 : f32
    %26 = vector.broadcast %cst_30 : f32 to vector<2x32x32xf32>
    %27 = arith.mulf %25, %26 : vector<2x32x32xf32>
    %cst_31 = arith.constant dense<0xFF800000> : vector<2x32xf32>
    %28 = vector.multi_reduction <maximumf>, %27, %cst_31 [2] : vector<2x32x32xf32> to vector<2x32xf32>
    %29 = vector.shape_cast %28 : vector<2x32xf32> to vector<2x32x1xf32>
    %30 = vector.broadcast %29 : vector<2x32x1xf32> to vector<2x32x32xf32>
    %31 = arith.subf %27, %30 : vector<2x32x32xf32>
    %32 = math.exp %31 : vector<2x32x32xf32>
    %cst_32 = arith.constant dense<0.000000e+00> : vector<2x32xf32>
    %33 = vector.multi_reduction <add>, %32, %cst_32 [2] : vector<2x32x32xf32> to vector<2x32xf32>
    %34 = vector.shape_cast %33 : vector<2x32xf32> to vector<2x32x1xf32>
    %35 = tpu.reciprocal %34 {approx = true} : vector<2x32x1xf32> -> vector<2x32x1xf32>
    %36 = vector.broadcast %35 : vector<2x32x1xf32> to vector<2x32x32xf32>
    %37 = arith.mulf %32, %36 : vector<2x32x32xf32>
    %38 = vector.extract_strided_slice %22 {offsets = [0, 0, 0], sizes = [2, 32, 32], strides = [1, 1, 1]} : vector<2x32x128xf32> to vector<2x32x32xf32>
    "tpu.trace_start"() <{level = 10 : i32, message = "bqk,bkd->bqd"}> : () -> ()
    %cst_33 = arith.constant dense<0.000000e+00> : vector<2x32x32xf32>
    %39 = tpu.matmul %37, %38, %cst_33 {dimension_numbers = #tpu.dot_dimension_numbers<[2], [1], [1], [2], [0, 0, 0, 1, 1, 2], [0], [0]>} : vector<2x32x32xf32>, vector<2x32x32xf32>, vector<2x32x32xf32> -> vector<2x32x32xf32>
    "tpu.trace_stop"() : () -> ()
    %40 = vector.extract_strided_slice %18 {offsets = [0, 0, 32], sizes = [2, 32, 32], strides = [1, 1, 1]} : vector<2x32x128xf32> to vector<2x32x32xf32>
    %41 = vector.extract_strided_slice %20 {offsets = [0, 0, 32], sizes = [2, 32, 32], strides = [1, 1, 1]} : vector<2x32x128xf32> to vector<2x32x32xf32>
    "tpu.trace_start"() <{level = 10 : i32, message = "bqd,bkd->bqk"}> : () -> ()
    %cst_34 = arith.constant dense<0.000000e+00> : vector<2x32x32xf32>
    %42 = tpu.matmul %40, %41, %cst_34 {dimension_numbers = #tpu.dot_dimension_numbers<[2], [2], [1], [1], [0, 0, 0, 1, 1, 1], [0], [0]>} : vector<2x32x32xf32>, vector<2x32x32xf32>, vector<2x32x32xf32> -> vector<2x32x32xf32>
    "tpu.trace_stop"() : () -> ()
    %cst_35 = arith.constant 0.176776692 : f32
    %43 = vector.broadcast %cst_35 : f32 to vector<2x32x32xf32>
    %44 = arith.mulf %42, %43 : vector<2x32x32xf32>
    %cst_36 = arith.constant dense<0xFF800000> : vector<2x32xf32>
    %45 = vector.multi_reduction <maximumf>, %44, %cst_36 [2] : vector<2x32x32xf32> to vector<2x32xf32>
    %46 = vector.shape_cast %45 : vector<2x32xf32> to vector<2x32x1xf32>
    %47 = vector.broadcast %46 : vector<2x32x1xf32> to vector<2x32x32xf32>
    %48 = arith.subf %44, %47 : vector<2x32x32xf32>
    %49 = math.exp %48 : vector<2x32x32xf32>
    %cst_37 = arith.constant dense<0.000000e+00> : vector<2x32xf32>
    %50 = vector.multi_reduction <add>, %49, %cst_37 [2] : vector<2x32x32xf32> to vector<2x32xf32>
    %51 = vector.shape_cast %50 : vector<2x32xf32> to vector<2x32x1xf32>
    %52 = tpu.reciprocal %51 {approx = true} : vector<2x32x1xf32> -> vector<2x32x1xf32>
    %53 = vector.broadcast %52 : vector<2x32x1xf32> to vector<2x32x32xf32>
    %54 = arith.mulf %49, %53 : vector<2x32x32xf32>
    %55 = vector.extract_strided_slice %22 {offsets = [0, 0, 32], sizes = [2, 32, 32], strides = [1, 1, 1]} : vector<2x32x128xf32> to vector<2x32x32xf32>
    "tpu.trace_start"() <{level = 10 : i32, message = "bqk,bkd->bqd"}> : () -> ()
    %cst_38 = arith.constant dense<0.000000e+00> : vector<2x32x32xf32>
    %56 = tpu.matmul %54, %55, %cst_38 {dimension_numbers = #tpu.dot_dimension_numbers<[2], [1], [1], [2], [0, 0, 0, 1, 1, 2], [0], [0]>} : vector<2x32x32xf32>, vector<2x32x32xf32>, vector<2x32x32xf32> -> vector<2x32x32xf32>
    "tpu.trace_stop"() : () -> ()
    %57 = vector.extract_strided_slice %18 {offsets = [0, 0, 64], sizes = [2, 32, 32], strides = [1, 1, 1]} : vector<2x32x128xf32> to vector<2x32x32xf32>
    %58 = vector.extract_strided_slice %20 {offsets = [0, 0, 64], sizes = [2, 32, 32], strides = [1, 1, 1]} : vector<2x32x128xf32> to vector<2x32x32xf32>
    "tpu.trace_start"() <{level = 10 : i32, message = "bqd,bkd->bqk"}> : () -> ()
    %cst_39 = arith.constant dense<0.000000e+00> : vector<2x32x32xf32>
    %59 = tpu.matmul %57, %58, %cst_39 {dimension_numbers = #tpu.dot_dimension_numbers<[2], [2], [1], [1], [0, 0, 0, 1, 1, 1], [0], [0]>} : vector<2x32x32xf32>, vector<2x32x32xf32>, vector<2x32x32xf32> -> vector<2x32x32xf32>
    "tpu.trace_stop"() : () -> ()
    %cst_40 = arith.constant 0.176776692 : f32
    %60 = vector.broadcast %cst_40 : f32 to vector<2x32x32xf32>
    %61 = arith.mulf %59, %60 : vector<2x32x32xf32>
    %cst_41 = arith.constant dense<0xFF800000> : vector<2x32xf32>
    %62 = vector.multi_reduction <maximumf>, %61, %cst_41 [2] : vector<2x32x32xf32> to vector<2x32xf32>
    %63 = vector.shape_cast %62 : vector<2x32xf32> to vector<2x32x1xf32>
    %64 = vector.broadcast %63 : vector<2x32x1xf32> to vector<2x32x32xf32>
    %65 = arith.subf %61, %64 : vector<2x32x32xf32>
    %66 = math.exp %65 : vector<2x32x32xf32>
    %cst_42 = arith.constant dense<0.000000e+00> : vector<2x32xf32>
    %67 = vector.multi_reduction <add>, %66, %cst_42 [2] : vector<2x32x32xf32> to vector<2x32xf32>
    %68 = vector.shape_cast %67 : vector<2x32xf32> to vector<2x32x1xf32>
    %69 = tpu.reciprocal %68 {approx = true} : vector<2x32x1xf32> -> vector<2x32x1xf32>
    %70 = vector.broadcast %69 : vector<2x32x1xf32> to vector<2x32x32xf32>
    %71 = arith.mulf %66, %70 : vector<2x32x32xf32>
    %72 = vector.extract_strided_slice %22 {offsets = [0, 0, 64], sizes = [2, 32, 32], strides = [1, 1, 1]} : vector<2x32x128xf32> to vector<2x32x32xf32>
    "tpu.trace_start"() <{level = 10 : i32, message = "bqk,bkd->bqd"}> : () -> ()
    %cst_43 = arith.constant dense<0.000000e+00> : vector<2x32x32xf32>
    %73 = tpu.matmul %71, %72, %cst_43 {dimension_numbers = #tpu.dot_dimension_numbers<[2], [1], [1], [2], [0, 0, 0, 1, 1, 2], [0], [0]>} : vector<2x32x32xf32>, vector<2x32x32xf32>, vector<2x32x32xf32> -> vector<2x32x32xf32>
    "tpu.trace_stop"() : () -> ()
    %74 = vector.extract_strided_slice %18 {offsets = [0, 0, 96], sizes = [2, 32, 32], strides = [1, 1, 1]} : vector<2x32x128xf32> to vector<2x32x32xf32>
    %75 = vector.extract_strided_slice %20 {offsets = [0, 0, 96], sizes = [2, 32, 32], strides = [1, 1, 1]} : vector<2x32x128xf32> to vector<2x32x32xf32>
    "tpu.trace_start"() <{level = 10 : i32, message = "bqd,bkd->bqk"}> : () -> ()
    %cst_44 = arith.constant dense<0.000000e+00> : vector<2x32x32xf32>
    %76 = tpu.matmul %74, %75, %cst_44 {dimension_numbers = #tpu.dot_dimension_numbers<[2], [2], [1], [1], [0, 0, 0, 1, 1, 1], [0], [0]>} : vector<2x32x32xf32>, vector<2x32x32xf32>, vector<2x32x32xf32> -> vector<2x32x32xf32>
    "tpu.trace_stop"() : () -> ()
    %cst_45 = arith.constant 0.176776692 : f32
    %77 = vector.broadcast %cst_45 : f32 to vector<2x32x32xf32>
    %78 = arith.mulf %76, %77 : vector<2x32x32xf32>
    %cst_46 = arith.constant dense<0xFF800000> : vector<2x32xf32>
    %79 = vector.multi_reduction <maximumf>, %78, %cst_46 [2] : vector<2x32x32xf32> to vector<2x32xf32>
    %80 = vector.shape_cast %79 : vector<2x32xf32> to vector<2x32x1xf32>
    %81 = vector.broadcast %80 : vector<2x32x1xf32> to vector<2x32x32xf32>
    %82 = arith.subf %78, %81 : vector<2x32x32xf32>
    %83 = math.exp %82 : vector<2x32x32xf32>
    %cst_47 = arith.constant dense<0.000000e+00> : vector<2x32xf32>
    %84 = vector.multi_reduction <add>, %83, %cst_47 [2] : vector<2x32x32xf32> to vector<2x32xf32>
    %85 = vector.shape_cast %84 : vector<2x32xf32> to vector<2x32x1xf32>
    %86 = tpu.reciprocal %85 {approx = true} : vector<2x32x1xf32> -> vector<2x32x1xf32>
    %87 = vector.broadcast %86 : vector<2x32x1xf32> to vector<2x32x32xf32>
    %88 = arith.mulf %83, %87 : vector<2x32x32xf32>
    %89 = vector.extract_strided_slice %22 {offsets = [0, 0, 96], sizes = [2, 32, 32], strides = [1, 1, 1]} : vector<2x32x128xf32> to vector<2x32x32xf32>
    "tpu.trace_start"() <{level = 10 : i32, message = "bqk,bkd->bqd"}> : () -> ()
    %cst_48 = arith.constant dense<0.000000e+00> : vector<2x32x32xf32>
    %90 = tpu.matmul %88, %89, %cst_48 {dimension_numbers = #tpu.dot_dimension_numbers<[2], [1], [1], [2], [0, 0, 0, 1, 1, 2], [0], [0]>} : vector<2x32x32xf32>, vector<2x32x32xf32>, vector<2x32x32xf32> -> vector<2x32x32xf32>
    "tpu.trace_stop"() : () -> ()
    %91 = tpu.concatenate %39, %56, %73, %90 in 2 : vector<2x32x32xf32>, vector<2x32x32xf32>, vector<2x32x32xf32>, vector<2x32x32xf32> -> vector<2x32x128xf32>
    %92 = vector.shape_cast %91 : vector<2x32x128xf32> to vector<64x128xf32>
    %93 = arith.truncf %92 : vector<64x128xf32> to vector<64x128xbf16>
    %cst_49 = arith.constant dense<0.000000e+00> : vector<64x128xf32>
    %94 = tpu.matmul %93, %4, %cst_49 {dimension_numbers = #tpu.dot_dimension_numbers<[1], [0], [0], [1], [0, 0, 1, 1], [], []>} : vector<64x128xbf16>, vector<128x128xbf16>, vector<64x128xf32> -> vector<64x128xf32>
    %95 = vector.shape_cast %94 : vector<64x128xf32> to vector<2x32x128xf32>
    %96 = arith.addf %12, %95 : vector<2x32x128xf32>
    %97 = vector.extract_strided_slice %96 {offsets = [0, 0, 0], sizes = [1, 32, 128], strides = [1, 1, 1]} : vector<2x32x128xf32> to vector<1x32x128xf32>
    %98 = vector.shape_cast %97 : vector<1x32x128xf32> to vector<32x128xf32>
    %cst_50 = arith.constant dense<0.000000e+00> : vector<32x128xf32>
    %99 = tpu.matmul %0, %98, %cst_50 {dimension_numbers = #tpu.dot_dimension_numbers<[1], [0], [0], [1], [0, 0, 1, 1], [], []>} : vector<32x32xf32>, vector<32x128xf32>, vector<32x128xf32> -> vector<32x128xf32>
    %100 = vector.extract_strided_slice %96 {offsets = [1, 0, 0], sizes = [1, 32, 128], strides = [1, 1, 1]} : vector<2x32x128xf32> to vector<1x32x128xf32>
    %101 = vector.shape_cast %100 : vector<1x32x128xf32> to vector<32x128xf32>
    %cst_51 = arith.constant dense<0.000000e+00> : vector<32x128xf32>
    %102 = tpu.matmul %0, %101, %cst_51 {dimension_numbers = #tpu.dot_dimension_numbers<[1], [0], [0], [1], [0, 0, 1, 1], [], []>} : vector<32x32xf32>, vector<32x128xf32>, vector<32x128xf32> -> vector<32x128xf32>
    %103 = vector.shape_cast %99 : vector<32x128xf32> to vector<1x32x128xf32>
    %104 = vector.shape_cast %102 : vector<32x128xf32> to vector<1x32x128xf32>
    %105 = tpu.concatenate %103, %104 in 0 : vector<1x32x128xf32>, vector<1x32x128xf32> -> vector<2x32x128xf32>
    %106 = arith.subf %96, %105 : vector<2x32x128xf32>
    %c0_52 = arith.constant 0 : index
    %c0_53 = arith.constant 0 : index
    %c0_54 = arith.constant 0 : index
    %107 = vector.load %arg2[%c0_52, %c0_53, %c0_54] : memref<2x24x128xf32, #tpu.memory_space<vmem>>, vector<2x24x128xf32>
    %108 = vector.shape_cast %106 : vector<2x32x128xf32> to vector<64x128xf32>
    %109 = arith.truncf %108 : vector<64x128xf32> to vector<64x128xbf16>
    %110 = vector.shape_cast %107 : vector<2x24x128xf32> to vector<48x128xf32>
    %111 = arith.truncf %110 : vector<48x128xf32> to vector<48x128xbf16>
    %cst_55 = arith.constant dense<0.000000e+00> : vector<64x128xf32>
    %112 = tpu.matmul %109, %5, %cst_55 {dimension_numbers = #tpu.dot_dimension_numbers<[1], [0], [0], [1], [0, 0, 1, 1], [], []>} : vector<64x128xbf16>, vector<128x128xbf16>, vector<64x128xf32> -> vector<64x128xf32>
    %113 = vector.shape_cast %112 : vector<64x128xf32> to vector<2x32x128xf32>
    %cst_56 = arith.constant dense<0.000000e+00> : vector<48x128xf32>
    %114 = tpu.matmul %111, %6, %cst_56 {dimension_numbers = #tpu.dot_dimension_numbers<[1], [0], [0], [1], [0, 0, 1, 1], [], []>} : vector<48x128xbf16>, vector<128x128xbf16>, vector<48x128xf32> -> vector<48x128xf32>
    %115 = vector.shape_cast %114 : vector<48x128xf32> to vector<2x24x128xf32>
    %cst_57 = arith.constant dense<0.000000e+00> : vector<48x128xf32>
    %116 = tpu.matmul %111, %7, %cst_57 {dimension_numbers = #tpu.dot_dimension_numbers<[1], [0], [0], [1], [0, 0, 1, 1], [], []>} : vector<48x128xbf16>, vector<128x128xbf16>, vector<48x128xf32> -> vector<48x128xf32>
    %117 = vector.shape_cast %116 : vector<48x128xf32> to vector<2x24x128xf32>
    %118 = vector.extract_strided_slice %113 {offsets = [0, 0, 0], sizes = [2, 32, 32], strides = [1, 1, 1]} : vector<2x32x128xf32> to vector<2x32x32xf32>
    %119 = vector.extract_strided_slice %115 {offsets = [0, 0, 0], sizes = [2, 24, 32], strides = [1, 1, 1]} : vector<2x24x128xf32> to vector<2x24x32xf32>
    "tpu.trace_start"() <{level = 10 : i32, message = "bqd,bkd->bqk"}> : () -> ()
    %cst_58 = arith.constant dense<0.000000e+00> : vector<2x32x24xf32>
    %120 = tpu.matmul %118, %119, %cst_58 {dimension_numbers = #tpu.dot_dimension_numbers<[2], [2], [1], [1], [0, 0, 0, 1, 1, 1], [0], [0]>} : vector<2x32x32xf32>, vector<2x24x32xf32>, vector<2x32x24xf32> -> vector<2x32x24xf32>
    "tpu.trace_stop"() : () -> ()
    %cst_59 = arith.constant 0.176776692 : f32
    %121 = vector.broadcast %cst_59 : f32 to vector<2x32x24xf32>
    %122 = arith.mulf %120, %121 : vector<2x32x24xf32>
    %cst_60 = arith.constant dense<0xFF800000> : vector<2x32xf32>
    %123 = vector.multi_reduction <maximumf>, %122, %cst_60 [2] : vector<2x32x24xf32> to vector<2x32xf32>
    %124 = vector.shape_cast %123 : vector<2x32xf32> to vector<2x32x1xf32>
    %125 = vector.broadcast %124 : vector<2x32x1xf32> to vector<2x32x24xf32>
    %126 = arith.subf %122, %125 : vector<2x32x24xf32>
    %127 = math.exp %126 : vector<2x32x24xf32>
    %cst_61 = arith.constant dense<0.000000e+00> : vector<2x32xf32>
    %128 = vector.multi_reduction <add>, %127, %cst_61 [2] : vector<2x32x24xf32> to vector<2x32xf32>
    %129 = vector.shape_cast %128 : vector<2x32xf32> to vector<2x32x1xf32>
    %130 = tpu.reciprocal %129 {approx = true} : vector<2x32x1xf32> -> vector<2x32x1xf32>
    %131 = vector.broadcast %130 : vector<2x32x1xf32> to vector<2x32x24xf32>
    %132 = arith.mulf %127, %131 : vector<2x32x24xf32>
    %133 = vector.extract_strided_slice %117 {offsets = [0, 0, 0], sizes = [2, 24, 32], strides = [1, 1, 1]} : vector<2x24x128xf32> to vector<2x24x32xf32>
    "tpu.trace_start"() <{level = 10 : i32, message = "bqk,bkd->bqd"}> : () -> ()
    %cst_62 = arith.constant dense<0.000000e+00> : vector<2x32x32xf32>
    %134 = tpu.matmul %132, %133, %cst_62 {dimension_numbers = #tpu.dot_dimension_numbers<[2], [1], [1], [2], [0, 0, 0, 1, 1, 2], [0], [0]>} : vector<2x32x24xf32>, vector<2x24x32xf32>, vector<2x32x32xf32> -> vector<2x32x32xf32>
    "tpu.trace_stop"() : () -> ()
    %135 = vector.extract_strided_slice %113 {offsets = [0, 0, 32], sizes = [2, 32, 32], strides = [1, 1, 1]} : vector<2x32x128xf32> to vector<2x32x32xf32>
    %136 = vector.extract_strided_slice %115 {offsets = [0, 0, 32], sizes = [2, 24, 32], strides = [1, 1, 1]} : vector<2x24x128xf32> to vector<2x24x32xf32>
    "tpu.trace_start"() <{level = 10 : i32, message = "bqd,bkd->bqk"}> : () -> ()
    %cst_63 = arith.constant dense<0.000000e+00> : vector<2x32x24xf32>
    %137 = tpu.matmul %135, %136, %cst_63 {dimension_numbers = #tpu.dot_dimension_numbers<[2], [2], [1], [1], [0, 0, 0, 1, 1, 1], [0], [0]>} : vector<2x32x32xf32>, vector<2x24x32xf32>, vector<2x32x24xf32> -> vector<2x32x24xf32>
    "tpu.trace_stop"() : () -> ()
    %cst_64 = arith.constant 0.176776692 : f32
    %138 = vector.broadcast %cst_64 : f32 to vector<2x32x24xf32>
    %139 = arith.mulf %137, %138 : vector<2x32x24xf32>
    %cst_65 = arith.constant dense<0xFF800000> : vector<2x32xf32>
    %140 = vector.multi_reduction <maximumf>, %139, %cst_65 [2] : vector<2x32x24xf32> to vector<2x32xf32>
    %141 = vector.shape_cast %140 : vector<2x32xf32> to vector<2x32x1xf32>
    %142 = vector.broadcast %141 : vector<2x32x1xf32> to vector<2x32x24xf32>
    %143 = arith.subf %139, %142 : vector<2x32x24xf32>
    %144 = math.exp %143 : vector<2x32x24xf32>
    %cst_66 = arith.constant dense<0.000000e+00> : vector<2x32xf32>
    %145 = vector.multi_reduction <add>, %144, %cst_66 [2] : vector<2x32x24xf32> to vector<2x32xf32>
    %146 = vector.shape_cast %145 : vector<2x32xf32> to vector<2x32x1xf32>
    %147 = tpu.reciprocal %146 {approx = true} : vector<2x32x1xf32> -> vector<2x32x1xf32>
    %148 = vector.broadcast %147 : vector<2x32x1xf32> to vector<2x32x24xf32>
    %149 = arith.mulf %144, %148 : vector<2x32x24xf32>
    %150 = vector.extract_strided_slice %117 {offsets = [0, 0, 32], sizes = [2, 24, 32], strides = [1, 1, 1]} : vector<2x24x128xf32> to vector<2x24x32xf32>
    "tpu.trace_start"() <{level = 10 : i32, message = "bqk,bkd->bqd"}> : () -> ()
    %cst_67 = arith.constant dense<0.000000e+00> : vector<2x32x32xf32>
    %151 = tpu.matmul %149, %150, %cst_67 {dimension_numbers = #tpu.dot_dimension_numbers<[2], [1], [1], [2], [0, 0, 0, 1, 1, 2], [0], [0]>} : vector<2x32x24xf32>, vector<2x24x32xf32>, vector<2x32x32xf32> -> vector<2x32x32xf32>
    "tpu.trace_stop"() : () -> ()
    %152 = vector.extract_strided_slice %113 {offsets = [0, 0, 64], sizes = [2, 32, 32], strides = [1, 1, 1]} : vector<2x32x128xf32> to vector<2x32x32xf32>
    %153 = vector.extract_strided_slice %115 {offsets = [0, 0, 64], sizes = [2, 24, 32], strides = [1, 1, 1]} : vector<2x24x128xf32> to vector<2x24x32xf32>
    "tpu.trace_start"() <{level = 10 : i32, message = "bqd,bkd->bqk"}> : () -> ()
    %cst_68 = arith.constant dense<0.000000e+00> : vector<2x32x24xf32>
    %154 = tpu.matmul %152, %153, %cst_68 {dimension_numbers = #tpu.dot_dimension_numbers<[2], [2], [1], [1], [0, 0, 0, 1, 1, 1], [0], [0]>} : vector<2x32x32xf32>, vector<2x24x32xf32>, vector<2x32x24xf32> -> vector<2x32x24xf32>
    "tpu.trace_stop"() : () -> ()
    %cst_69 = arith.constant 0.176776692 : f32
    %155 = vector.broadcast %cst_69 : f32 to vector<2x32x24xf32>
    %156 = arith.mulf %154, %155 : vector<2x32x24xf32>
    %cst_70 = arith.constant dense<0xFF800000> : vector<2x32xf32>
    %157 = vector.multi_reduction <maximumf>, %156, %cst_70 [2] : vector<2x32x24xf32> to vector<2x32xf32>
    %158 = vector.shape_cast %157 : vector<2x32xf32> to vector<2x32x1xf32>
    %159 = vector.broadcast %158 : vector<2x32x1xf32> to vector<2x32x24xf32>
    %160 = arith.subf %156, %159 : vector<2x32x24xf32>
    %161 = math.exp %160 : vector<2x32x24xf32>
    %cst_71 = arith.constant dense<0.000000e+00> : vector<2x32xf32>
    %162 = vector.multi_reduction <add>, %161, %cst_71 [2] : vector<2x32x24xf32> to vector<2x32xf32>
    %163 = vector.shape_cast %162 : vector<2x32xf32> to vector<2x32x1xf32>
    %164 = tpu.reciprocal %163 {approx = true} : vector<2x32x1xf32> -> vector<2x32x1xf32>
    %165 = vector.broadcast %164 : vector<2x32x1xf32> to vector<2x32x24xf32>
    %166 = arith.mulf %161, %165 : vector<2x32x24xf32>
    %167 = vector.extract_strided_slice %117 {offsets = [0, 0, 64], sizes = [2, 24, 32], strides = [1, 1, 1]} : vector<2x24x128xf32> to vector<2x24x32xf32>
    "tpu.trace_start"() <{level = 10 : i32, message = "bqk,bkd->bqd"}> : () -> ()
    %cst_72 = arith.constant dense<0.000000e+00> : vector<2x32x32xf32>
    %168 = tpu.matmul %166, %167, %cst_72 {dimension_numbers = #tpu.dot_dimension_numbers<[2], [1], [1], [2], [0, 0, 0, 1, 1, 2], [0], [0]>} : vector<2x32x24xf32>, vector<2x24x32xf32>, vector<2x32x32xf32> -> vector<2x32x32xf32>
    "tpu.trace_stop"() : () -> ()
    %169 = vector.extract_strided_slice %113 {offsets = [0, 0, 96], sizes = [2, 32, 32], strides = [1, 1, 1]} : vector<2x32x128xf32> to vector<2x32x32xf32>
    %170 = vector.extract_strided_slice %115 {offsets = [0, 0, 96], sizes = [2, 24, 32], strides = [1, 1, 1]} : vector<2x24x128xf32> to vector<2x24x32xf32>
    "tpu.trace_start"() <{level = 10 : i32, message = "bqd,bkd->bqk"}> : () -> ()
    %cst_73 = arith.constant dense<0.000000e+00> : vector<2x32x24xf32>
    %171 = tpu.matmul %169, %170, %cst_73 {dimension_numbers = #tpu.dot_dimension_numbers<[2], [2], [1], [1], [0, 0, 0, 1, 1, 1], [0], [0]>} : vector<2x32x32xf32>, vector<2x24x32xf32>, vector<2x32x24xf32> -> vector<2x32x24xf32>
    "tpu.trace_stop"() : () -> ()
    %cst_74 = arith.constant 0.176776692 : f32
    %172 = vector.broadcast %cst_74 : f32 to vector<2x32x24xf32>
    %173 = arith.mulf %171, %172 : vector<2x32x24xf32>
    %cst_75 = arith.constant dense<0xFF800000> : vector<2x32xf32>
    %174 = vector.multi_reduction <maximumf>, %173, %cst_75 [2] : vector<2x32x24xf32> to vector<2x32xf32>
    %175 = vector.shape_cast %174 : vector<2x32xf32> to vector<2x32x1xf32>
    %176 = vector.broadcast %175 : vector<2x32x1xf32> to vector<2x32x24xf32>
    %177 = arith.subf %173, %176 : vector<2x32x24xf32>
    %178 = math.exp %177 : vector<2x32x24xf32>
    %cst_76 = arith.constant dense<0.000000e+00> : vector<2x32xf32>
    %179 = vector.multi_reduction <add>, %178, %cst_76 [2] : vector<2x32x24xf32> to vector<2x32xf32>
    %180 = vector.shape_cast %179 : vector<2x32xf32> to vector<2x32x1xf32>
    %181 = tpu.reciprocal %180 {approx = true} : vector<2x32x1xf32> -> vector<2x32x1xf32>
    %182 = vector.broadcast %181 : vector<2x32x1xf32> to vector<2x32x24xf32>
    %183 = arith.mulf %178, %182 : vector<2x32x24xf32>
    %184 = vector.extract_strided_slice %117 {offsets = [0, 0, 96], sizes = [2, 24, 32], strides = [1, 1, 1]} : vector<2x24x128xf32> to vector<2x24x32xf32>
    "tpu.trace_start"() <{level = 10 : i32, message = "bqk,bkd->bqd"}> : () -> ()
    %cst_77 = arith.constant dense<0.000000e+00> : vector<2x32x32xf32>
    %185 = tpu.matmul %183, %184, %cst_77 {dimension_numbers = #tpu.dot_dimension_numbers<[2], [1], [1], [2], [0, 0, 0, 1, 1, 2], [0], [0]>} : vector<2x32x24xf32>, vector<2x24x32xf32>, vector<2x32x32xf32> -> vector<2x32x32xf32>
    "tpu.trace_stop"() : () -> ()
    %186 = tpu.concatenate %134, %151, %168, %185 in 2 : vector<2x32x32xf32>, vector<2x32x32xf32>, vector<2x32x32xf32>, vector<2x32x32xf32> -> vector<2x32x128xf32>
    %187 = vector.shape_cast %186 : vector<2x32x128xf32> to vector<64x128xf32>
    %188 = arith.truncf %187 : vector<64x128xf32> to vector<64x128xbf16>
    %cst_78 = arith.constant dense<0.000000e+00> : vector<64x128xf32>
    %189 = tpu.matmul %188, %8, %cst_78 {dimension_numbers = #tpu.dot_dimension_numbers<[1], [0], [0], [1], [0, 0, 1, 1], [], []>} : vector<64x128xbf16>, vector<128x128xbf16>, vector<64x128xf32> -> vector<64x128xf32>
    %190 = vector.shape_cast %189 : vector<64x128xf32> to vector<2x32x128xf32>
    %191 = arith.addf %106, %190 : vector<2x32x128xf32>
    %192 = vector.extract_strided_slice %191 {offsets = [0, 0, 0], sizes = [1, 32, 128], strides = [1, 1, 1]} : vector<2x32x128xf32> to vector<1x32x128xf32>
    %193 = vector.shape_cast %192 : vector<1x32x128xf32> to vector<32x128xf32>
    %cst_79 = arith.constant dense<0.000000e+00> : vector<32x128xf32>
    %194 = tpu.matmul %0, %193, %cst_79 {dimension_numbers = #tpu.dot_dimension_numbers<[1], [0], [0], [1], [0, 0, 1, 1], [], []>} : vector<32x32xf32>, vector<32x128xf32>, vector<32x128xf32> -> vector<32x128xf32>
    %195 = vector.extract_strided_slice %191 {offsets = [1, 0, 0], sizes = [1, 32, 128], strides = [1, 1, 1]} : vector<2x32x128xf32> to vector<1x32x128xf32>
    %196 = vector.shape_cast %195 : vector<1x32x128xf32> to vector<32x128xf32>
    %cst_80 = arith.constant dense<0.000000e+00> : vector<32x128xf32>
    %197 = tpu.matmul %0, %196, %cst_80 {dimension_numbers = #tpu.dot_dimension_numbers<[1], [0], [0], [1], [0, 0, 1, 1], [], []>} : vector<32x32xf32>, vector<32x128xf32>, vector<32x128xf32> -> vector<32x128xf32>
    %198 = vector.shape_cast %194 : vector<32x128xf32> to vector<1x32x128xf32>
    %199 = vector.shape_cast %197 : vector<32x128xf32> to vector<1x32x128xf32>
    %200 = tpu.concatenate %198, %199 in 0 : vector<1x32x128xf32>, vector<1x32x128xf32> -> vector<2x32x128xf32>
    %201 = arith.subf %191, %200 : vector<2x32x128xf32>
    %202 = vector.shape_cast %201 : vector<2x32x128xf32> to vector<64x128xf32>
    %203 = arith.truncf %202 : vector<64x128xf32> to vector<64x128xbf16>
    %cst_81 = arith.constant dense<0.000000e+00> : vector<64x256xf32>
    %204 = tpu.matmul %203, %9, %cst_81 {dimension_numbers = #tpu.dot_dimension_numbers<[1], [0], [0], [1], [0, 0, 1, 1], [], []>} : vector<64x128xbf16>, vector<128x256xbf16>, vector<64x256xf32> -> vector<64x256xf32>
    %cst_82 = arith.constant 0.000000e+00 : f32
    %205 = vector.broadcast %cst_82 : f32 to vector<64x256xf32>
    %206 = arith.maximumf %204, %205 : vector<64x256xf32>
    %207 = arith.truncf %206 : vector<64x256xf32> to vector<64x256xbf16>
    %cst_83 = arith.constant dense<0.000000e+00> : vector<64x128xf32>
    %208 = tpu.matmul %207, %10, %cst_83 {dimension_numbers = #tpu.dot_dimension_numbers<[1], [0], [0], [1], [0, 0, 1, 1], [], []>} : vector<64x256xbf16>, vector<256x128xbf16>, vector<64x128xf32> -> vector<64x128xf32>
    %209 = vector.shape_cast %208 : vector<64x128xf32> to vector<2x32x128xf32>
    %210 = arith.addf %201, %209 : vector<2x32x128xf32>
    %211 = vector.extract_strided_slice %210 {offsets = [0, 0, 0], sizes = [1, 32, 128], strides = [1, 1, 1]} : vector<2x32x128xf32> to vector<1x32x128xf32>
    %212 = vector.shape_cast %211 : vector<1x32x128xf32> to vector<32x128xf32>
    %cst_84 = arith.constant dense<0.000000e+00> : vector<32x128xf32>
    %213 = tpu.matmul %0, %212, %cst_84 {dimension_numbers = #tpu.dot_dimension_numbers<[1], [0], [0], [1], [0, 0, 1, 1], [], []>} : vector<32x32xf32>, vector<32x128xf32>, vector<32x128xf32> -> vector<32x128xf32>
    %214 = vector.extract_strided_slice %210 {offsets = [1, 0, 0], sizes = [1, 32, 128], strides = [1, 1, 1]} : vector<2x32x128xf32> to vector<1x32x128xf32>
    %215 = vector.shape_cast %214 : vector<1x32x128xf32> to vector<32x128xf32>
    %cst_85 = arith.constant dense<0.000000e+00> : vector<32x128xf32>
    %216 = tpu.matmul %0, %215, %cst_85 {dimension_numbers = #tpu.dot_dimension_numbers<[1], [0], [0], [1], [0, 0, 1, 1], [], []>} : vector<32x32xf32>, vector<32x128xf32>, vector<32x128xf32> -> vector<32x128xf32>
    %217 = vector.shape_cast %213 : vector<32x128xf32> to vector<1x32x128xf32>
    %218 = vector.shape_cast %216 : vector<32x128xf32> to vector<1x32x128xf32>
    %219 = tpu.concatenate %217, %218 in 0 : vector<1x32x128xf32>, vector<1x32x128xf32> -> vector<2x32x128xf32>
    %220 = arith.subf %210, %219 : vector<2x32x128xf32>
    %c0_86 = arith.constant 0 : index
    %c0_87 = arith.constant 0 : index
    %c0_88 = arith.constant 0 : index
    %221 = vector.load %arg15[%c0_86, %c0_87, %c0_88] : memref<2x32x128xf32, #tpu.memory_space<vmem>>, vector<2x32x128xf32>
    tpu.vector_store %arg15[%c0_86, %c0_87, %c0_88], %220 {strides = array<i32>} : memref<2x32x128xf32, #tpu.memory_space<vmem>>, vector<2x32x128xf32>,
    %222 = arith.addf %105, %200 : vector<2x32x128xf32>
    %223 = arith.addf %222, %219 : vector<2x32x128xf32>
    %224 = vector.shape_cast %223 : vector<2x32x128xf32> to vector<64x128xf32>
    %225 = arith.truncf %224 : vector<64x128xf32> to vector<64x128xbf16>
    %226 = vector.extract_strided_slice %11 {offsets = [0, 0, 0], sizes = [1, 128, 128], strides = [1, 1, 1]} : vector<3x128x128xbf16> to vector<1x128x128xbf16>
    %227 = vector.shape_cast %226 : vector<1x128x128xbf16> to vector<128x128xbf16>
    %cst_89 = arith.constant dense<0.000000e+00> : vector<64x128xf32>
    %228 = tpu.matmul %225, %227, %cst_89 {dimension_numbers = #tpu.dot_dimension_numbers<[1], [0], [0], [1], [0, 0, 1, 1], [], []>} : vector<64x128xbf16>, vector<128x128xbf16>, vector<64x128xf32> -> vector<64x128xf32>
    %229 = vector.shape_cast %228 : vector<64x128xf32> to vector<2x32x128xf32>
    %230 = vector.extract_strided_slice %11 {offsets = [1, 0, 0], sizes = [1, 128, 128], strides = [1, 1, 1]} : vector<3x128x128xbf16> to vector<1x128x128xbf16>
    %231 = vector.shape_cast %230 : vector<1x128x128xbf16> to vector<128x128xbf16>
    %cst_90 = arith.constant dense<0.000000e+00> : vector<64x128xf32>
    %232 = tpu.matmul %225, %231, %cst_90 {dimension_numbers = #tpu.dot_dimension_numbers<[1], [0], [0], [1], [0, 0, 1, 1], [], []>} : vector<64x128xbf16>, vector<128x128xbf16>, vector<64x128xf32> -> vector<64x128xf32>
    %233 = vector.shape_cast %232 : vector<64x128xf32> to vector<2x32x128xf32>
    %234 = vector.extract_strided_slice %11 {offsets = [2, 0, 0], sizes = [1, 128, 128], strides = [1, 1, 1]} : vector<3x128x128xbf16> to vector<1x128x128xbf16>
    %235 = vector.shape_cast %234 : vector<1x128x128xbf16> to vector<128x128xbf16>
    %cst_91 = arith.constant dense<0.000000e+00> : vector<64x128xf32>
    %236 = tpu.matmul %225, %235, %cst_91 {dimension_numbers = #tpu.dot_dimension_numbers<[1], [0], [0], [1], [0, 0, 1, 1], [], []>} : vector<64x128xbf16>, vector<128x128xbf16>, vector<64x128xf32> -> vector<64x128xf32>
    %237 = vector.shape_cast %236 : vector<64x128xf32> to vector<2x32x128xf32>
    %238 = vector.extract_strided_slice %229 {offsets = [0, 0, 0], sizes = [1, 32, 128], strides = [1, 1, 1]} : vector<2x32x128xf32> to vector<1x32x128xf32>
    %239 = vector.shape_cast %238 : vector<1x32x128xf32> to vector<32x128xf32>
    %c1_i32 = arith.constant 1 : i32
    %240 = tpu.dynamic_rotate %239 by %c1_i32 dim 0 : vector<32x128xf32>, i32 -> vector<32x128xf32>
    %241 = vector.extract_strided_slice %233 {offsets = [0, 0, 0], sizes = [1, 32, 128], strides = [1, 1, 1]} : vector<2x32x128xf32> to vector<1x32x128xf32>
    %242 = vector.shape_cast %241 : vector<1x32x128xf32> to vector<32x128xf32>
    %243 = arith.addf %240, %242 : vector<32x128xf32>
    %244 = vector.extract_strided_slice %237 {offsets = [0, 0, 0], sizes = [1, 32, 128], strides = [1, 1, 1]} : vector<2x32x128xf32> to vector<1x32x128xf32>
    %245 = vector.shape_cast %244 : vector<1x32x128xf32> to vector<32x128xf32>
    %c31_i32 = arith.constant 31 : i32
    %246 = tpu.dynamic_rotate %245 by %c31_i32 dim 0 : vector<32x128xf32>, i32 -> vector<32x128xf32>
    %247 = arith.addf %243, %246 : vector<32x128xf32>
    %c0_92 = arith.constant 0 : index
    %c0_93 = arith.constant 0 : index
    %c0_94 = arith.constant 0 : index
    %248 = vector.load %arg16[%c0_92, %c0_93, %c0_94] : memref<2x32x128xf32, #tpu.memory_space<vmem>>, vector<1x32x128xf32>
    %249 = vector.shape_cast %248 : vector<1x32x128xf32> to vector<32x128xf32>
    %250 = vector.shape_cast %247 : vector<32x128xf32> to vector<1x32x128xf32>
    tpu.vector_store %arg16[%c0_92, %c0_93, %c0_94], %250 {strides = array<i32>} : memref<2x32x128xf32, #tpu.memory_space<vmem>>, vector<1x32x128xf32>,
    %251 = vector.extract_strided_slice %229 {offsets = [1, 0, 0], sizes = [1, 32, 128], strides = [1, 1, 1]} : vector<2x32x128xf32> to vector<1x32x128xf32>
    %252 = vector.shape_cast %251 : vector<1x32x128xf32> to vector<32x128xf32>
    %c1_i32_95 = arith.constant 1 : i32
    %253 = tpu.dynamic_rotate %252 by %c1_i32_95 dim 0 : vector<32x128xf32>, i32 -> vector<32x128xf32>
    %254 = vector.extract_strided_slice %233 {offsets = [1, 0, 0], sizes = [1, 32, 128], strides = [1, 1, 1]} : vector<2x32x128xf32> to vector<1x32x128xf32>
    %255 = vector.shape_cast %254 : vector<1x32x128xf32> to vector<32x128xf32>
    %256 = arith.addf %253, %255 : vector<32x128xf32>
    %257 = vector.extract_strided_slice %237 {offsets = [1, 0, 0], sizes = [1, 32, 128], strides = [1, 1, 1]} : vector<2x32x128xf32> to vector<1x32x128xf32>
    %258 = vector.shape_cast %257 : vector<1x32x128xf32> to vector<32x128xf32>
    %c31_i32_96 = arith.constant 31 : i32
    %259 = tpu.dynamic_rotate %258 by %c31_i32_96 dim 0 : vector<32x128xf32>, i32 -> vector<32x128xf32>
    %260 = arith.addf %256, %259 : vector<32x128xf32>
    %c1 = arith.constant 1 : index
    %c0_97 = arith.constant 0 : index
    %c0_98 = arith.constant 0 : index
    %261 = vector.load %arg16[%c1, %c0_97, %c0_98] : memref<2x32x128xf32, #tpu.memory_space<vmem>>, vector<1x32x128xf32>
    %262 = vector.shape_cast %261 : vector<1x32x128xf32> to vector<32x128xf32>
    %263 = vector.shape_cast %260 : vector<32x128xf32> to vector<1x32x128xf32>
    tpu.vector_store %arg16[%c1, %c0_97, %c0_98], %263 {strides = array<i32>} : memref<2x32x128xf32, #tpu.memory_space<vmem>>, vector<1x32x128xf32>,
    return
  }
  func.func @transform_0(%arg0: i32) -> (i32, i32, i32) {
    %c0_i32 = arith.constant 0 : i32
    %c0_i32_0 = arith.constant 0 : i32
    %c0_i32_1 = arith.constant 0 : i32
    return %arg0, %c0_i32, %c0_i32_0 : i32, i32, i32
  }
  func.func @transform_1(%arg0: i32) -> (i32, i32, i32) {
    %c0_i32 = arith.constant 0 : i32
    %c0_i32_0 = arith.constant 0 : i32
    %c0_i32_1 = arith.constant 0 : i32
    return %arg0, %c0_i32, %c0_i32_0 : i32, i32, i32
  }
  func.func @transform_2(%arg0: i32) -> (i32, i32) {
    %c0_i32 = arith.constant 0 : i32
    %c0_i32_0 = arith.constant 0 : i32
    %c0_i32_1 = arith.constant 0 : i32
    return %c0_i32, %c0_i32_0 : i32, i32
  }
  func.func @transform_3(%arg0: i32) -> (i32, i32) {
    %c0_i32 = arith.constant 0 : i32
    %c0_i32_0 = arith.constant 0 : i32
    %c0_i32_1 = arith.constant 0 : i32
    return %c0_i32, %c0_i32_0 : i32, i32
  }
  func.func @transform_4(%arg0: i32) -> (i32, i32) {
    %c0_i32 = arith.constant 0 : i32
    %c0_i32_0 = arith.constant 0 : i32
    %c0_i32_1 = arith.constant 0 : i32
    return %c0_i32, %c0_i32_0 : i32, i32
  }
  func.func @transform_5(%arg0: i32) -> (i32, i32) {
    %c0_i32 = arith.constant 0 : i32
    %c0_i32_0 = arith.constant 0 : i32
    %c0_i32_1 = arith.constant 0 : i32
    return %c0_i32, %c0_i32_0 : i32, i32
  }
  func.func @transform_6(%arg0: i32) -> (i32, i32) {
    %c0_i32 = arith.constant 0 : i32
    %c0_i32_0 = arith.constant 0 : i32
    %c0_i32_1 = arith.constant 0 : i32
    return %c0_i32, %c0_i32_0 : i32, i32
  }
  func.func @transform_7(%arg0: i32) -> (i32, i32) {
    %c0_i32 = arith.constant 0 : i32
    %c0_i32_0 = arith.constant 0 : i32
    %c0_i32_1 = arith.constant 0 : i32
    return %c0_i32, %c0_i32_0 : i32, i32
  }
  func.func @transform_8(%arg0: i32) -> (i32, i32) {
    %c0_i32 = arith.constant 0 : i32
    %c0_i32_0 = arith.constant 0 : i32
    %c0_i32_1 = arith.constant 0 : i32
    return %c0_i32, %c0_i32_0 : i32, i32
  }
  func.func @transform_9(%arg0: i32) -> (i32, i32) {
    %c0_i32 = arith.constant 0 : i32
    %c0_i32_0 = arith.constant 0 : i32
    %c0_i32_1 = arith.constant 0 : i32
    return %c0_i32, %c0_i32_0 : i32, i32
  }
  func.func @transform_10(%arg0: i32) -> (i32, i32) {
    %c0_i32 = arith.constant 0 : i32
    %c0_i32_0 = arith.constant 0 : i32
    %c0_i32_1 = arith.constant 0 : i32
    return %c0_i32, %c0_i32_0 : i32, i32
  }
  func.func @transform_11(%arg0: i32) -> (i32, i32) {
    %c0_i32 = arith.constant 0 : i32
    %c0_i32_0 = arith.constant 0 : i32
    %c0_i32_1 = arith.constant 0 : i32
    return %c0_i32, %c0_i32_0 : i32, i32
  }
  func.func @transform_12(%arg0: i32) -> (i32, i32) {
    %c0_i32 = arith.constant 0 : i32
    %c0_i32_0 = arith.constant 0 : i32
    %c0_i32_1 = arith.constant 0 : i32
    return %c0_i32, %c0_i32_0 : i32, i32
  }
  func.func @transform_13(%arg0: i32) -> (i32, i32, i32) {
    %c0_i32 = arith.constant 0 : i32
    %c0_i32_0 = arith.constant 0 : i32
    %c0_i32_1 = arith.constant 0 : i32
    %c0_i32_2 = arith.constant 0 : i32
    return %c0_i32, %c0_i32_0, %c0_i32_1 : i32, i32, i32
  }
  func.func @transform_14(%arg0: i32) -> (i32, i32, i32) {
    %c0_i32 = arith.constant 0 : i32
    %c0_i32_0 = arith.constant 0 : i32
    %c0_i32_1 = arith.constant 0 : i32
    return %arg0, %c0_i32, %c0_i32_0 : i32, i32, i32
  }
  func.func @transform_15(%arg0: i32) -> (i32, i32, i32) {
    %c0_i32 = arith.constant 0 : i32
    %c0_i32_0 = arith.constant 0 : i32
    %c0_i32_1 = arith.constant 0 : i32
    return %arg0, %c0_i32, %c0_i32_0 : i32, i32, i32
  }
}

</mosaic_0001>

<bundles_post_ra>
// kernel: tpu_custom_call.1
= control target key start
LH: loop header
LB: loop body
LE: loop exit
PB: predicated region body
PF: predicated region fallthrough
CT: control target
= control target key end

     0   :  { %21 = vsyncpa [#allocation3], 0  ;;  %s8334_s0 = inlined_call_operand.hbm [shape: f32[2,32,128], index: 0, kind: input, shape index: {}]   ;;  %s8335_s1 = inlined_call_operand.hbm [shape: f32[2,24,128], index: 1, kind: input, shape index: {}]   ;;  %s8336_s2 = inlined_call_operand.hbm [shape: f32[32,32], index: 2, kind: input, shape index: {}]   ;;  %s8337_s3 = inlined_call_operand.hbm [shape: bf16[128,128], index: 3, kind: input, shape index: {}]   ;;  %s8338_s4 = inlined_call_operand.hbm [shape: bf16[128,128], index: 4, kind: input, shape index: {}]   ;;  %s8339_s5 = inlined_call_operand.hbm [shape: bf16[128,128], index: 5, kind: input, shape index: {}]   ;;  %s8340_s6 = inlined_call_operand.hbm [shape: bf16[128,128], index: 6, kind: input, shape index: {}]   ;;  %s8341_s7 = inlined_call_operand.hbm [shape: bf16[128,128], index: 7, kind: input, shape index: {}]   ;;  %s8342_s8 = inlined_call_operand.hbm [shape: bf16[128,128], index: 8, kind: input, shape index: {}]   ;;  %s8343_s9 = inlined_call_operand.hbm [shape: bf16[128,128], index: 9, kind: input, shape index: {}]   ;;  %s8344_s10 = inlined_call_operand.hbm [shape: bf16[128,128], index: 10, kind: input, shape index: {}]   ;;  %s8345_s11 = inlined_call_operand.hbm [shape: bf16[128,256], index: 11, kind: input, shape index: {}]   ;;  %s8346_s12 = inlined_call_operand.hbm [shape: bf16[256,128], index: 12, kind: input, shape index: {}]   ;;  %s8347_s13 = inlined_call_operand.hbm [shape: bf16[3,128,128], index: 13, kind: input, shape index: {}]   ;;  %s8348_s14 = inlined_call_operand.hbm [shape: f32[2,32,128], index: 14, kind: output, shape index: {0}]   ;;  %s8349_s15 = inlined_call_operand.hbm [shape: f32[2,32,128], index: 15, kind: output, shape index: {1}]  }
   0x1   :  { %22 = vsyncpa [#allocation6], 0 }
   0x2   :  { %23 = vsyncpa [#allocation9], 0 }
   0x3   :  { %24 = vsyncpa [#allocation12], 0 }
   0x4   :  { %25 = vsyncpa [#allocation15], 0 }
   0x5   :  { %26 = vsyncpa [#allocation18], 0 }
   0x6   :  { %27 = vsyncpa [#allocation21], 0 }
   0x7   :  { %28 = vsyncpa [#allocation24], 0 }
   0x8   :  { %29 = vsyncpa [#allocation4], 0 }
   0x9   :  { %30 = vsyncpa [#allocation27], 0  ;;  %s48_s20 = sshll.u32 %s8335_s1, 4  ;;  %s6510_s21 = smov [#allocation5]   ;;  %s49_s20 = int_to_ptr.hbm [resolvable:$true] %s48_s20 }
   0xa   :  { %s50_s22 = sshll.u32 %s6510_s21, 4  ;;  %s74_s25 = sshll.u32 %s8337_s3, 4  ;;  %s51_s22 = int_to_ptr.vmem [resolvable:$true] %s50_s22  ;;  %s75_s25 = int_to_ptr.hbm [resolvable:$true] %s74_s25 }
   0xb   :  { %s6511_s26 = smov 128   ;;  %s6512_s27 = smov 8  }
   0xc   :  { %56 = dma.hbm_to_vmem [thread:$0]  %s49_s20, 768, %s51_s22, [#allocation6], %s6511_s26, %s6511_s26, %s6512_s27  }
   0xd   :  { %s6513_s28 = smov [#allocation8]   ;;  %s6514_s30 = smov 64  }
   0xe   :  { %s76_s29 = sshll.u32 %s6513_s28, 4  ;;  %s6515_s1 = smov 4   ;;  %s77_s29 = int_to_ptr.vmem [resolvable:$true] %s76_s29 }
   0xf   :  { %82 = dma.hbm_to_vmem [thread:$0]  %s75_s25, 1024, %s77_s29, [#allocation9], %s6514_s30, %s6514_s30, %s6515_s1  }
  0x10   :  { %s100_s3 = sshll.u32 %s8339_s5, 4  ;;  %s6516_s18 = smov [#allocation11]   ;;  %s101_s3 = int_to_ptr.hbm [resolvable:$true] %s100_s3 }
  0x11   :  { %s102_s19 = sshll.u32 %s6516_s18, 4  ;;  %s126_s22 = sshll.u32 %s8341_s7, 4  ;;  %s103_s19 = int_to_ptr.vmem [resolvable:$true] %s102_s19  ;;  %s127_s22 = int_to_ptr.hbm [resolvable:$true] %s126_s22 }
  0x12   :  { %108 = dma.hbm_to_vmem [thread:$0]  %s101_s3, 1024, %s103_s19, [#allocation12], %s6514_s30, %s6514_s30, %s6515_s1  }
  0x13   :  { %s6517_s23 = smov [#allocation14]   ;;  %s152_s29 = sshll.u32 %s8343_s9, 4  ;;  %s153_s29 = int_to_ptr.hbm [resolvable:$true] %s152_s29 }
  0x14   :  { %s128_s24 = sshll.u32 %s6517_s23, 4  ;;  %s178_s7 = sshll.u32 %s8345_s11, 4  ;;  %s129_s24 = int_to_ptr.vmem [resolvable:$true] %s128_s24  ;;  %s179_s7 = int_to_ptr.hbm [resolvable:$true] %s178_s7 }
  0x15   :  { %134 = dma.hbm_to_vmem [thread:$0]  %s127_s22, 1024, %s129_s24, [#allocation15], %s6514_s30, %s6514_s30, %s6515_s1  }
  0x16   :  { %s6518_s17 = smov [#allocation17]   ;;  %s6519_s3 = smov [#allocation20]  }
  0x17   :  { %s154_s18 = sshll.u32 %s6518_s17, 4  ;;  %s180_s9 = sshll.u32 %s6519_s3, 4  ;;  %s155_s18 = int_to_ptr.vmem [resolvable:$true] %s154_s18  ;;  %s181_s9 = int_to_ptr.vmem [resolvable:$true] %s180_s9 }
  0x18   :  { %160 = dma.hbm_to_vmem [thread:$0]  %s153_s29, 1024, %s155_s18, [#allocation18], %s6514_s30, %s6514_s30, %s6515_s1  }
  0x19   :  { %s35_s20 = sshll.u32 %s8334_s0, 4  ;;  %s61_s23 = sshll.u32 %s8336_s2, 4  ;;  %s36_s20 = int_to_ptr.hbm [resolvable:$true] %s35_s20  ;;  %s62_s23 = int_to_ptr.hbm [resolvable:$true] %s61_s23 }
  0x1a   :  { %186 = dma.hbm_to_vmem [thread:$0]  %s179_s7, 2048, %s181_s9, [#allocation21], %s6511_s26, %s6511_s26, %s6512_s27  }
  0x1b   :  { %s6520_s24 = smov [#allocation2]   ;;  %s6521_s28 = smov [#allocation7]  }
  0x1c   :  { %s37_s25 = sshll.u32 %s6520_s24, 4  ;;  %s63_s0 = sshll.u32 %s6521_s28, 4  ;;  %s38_s25 = int_to_ptr.vmem [resolvable:$true] %s37_s25  ;;  %s64_s0 = int_to_ptr.vmem [resolvable:$true] %s63_s0 }
  0x1d   :  { %43 = dma.hbm_to_vmem [thread:$0]  %s36_s20, 1024, %s38_s25, [#allocation3], %s6511_s26, %s6511_s26, %s6512_s27  }
  0x1e   :  { %s87_s16 = sshll.u32 %s8338_s4, 4  ;;  %s113_s17 = sshll.u32 %s8340_s6, 4  ;;  %s88_s16 = int_to_ptr.hbm [resolvable:$true] %s87_s16  ;;  %s114_s17 = int_to_ptr.hbm [resolvable:$true] %s113_s17 }
  0x1f   :  { %69 = dma.hbm_to_vmem [thread:$0]  %s62_s23, 512, %s64_s0, [#allocation6], %s6511_s26, %s6511_s26, %s6512_s27  }
  0x20   :  { %s6522_s18 = smov [#allocation10]   ;;  %s6523_s9 = smov [#allocation13]  }
  0x21   :  { %s89_s3 = sshll.u32 %s6522_s18, 4  ;;  %s115_s4 = sshll.u32 %s6523_s9, 4  ;;  %s90_s3 = int_to_ptr.vmem [resolvable:$true] %s89_s3  ;;  %s116_s4 = int_to_ptr.vmem [resolvable:$true] %s115_s4 }
  0x22   :  { %95 = dma.hbm_to_vmem [thread:$0]  %s88_s16, 1024, %s90_s3, [#allocation9], %s6514_s30, %s6514_s30, %s6515_s1  }
  0x23   :  { %s139_s20 = sshll.u32 %s8342_s8, 4  ;;  %s165_s22 = sshll.u32 %s8344_s10, 4  ;;  %s140_s20 = int_to_ptr.hbm [resolvable:$true] %s139_s20  ;;  %s166_s22 = int_to_ptr.hbm [resolvable:$true] %s165_s22 }
  0x24   :  { %121 = dma.hbm_to_vmem [thread:$0]  %s114_s17, 1024, %s116_s4, [#allocation12], %s6514_s30, %s6514_s30, %s6515_s1  }
  0x25   :  { %s6524_s23 = smov [#allocation16]   ;;  %s6525_s25 = smov [#allocation19]  }
  0x26   :  { %s141_s24 = sshll.u32 %s6524_s23, 4  ;;  %s167_s8 = sshll.u32 %s6525_s25, 4  ;;  %s142_s24 = int_to_ptr.vmem [resolvable:$true] %s141_s24  ;;  %s168_s8 = int_to_ptr.vmem [resolvable:$true] %s167_s8 }
  0x27   :  { %147 = dma.hbm_to_vmem [thread:$0]  %s140_s20, 1024, %s142_s24, [#allocation15], %s6514_s30, %s6514_s30, %s6515_s1  }
  0x28   :  { %s191_s29 = sshll.u32 %s8346_s12, 4  ;;  %s204_s16 = sshll.u32 %s8347_s13, 4  ;;  %s192_s29 = int_to_ptr.hbm [resolvable:$true] %s191_s29  ;;  %s205_s16 = int_to_ptr.hbm [resolvable:$true] %s204_s16 }
  0x29   :  { %173 = dma.hbm_to_vmem [thread:$0]  %s166_s22, 1024, %s168_s8, [#allocation18], %s6514_s30, %s6514_s30, %s6515_s1  }
  0x2a   :  { %s6526_s2 = smov [#allocation22]   ;;  %s6527_s17 = smov [#allocation23]  }
  0x2b   :  { %s193_s7 = sshll.u32 %s6526_s2, 4  ;;  %s206_s12 = sshll.u32 %s6527_s17, 4  ;;  %s194_s7 = int_to_ptr.vmem [resolvable:$true] %s193_s7  ;;  %s207_s12 = int_to_ptr.vmem [resolvable:$true] %s206_s12 }
  0x2c   :  { %199 = dma.hbm_to_vmem [thread:$0]  %s192_s29, 2048, %s194_s7, [#allocation21], %s6514_s30, %s6514_s30, %s6515_s1  }
  0x2d   :  { %212 = dma.hbm_to_vmem [thread:$0]  %s205_s16, 3072, %s207_s12, [#allocation24], %s6514_s30, %s6514_s30, %s6515_s1  }
  0x2e   :  { %6490 = dma.done.wait [#allocation3], 1024  }
  0x2f   :  { %6491 = vsyncadd [#allocation3], 4294966272 }
  0x30   :  { %6492 = dma.done.wait [#allocation6], 1280  }
  0x31   :  { %6493 = vsyncadd [#allocation6], 4294966016 }
  0x32   :  { %6494 = dma.done.wait [#allocation9], 2048  }
  0x33   :  { %6495 = vsyncadd [#allocation9], 4294965248 }
  0x34   :  { %6496 = dma.done.wait [#allocation12], 2048  }
  0x35   :  { %6497 = vsyncadd [#allocation12], 4294965248 }
  0x36   :  { %6498 = dma.done.wait [#allocation15], 2048  }
  0x37   :  { %6499 = vsyncadd [#allocation15], 4294965248 }
  0x38   :  { %6500 = dma.done.wait [#allocation18], 2048  }
  0x39   :  { %6501 = vsyncadd [#allocation18], 4294965248 }
  0x3a   :  { %6502 = dma.done.wait [#allocation21], 4096  }
  0x3b   :  { %6503 = vsyncadd [#allocation21], 4294963200 }
  0x3c   :  { %6504 = dma.done.wait [#allocation24], 3072  }
  0x3d   :  { %6505 = vsyncadd [#allocation24], 4294964224  ;;  %v5471_v0 = vld [vmem:[#allocation8 + $0x38] sm:$0xff]  ;;  %v5470_v2 = vld [vmem:[#allocation8 + $0x30] sm:$0xff]  ;;  %s6528_s13 = smov 32   ;;  %s6529_s1 = smov 96  }
  0x3e   :  { %v5479_v1 = vld [vmem:[#allocation10 + $0x38] sm:$0xff]  ;;  %557 = vmatpush.bf16.msra.mxu0 %v5471_v0  ;;  %v5478_v3 = vld [vmem:[#allocation10 + $0x30] sm:$0xff]  ;;  %v5469_v4 = vld [vmem:[#allocation8 + $0x28] sm:$0xff]  ;;  %vm740_vm0 = vcmask 261120   ;;  %vm2109_vm1 = vcmask 523264   ;;  %vm2118_vm2 = vcmask 785408  }
  0x3f   :  { %634 = vmatpush.bf16.msra.mxu1 %v5479_v1  ;;  %v5477_v5 = vld [vmem:[#allocation10 + $0x28] sm:$0xff]  ;;  %v5468_v6 = vld [vmem:[#allocation8 + $0x20] sm:$0xff]  ;;  %v5467_v8 = vld [vmem:[#allocation8 + $0x18] sm:$0xff]  ;;  %vm2636_vm3 = vcmask 195584   ;;  %s4738_s4 = sshll.u32 %s8348_s14, 4  ;;  %s6531_s14 = smov [#allocation26]   ;;  %s4739_s4 = int_to_ptr.hbm [resolvable:$true] %s4738_s4 }
  0x40   :  { %v5476_v7 = vld [vmem:[#allocation10 + $0x20] sm:$0xff]  ;;  %v5475_v9 = vld [vmem:[#allocation10 + $0x18] sm:$0xff]  ;;  %v5466_v10 = vld [vmem:[#allocation8 + $0x10] sm:$0xff]  ;;  %s4749_s19 = sshll.u32 %s6531_s14, 4  ;;  %s4751_s6 = sshll.u32 %s8349_s15, 4  ;;  %s4750_s19 = int_to_ptr.vmem [resolvable:$true] %s4749_s19  ;;  %s4752_s6 = int_to_ptr.hbm [resolvable:$true] %s4751_s6 }
  0x41   :  { %v5474_v11 = vld [vmem:[#allocation10 + $0x10] sm:$0xff]  ;;  %v5465_v12 = vld [vmem:[#allocation8 + $0x8] sm:$0xff]  ;;  %v5464_v14 = vld [vmem:[#allocation8] sm:$0xff] }
  0x42   :  { %558 = vmatpush.bf16.msra.mxu0 %v5470_v2  ;;  %v5473_v13 = vld [vmem:[#allocation10 + $0x8] sm:$0xff]  ;;  %v5472_v15 = vld [vmem:[#allocation10] sm:$0xff]  ;;  %v497_v16 = vld [vmem:[#allocation2] sm:$0xff] }
  0x43   :  { %635 = vmatpush.bf16.msra.mxu1 %v5478_v3  ;;  %v498_v17 = vld [vmem:[#allocation2 + $0x8] sm:$0xff]  ;;  %v5486_v20 = vld [vmem:[#allocation11 + $0x30] sm:$0xff]  ;;  %v5485_v21 = vld [vmem:[#allocation11 + $0x28] sm:$0xff] }
  0x44   :  { %v505_v18 = vpack.c.bf16 %v498_v17, %v497_v16  ;;  %v5487_v19 = vld [vmem:[#allocation11 + $0x38] sm:$0xff]  ;;  %v499_v22 = vld [vmem:[#allocation2 + $0x10] sm:$0xff]  ;;  %v500_v23 = vld [vmem:[#allocation2 + $0x18] sm:$0xff] }
  0x45   :  { %711 = vmatpush.bf16.msra.mxu2 %v5487_v19  ;;  %v506_v24 = vpack.c.bf16 %v500_v23, %v499_v22  ;;  %v5484_v25 = vld [vmem:[#allocation11 + $0x20] sm:$0xff]  ;;  %v5483_v26 = vld [vmem:[#allocation11 + $0x18] sm:$0xff]  ;;  %v5482_v27 = vld [vmem:[#allocation11 + $0x10] sm:$0xff] }
  0x46   :  { %559 = vmatpush.bf16.msra.mxu0 %v5469_v4  ;;  %v501_v28 = vld [vmem:[#allocation2 + $0x20] sm:$0xff]  ;;  %v502_v29 = vld [vmem:[#allocation2 + $0x28] sm:$0xff]  ;;  %v5481_v30 = vld [vmem:[#allocation11 + $0x8] sm:$0xff] }
  0x47   :  { %636 = vmatpush.bf16.msra.mxu1 %v5477_v5  ;;  %v507_v31 = vpack.c.bf16 %v502_v29, %v501_v28  ;;  %v5480_v32 = vld [vmem:[#allocation11] sm:$0xff]  ;;  %v504_v34 = vld [vmem:[#allocation2 + $0x38] sm:$0xff] }
  0x48   :  { %v503_v33 = vld [vmem:[#allocation2 + $0x30] sm:$0xff] }
  0x49   :  { %712 = vmatpush.bf16.msra.mxu2 %v5486_v20  ;;  %v508_v35 = vpack.c.bf16 %v504_v34, %v503_v33 }
  0x4a   :  { %560 = vmatpush.bf16.msra.mxu0 %v5468_v6 }
  0x4b   :  { %637 = vmatpush.bf16.msra.mxu1 %v5476_v7 }
  0x4d   :  { %713 = vmatpush.bf16.msra.mxu2 %v5485_v21 }
  0x4e   :  { %561 = vmatpush.bf16.msra.mxu0 %v5467_v8 }
  0x4f   :  { %638 = vmatpush.bf16.msra.mxu1 %v5475_v9 }
  0x51   :  { %714 = vmatpush.bf16.msra.mxu2 %v5484_v25 }
  0x52   :  { %562 = vmatpush.bf16.msra.mxu0 %v5466_v10 }
  0x53   :  { %639 = vmatpush.bf16.msra.mxu1 %v5474_v11 }
  0x55   :  { %715 = vmatpush.bf16.msra.mxu2 %v5483_v26 }
  0x56   :  { %563 = vmatpush.bf16.msra.mxu0 %v5465_v12 }
  0x57   :  { %640 = vmatpush.bf16.msra.mxu1 %v5473_v13 }
  0x59   :  { %716 = vmatpush.bf16.msra.mxu2 %v5482_v27 }
  0x5a   :  { %564 = vmatpush.bf16.msra.mxu0 %v5464_v14 }
  0x5b   :  { %641 = vmatpush.bf16.msra.mxu1 %v5472_v15 }
  0x5d   :  { %565 = vmatmul.bf16.vlgmr.msra.gmra.mxu0 %v505_v18  ;;  %717 = vmatpush.bf16.msra.mxu2 %v5481_v30 }
  0x5e   :  { %642 = vmatmul.bf16.vlgmr.msra.gmra.mxu1 %v505_v18 }
  0x61   :  { %718 = vmatpush.bf16.msra.mxu2 %v5480_v32 }
  0x64   :  { %719 = vmatmul.bf16.vlgmr.msra.gmra.mxu2 %v505_v18 }
  0x6d   :  { %570 = vmatmul.bf16.gmra.mxu0 %v506_v24 }
  0x6e   :  { %647 = vmatmul.bf16.gmra.mxu1 %v506_v24 }
  0x74   :  { %724 = vmatmul.bf16.gmra.mxu2 %v506_v24 }
  0x7d   :  { %575 = vmatmul.bf16.gmra.mxu0 %v507_v31 }
  0x7e   :  { %652 = vmatmul.bf16.gmra.mxu1 %v507_v31 }
  0x84   :  { %729 = vmatmul.bf16.gmra.mxu2 %v507_v31 }
  0x8d   :  { %580 = vmatmul.bf16.gmra.mxu0 %v508_v35 }
  0x8e   :  { %657 = vmatmul.bf16.gmra.mxu1 %v508_v35 }
  0x94   :  { %734 = vmatmul.bf16.gmra.mxu2 %v508_v35 }
  0xda   :  { %v566_v36 = vpop.f32.mrf.mxu0 }
  0xdb   :  { %v643_v37 = vpop.f32.mrf.mxu1  ;;  %1025 = vrot.lane.b32.xlu0 %v566_v36, %s6529_s1 }
  0xdc   :  { %1689 = vrot.lane.b32.xlu1 %v643_v37, %s6528_s13  ;;  %1033 = vrot.lane.b32.xlu2 %v643_v37, %s6529_s1 }
  0xe2   :  { %v568_v39 = vpop.f32.mrf.mxu0 }
  0xe3   :  { %v645_v38 = vpop.f32.mrf.mxu1 }
  0xe4   :  { %1365 = vrot.lane.b32.xlu2 %v643_v37, %s6514_s30  ;;  %1681 = vrot.lane.b32.xlu1 %v566_v36, %s6528_s13 }
  0xe5   :  { %1367 = vrot.lane.b32.xlu0 %v645_v38, %s6514_s30 }
  0xe7   :  { %v6728_v45 = vpop.f32.mrf.mxu2 }
  0xea   :  { %v571_v42 = vpop.f32.mrf.mxu0 }
  0xeb   :  { %v648_v40 = vpop.f32.mrf.mxu1 }
  0xec   :  { %1035 = vrot.lane.b32.xlu1 %v645_v38, %s6529_s1  ;;  %1357 = vrot.lane.b32.xlu2 %v566_v36, %s6514_s30 }
  0xed   :  { %1359 = vrot.lane.b32.xlu0 %v568_v39, %s6514_s30 }
  0xef   :  { %v6735_v48 = vpop.f32.mrf.mxu2 }
  0xf2   :  { %v573_v46 = vpop.f32.mrf.mxu0 }
  0xf3   :  { %v650_v41 = vpop.f32.mrf.mxu1 }
  0xf4   :  { %4872 = vmatpush.xpose.msk.msrb.mxu2 %vm740_vm0, %v650_v41  ;;  %5584 = vmatpush.xpose.msk.msra.mxu3 %vm740_vm0, %v650_v41 }
  0xf5   :  { %1691 = vrot.lane.b32.xlu2 %v645_v38, %s6528_s13  ;;  %1037 = vrot.lane.b32.xlu0 %v648_v40, %s6529_s1 }
  0xf6   :  { %1027 = vrot.lane.b32.xlu1 %v568_v39, %s6529_s1 }
  0xf7   :  { %v6742_v50 = vpop.f32.mrf.mxu2 }
  0xf8   :  { %4873 = vmatpush.xpose.msk.msrb.mxu2 %vm740_vm0, %v648_v40  ;;  %5585 = vmatpush.xpose.msk.msra.mxu3 %vm740_vm0, %v648_v40 }
  0xfa   :  { %v576_v51 = vpop.f32.mrf.mxu0 }
  0xfb   :  { %v6712_v43 = vpop.f32.mrf.mxu1 }
  0xfc   :  { %4874 = vmatpush.xpose.msk.msrb.mxu2 %vm740_vm0, %v645_v38  ;;  %5586 = vmatpush.xpose.msk.msra.mxu3 %vm740_vm0, %v645_v38 }
  0xfd   :  { %1369 = vrot.lane.b32.xlu2 %v648_v40, %s6514_s30  ;;  %1685 = vrot.lane.b32.xlu0 %v571_v42, %s6528_s13 }
  0xfe   :  { %1683 = vrot.lane.b32.xlu1 %v568_v39, %s6528_s13 }
  0xff   :  { %v6750_v52 = vpop.f32.mrf.mxu2 }
 0x100   :  { %4875 = vmatpush.xpose.msk.msrb.mxu2 %vm740_vm0, %v643_v37  ;;  %5587 = vmatpush.xpose.msk.msra.mxu3 %vm740_vm0, %v643_v37 }
 0x102   :  { %v6755_v53 = vpop.f32.mrf.mxu0 }
 0x103   :  { %v6721_v44 = vpop.f32.mrf.mxu1  ;;  %4876 = vmatmul.msk.f32.vlgmr.msrb.gmra.mxu2 %vm740_vm0, %v566_v36  ;;  %4878 = vmatmul.msk.f32.vlgmr.msra.gmra.mxu3 %vm740_vm0, %v571_v42 }
 0x105   :  { %1695 = vrot.lane.b32.xlu0 %v650_v41, %s6528_s13  ;;  %1361 = vrot.lane.b32.xlu2 %v571_v42, %s6514_s30 }
 0x106   :  { %1029 = vrot.lane.b32.xlu1 %v571_v42, %s6529_s1 }
 0x107   :  { %v6765_v54 = vpop.f32.mrf.mxu2 }
 0x10a   :  { %v6778_v56 = vpop.f32.mrf.mxu0 }
 0x10b   :  { %v658_v47 = vpop.f32.mrf.mxu1  ;;  %4877 = vmatmul.msk.f32.gmra.mxu2 %vm740_vm0, %v568_v39  ;;  %4879 = vmatmul.msk.f32.gmra.mxu3 %vm740_vm0, %v573_v46 }
 0x10d   :  { %1039 = vrot.lane.b32.xlu2 %v650_v41, %s6529_s1  ;;  %1687 = vrot.lane.b32.xlu0 %v573_v46, %s6528_s13 }
 0x10e   :  { %1693 = vrot.lane.b32.xlu1 %v648_v40, %s6528_s13 }
 0x10f   :  { %v6776_v55 = vpop.f32.mrf.mxu2 }
 0x112   :  { %v6789_v59 = vpop.f32.mrf.mxu0 }
 0x113   :  { %v660_v49 = vpop.f32.mrf.mxu1 }
 0x114   :  { %4880 = vmatpush.xpose.msk.msrb.mxu3 %vm740_vm0, %v660_v49 }
 0x115   :  { %1094 = vrot.lane.b32.xlu0 %v6712_v43, %s6529_s1  ;;  %1031 = vrot.lane.b32.xlu2 %v573_v46, %s6529_s1 }
 0x116   :  { %1371 = vrot.lane.b32.xlu1 %v650_v41, %s6514_s30 }
 0x117   :  { %v6787_v58 = vpop.f32.mrf.mxu2 }
 0x118   :  { %4881 = vmatpush.xpose.msk.msrb.mxu3 %vm740_vm0, %v658_v47 }
 0x11c   :  { %4882 = vmatpush.xpose.msk.msrb.mxu3 %vm740_vm0, %v6721_v44 }
 0x11d   :  { %1418 = vrot.lane.b32.xlu0 %v576_v51, %s6514_s30  ;;  %1086 = vrot.lane.b32.xlu2 %v576_v51, %s6529_s1 }
 0x11e   :  { %1363 = vrot.lane.b32.xlu1 %v573_v46, %s6514_s30 }
 0x11f   :  { %v6797_v61 = vpop.f32.mrf.mxu2 }
 0x120   :  { %4883 = vmatpush.xpose.msk.msrb.mxu3 %vm740_vm0, %v6712_v43  ;;  %1008 = vmatpush.msrb.mxu0 %v6797_v61 }
 0x121   :  { %5588 = vmatpush.msra.mxu2 %v6797_v61 }
 0x122   :  { %1009 = vmatpush.msrb.mxu0 %v6787_v58 }
 0x123   :  { %4884 = vmatmul.msk.f32.vlgmr.msrb.gmra.mxu3 %vm740_vm0, %v576_v51  ;;  %5589 = vmatpush.msra.mxu2 %v6787_v58 }
 0x124   :  { %967 = vmatpush.msra.mxu3 %v6750_v52  ;;  %1010 = vmatpush.msrb.mxu0 %v6776_v55 }
 0x125   :  { %1096 = vrot.lane.b32.xlu0 %v6721_v44, %s6529_s1  ;;  %1426 = vrot.lane.b32.xlu2 %v6712_v43, %s6514_s30 }
 0x126   :  { %968 = vmatpush.msra.mxu3 %v6742_v50  ;;  %1088 = vrot.lane.b32.xlu1 %v6755_v53, %s6529_s1 }
 0x127   :  { %5590 = vmatpush.msra.mxu2 %v6776_v55  ;;  %1011 = vmatpush.msrb.mxu0 %v6765_v54 }
 0x128   :  { %969 = vmatpush.msra.mxu3 %v6735_v48 }
 0x129   :  { %5591 = vmatpush.msra.mxu2 %v6765_v54 }
 0x12a   :  { %970 = vmatpush.msra.mxu3 %v6728_v45 }
 0x12b   :  { %4885 = vmatmul.msk.f32.gmra.mxu3 %vm740_vm0, %v6755_v53 }
 0x12d   :  { %1428 = vrot.lane.b32.xlu0 %v6721_v44, %s6514_s30  ;;  %1420 = vrot.lane.b32.xlu2 %v6755_v53, %s6514_s30 }
 0x12e   :  { %1098 = vrot.lane.b32.xlu1 %v658_v47, %s6529_s1 }
 0x133   :  { %4886 = vmatmul.msk.f32.gmra.mxu3 %vm740_vm0, %v6778_v56 }
 0x135   :  { %1430 = vrot.lane.b32.xlu0 %v658_v47, %s6514_s30  ;;  %1090 = vrot.lane.b32.xlu2 %v6778_v56, %s6529_s1 }
 0x136   :  { %1422 = vrot.lane.b32.xlu1 %v6778_v56, %s6514_s30  ;;  %v1034_v57 = vpop.permute.xlu2 %1033 }
 0x13b   :  { %4887 = vmatmul.msk.f32.gmra.mxu3 %vm740_vm0, %v6789_v59 }
 0x13d   :  { %1100 = vrot.lane.b32.xlu0 %v660_v49, %s6529_s1  ;;  %1092 = vrot.lane.b32.xlu2 %v6789_v59, %s6529_s1 }
 0x13e   :  { %1754 = vrot.lane.b32.xlu1 %v658_v47, %s6528_s13  ;;  %v1366_v60 = vpop.permute.xlu2 %1365 }
 0x145   :  { %1432 = vrot.lane.b32.xlu0 %v660_v49, %s6514_s30  ;;  %1756 = vrot.lane.b32.xlu2 %v660_v49, %s6528_s13 }
 0x146   :  { %1750 = vrot.lane.b32.xlu1 %v6712_v43, %s6528_s13  ;;  %v1358_v62 = vpop.permute.xlu2 %1357 }
 0x14d   :  { %1424 = vrot.lane.b32.xlu2 %v6789_v59, %s6514_s30  ;;  %v6813_v1 = vpop.permute.xlu0 %1025 }
 0x14e   :  { %v1690_v63 = vpop.permute.xlu1 %1689 }
 0x14f   :  { %v1692_v0 = vpop.permute.xlu2 %1691 }
 0x155   :  { %1742 = vrot.lane.b32.xlu2 %v576_v51, %s6528_s13 }
 0x156   :  { %v6816_v2 = vpop.permute.xlu1 %1681 }
 0x157   :  { %v1370_v3 = vpop.permute.xlu2 %1369  ;;  %v1368_v4 = vpop.permute.xlu0 %1367 }
 0x15e   :  { %v1036_v5 = vpop.permute.xlu1 %1035 }
 0x15f   :  { %v1360_v6 = vpop.permute.xlu0 %1359  ;;  %v1362_v7 = vpop.permute.xlu2 %1361 }
 0x167   :  { %v1038_v8 = vpop.permute.xlu0 %1037  ;;  %v1040_v9 = vpop.permute.xlu2 %1039 }
 0x168   :  { %v1028_v10 = vpop.permute.xlu1 %1027  ;;  %4896 = vmatpush.xpose.msk.msra.mxu0 %vm740_vm0, %v1040_v9  ;;  %5592 = vmatpush.xpose.msk.msrb.mxu1 %vm740_vm0, %v1040_v9 }
 0x16c   :  { %4897 = vmatpush.xpose.msk.msra.mxu0 %vm740_vm0, %v1038_v8  ;;  %5593 = vmatpush.xpose.msk.msrb.mxu1 %vm740_vm0, %v1038_v8 }
 0x16f   :  { %v1686_v11 = vpop.permute.xlu0 %1685  ;;  %v1032_v17 = vpop.permute.xlu2 %1031 }
 0x170   :  { %v1684_v12 = vpop.permute.xlu1 %1683  ;;  %4898 = vmatpush.xpose.msk.msra.mxu0 %vm740_vm0, %v1036_v5  ;;  %5594 = vmatpush.xpose.msk.msrb.mxu1 %vm740_vm0, %v1036_v5 }
 0x174   :  { %4899 = vmatpush.xpose.msk.msra.mxu0 %vm740_vm0, %v1034_v57  ;;  %5595 = vmatpush.xpose.msk.msrb.mxu1 %vm740_vm0, %v1034_v57 }
 0x177   :  { %v1696_v13 = vpop.permute.xlu0 %1695  ;;  %4901 = vmatmul.msk.f32.vlgmr.msrb.gmra.mxu1 %vm740_vm0, %v1028_v10 }
 0x178   :  { %v1030_v14 = vpop.permute.xlu1 %1029 }
 0x17f   :  { %4902 = vmatmul.msk.f32.gmra.mxu1 %vm740_vm0, %v1030_v14  ;;  %v1688_v15 = vpop.permute.xlu0 %1687 }
 0x180   :  { %v1694_v16 = vpop.permute.xlu1 %1693 }
 0x186   :  { %v6834_v21 = vpop.f32.mrf.mxu3  ;;  %v782_v42 = vpop.f32.mrf.mxu2 }
 0x187   :  { %v1095_v18 = vpop.permute.xlu0 %1094  ;;  %4903 = vmatmul.msk.f32.gmra.mxu1 %vm740_vm0, %v1032_v17 }
 0x188   :  { %v1372_v19 = vpop.permute.xlu1 %1371 }
 0x189   :  { %4920 = vmatpush.xpose.msk.msra.mxu1 %vm740_vm0, %v1372_v19 }
 0x18d   :  { %4921 = vmatpush.xpose.msk.msra.mxu1 %vm740_vm0, %v1370_v3 }
 0x18e   :  { %v6840_v23 = vpop.f32.mrf.mxu3  ;;  %v785_v43 = vpop.f32.mrf.mxu2 }
 0x18f   :  { %v6831_v20 = vpop.permute.xlu0 %1418  ;;  %v848_v46 = vmul.f32 0.17677669, %v785_v43 }
 0x190   :  { %v1364_v24 = vpop.permute.xlu1 %1363 }
 0x191   :  { %4922 = vmatpush.xpose.msk.msra.mxu1 %vm740_vm0, %v1368_v4  ;;  %v858_v47 = vsel %vm740_vm0, %v848_v46, -inf }
 0x195   :  { %4923 = vmatpush.xpose.msk.msra.mxu1 %vm740_vm0, %v1366_v60 }
 0x197   :  { %v1097_v22 = vpop.permute.xlu0 %1096 }
 0x198   :  { %4924 = vmatmul.msk.f32.vlgmr.msra.gmra.mxu1 %vm740_vm0, %v1358_v62  ;;  %v6850_v29 = vpop.permute.xlu1 %1088 }
 0x199   :  { %4944 = vmatpush.xpose.msk.msrb.mxu1 %vm740_vm0, %v1696_v13 }
 0x19d   :  { %4945 = vmatpush.xpose.msk.msrb.mxu1 %vm740_vm0, %v1694_v16 }
 0x19f   :  { %v6843_v25 = vpop.permute.xlu0 %1428 }
 0x1a0   :  { %4925 = vmatmul.msk.f32.gmra.mxu1 %vm740_vm0, %v1360_v6  ;;  %v1099_v35 = vpop.permute.xlu1 %1098 }
 0x1a1   :  { %4946 = vmatpush.xpose.msk.msrb.mxu1 %vm740_vm0, %v1692_v0 }
 0x1a5   :  { %4947 = vmatpush.xpose.msk.msrb.mxu1 %vm740_vm0, %v1690_v63 }
 0x1a6   :  { %v835_v26 = vpop.f32.mrf.mxu3 }
 0x1a7   :  { %v6847_v27 = vpop.permute.xlu0 %1430  ;;  %v851_v28 = vmul.f32 0.17677669, %v835_v26 }
 0x1a8   :  { %4926 = vmatmul.msk.f32.gmra.mxu1 %vm740_vm0, %v1362_v7  ;;  %v6874_v49 = vpop.permute.xlu1 %1422 }
 0x1a9   :  { %v867_v30 = vsel %vm740_vm0, %v851_v28, -inf }
 0x1aa   :  { %868 = vmax.xlane.f32.xlu0 %v867_v30  ;;  %v6926_v30 = vmul.f32 0.17677669, %v6840_v23 }
 0x1ae   :  { %v838_v31 = vpop.f32.mrf.mxu3 }
 0x1af   :  { %v1101_v32 = vpop.permute.xlu0 %1100  ;;  %v852_v33 = vmul.f32 0.17677669, %v838_v31 }
 0x1b0   :  { %4927 = vmatmul.msk.f32.gmra.mxu1 %vm740_vm0, %v1364_v24  ;;  %4904 = vmatpush.xpose.msk.msrb.mxu2 %vm740_vm0, %v1101_v32  ;;  %v6878_v57 = vpop.permute.xlu1 %1754 }
 0x1b1   :  { %v870_v34 = vsel %vm740_vm0, %v852_v33, -inf }
 0x1b2   :  { %871 = vmax.xlane.f32.xlu0 %v870_v34 }
 0x1b4   :  { %4905 = vmatpush.xpose.msk.msrb.mxu2 %vm740_vm0, %v1099_v35  ;;  %v864_v35 = vsel %vm740_vm0, %v6926_v30, -inf }
 0x1b6   :  { %v841_v36 = vpop.f32.mrf.mxu3 }
 0x1b7   :  { %v853_v37 = vmul.f32 0.17677669, %v841_v36  ;;  %v6876_v51 = vpop.permute.xlu0 %1432 }
 0x1b8   :  { %4948 = vmatmul.msk.f32.vlgmr.msrb.gmra.mxu1 %vm740_vm0, %v6816_v2  ;;  %4906 = vmatpush.xpose.msk.msrb.mxu2 %vm740_vm0, %v1097_v22  ;;  %v6880_v63 = vpop.permute.xlu1 %1750  ;;  %v6913_v22 = vmul.f32 0.17677669, %v782_v42 }
 0x1b9   :  { %v873_v38 = vsel %vm740_vm0, %v853_v37, -inf }
 0x1ba   :  { %874 = vmax.xlane.f32.xlu1 %v873_v38 }
 0x1bc   :  { %4907 = vmatpush.xpose.msk.msrb.mxu2 %vm740_vm0, %v1095_v18  ;;  %v6909_v18 = vmul.f32 0.17677669, %v6834_v21 }
 0x1be   :  { %v844_v39 = vpop.f32.mrf.mxu3 }
 0x1bf   :  { %v6862_v40 = vmul.f32 0.17677669, %v844_v39 }
 0x1c0   :  { %4949 = vmatmul.msk.f32.gmra.mxu1 %vm740_vm0, %v1684_v12  ;;  %v6898_v12 = vpop.permute.xlu2 %1086 }
 0x1c1   :  { %v876_v41 = vsel %vm740_vm0, %v6862_v40, -inf }
 0x1c2   :  { %877 = vmax.xlane.f32.xlu1 %v876_v41 }
 0x1c6   :  { %1752 = vrot.lane.b32.xlu0 %v6721_v44, %s6528_s13 }
 0x1c8   :  { %4950 = vmatmul.msk.f32.gmra.mxu1 %vm740_vm0, %v1686_v11  ;;  %v6900_v13 = vpop.permute.xlu2 %1426 }
 0x1d0   :  { %4951 = vmatmul.msk.f32.gmra.mxu1 %vm740_vm0, %v1688_v15  ;;  %v6902_v14 = vpop.permute.xlu2 %1420 }
 0x1d8   :  { %v6906_v17 = vpop.permute.xlu2 %1090 }
 0x1db   :  { %1746 = vrot.lane.b32.xlu1 %v6778_v56, %s6528_s13 }
 0x1e0   :  { %v6919_v26 = vpop.permute.xlu2 %1092 }
 0x1e8   :  { %v6932_v36 = vpop.permute.xlu2 %1756 }
 0x1f0   :  { %v6942_v42 = vpop.permute.xlu2 %1424 }
 0x1f4   :  { %v1077_v15 = vpop.f32.mrf.mxu1 }
 0x1f5   :  { %v6917_v24 = vmul.f32 0.17677669, %v1077_v15 }
 0x1f7   :  { %v1158_v21 = vsel %vm740_vm0, %v6917_v24, -inf }
 0x1fc   :  { %v1080_v19 = vpop.f32.mrf.mxu1 }
 0x1fd   :  { %v6936_v39 = vmul.f32 0.17677669, %v1080_v19 }
 0x1ff   :  { %v1161_v41 = vsel %vm740_vm0, %v6936_v39, -inf }
 0x204   :  { %v1083_v31 = vpop.f32.mrf.mxu1 }
 0x205   :  { %859 = vmax.xlane.f32.xlu1 %v858_v47 }
 0x215   :  { %v6938_v23 = vpop.f32.mrf.mxu1 }
 0x21d   :  { %v869_v44 = vpop.xlane.xlu0 %868 }
 0x21e   :  { %v883_v60 = vsub.f32 %v851_v28, %v869_v44  ;;  %v855_v28 = vsel %vm740_vm0, %v6913_v22, -inf }
 0x220   :  { %v895_v62 = vmul.f32 1.442695, %v883_v60  ;;  %v6950_v60 = vpop.permute.xlu2 %1742 }
 0x222   :  { %5838 = vpow2.f32 %v895_v62 }
 0x225   :  { %v872_v0 = vpop.xlane.xlu0 %871 }
 0x226   :  { %v884_v56 = vsub.f32 %v852_v33, %v872_v0  ;;  %v6928_v33 = vmul.f32 0.17677669, %v1083_v31 }
 0x228   :  { %v6882_v2 = vpop.eup %5838  ;;  %v897_v3 = vmul.f32 1.442695, %v884_v56  ;;  %v1164_v38 = vsel %vm740_vm0, %v6928_v33, -inf }
 0x229   :  { %v915_v4 = vsel %vm740_vm0, %v6882_v2, 0.0 }
 0x22a   :  { %5840 = vpow2.f32 %v897_v3  ;;  %916 = vadd.xlane.f32.xlu2 %v915_v4 }
 0x22d   :  { %v875_v5 = vpop.xlane.xlu1 %874 }
 0x22e   :  { %v885_v6 = vsub.f32 %v853_v37, %v875_v5 }
 0x230   :  { %v6886_v7 = vpop.eup %5840  ;;  %v899_v8 = vmul.f32 1.442695, %v885_v6 }
 0x231   :  { %v918_v9 = vsel %vm740_vm0, %v6886_v7, 0.0 }
 0x232   :  { %5842 = vpow2.f32 %v899_v8  ;;  %919 = vadd.xlane.f32.xlu2 %v918_v9 }
 0x235   :  { %v6904_v16 = vpop.xlane.xlu1 %877 }
 0x238   :  { %v6890_v10 = vpop.eup %5842  ;;  %v6958_v6 = vpop.permute.xlu0 %1752 }
 0x239   :  { %v921_v11 = vsel %vm740_vm0, %v6890_v10, 0.0 }
 0x23a   :  { %922 = vadd.xlane.f32.xlu0 %v921_v11 }
 0x24a   :  { %1748 = vrot.lane.b32.xlu2 %v6789_v59, %s6528_s13  ;;  %v861_v59 = vsel %vm740_vm0, %v6909_v18, -inf }
 0x24e   :  { %1744 = vrot.lane.b32.xlu0 %v6755_v53, %s6528_s13  ;;  %v6915_v53 = vpop.permute.xlu1 %1746 }
 0x273   :  { %862 = vmax.xlane.f32.xlu2 %v861_v59  ;;  %v6970_v59 = vpack.i.bf16 %v6742_v50, %v6750_v52 }
 0x278   :  { %856 = vmax.xlane.f32.xlu0 %v855_v28  ;;  %v860_v32 = vpop.xlane.xlu1 %859 }
 0x279   :  { %v880_v34 = vsub.f32 %v848_v46, %v860_v32  ;;  %v1409_v46 = vpop.f32.mrf.mxu1 }
 0x27a   :  { %v6948_v44 = vmul.f32 0.17677669, %v1409_v46 }
 0x27b   :  { %1159 = vmax.xlane.f32.xlu2 %v1158_v21  ;;  %v889_v37 = vmul.f32 1.442695, %v880_v34 }
 0x27c   :  { %v1490_v62 = vsel %vm740_vm0, %v6948_v44, -inf }
 0x27d   :  { %5844 = vpow2.f32 %v889_v37 }
 0x280   :  { %865 = vmax.xlane.f32.xlu0 %v864_v35 }
 0x281   :  { %v1412_v0 = vpop.f32.mrf.mxu1 }
 0x282   :  { %v6954_v56 = vmul.f32 0.17677669, %v1412_v0 }
 0x283   :  { %1165 = vmax.xlane.f32.xlu2 %v1164_v38  ;;  %v6944_v43 = vpop.eup %5844 }
 0x284   :  { %v906_v47 = vsel %vm740_vm0, %v6944_v43, 0.0  ;;  %v1493_v4 = vsel %vm740_vm0, %v6954_v56, -inf }
 0x288   :  { %1162 = vmax.xlane.f32.xlu0 %v1161_v41 }
 0x290   :  { %907 = vadd.xlane.f32.xlu0 %v906_v47  ;;  %v7010_v47 = vmul.f32 0.17677669, %v6938_v23 }
 0x298   :  { %1491 = vmax.xlane.f32.xlu0 %v1490_v62  ;;  %v886_v62 = vsub.f32 %v6862_v40, %v6904_v16 }
 0x29d   :  { %v917_v3 = vpop.xlane.xlu2 %916 }
 0x29e   :  { %5846 = vrcp.f32 %v917_v3  ;;  %v901_v3 = vmul.f32 1.442695, %v886_v62 }
 0x2a0   :  { %1494 = vmax.xlane.f32.xlu0 %v1493_v4 }
 0x2a4   :  { %v5847_v5 = vpop.eup %5846 }
 0x2a5   :  { %v920_v8 = vpop.xlane.xlu2 %919  ;;  %v939_v9 = vmul.f32 %v5847_v5, %v6882_v2  ;;  %v7034_v5 = vpack.i.bf16 %v6787_v58, %v6797_v61 }
 0x2a6   :  { %5848 = vrcp.f32 %v920_v8 }
 0x2a7   :  { %4892 = vmatmul.msk.f32.vlgmr.msrb.gmra.mxu0 %vm740_vm0, %v939_v9 }
 0x2ac   :  { %v5849_v11 = vpop.eup %5848 }
 0x2ad   :  { %v940_v15 = vmul.f32 %v5849_v11, %v6886_v7  ;;  %v923_v19 = vpop.xlane.xlu0 %922 }
 0x2ae   :  { %5850 = vrcp.f32 %v923_v19 }
 0x2af   :  { %4893 = vmatmul.msk.f32.vlgmr.msra.gmra.mxu2 %vm740_vm0, %v940_v15  ;;  %4900 = vmatmul.msk.f32.vlgmr.msra.gmra.mxu0 %vm740_vm0, %v6813_v1  ;;  %v1415_v1 = vpop.f32.mrf.mxu1 }
 0x2b0   :  { %4928 = vmatpush.xpose.msk.msra.mxu2 %vm740_vm0, %v6876_v51  ;;  %v6986_v51 = vpop.permute.xlu2 %1748  ;;  %v7036_v8 = vmul.f32 0.17677669, %v1415_v1 }
 0x2b2   :  { %v1496_v9 = vsel %vm740_vm0, %v7036_v8, -inf }
 0x2b4   :  { %v5851_v2 = vpop.eup %5850  ;;  %4929 = vmatpush.xpose.msk.msra.mxu2 %vm740_vm0, %v6847_v27  ;;  %5619 = vrot.lane.b32.xlu0 %v6970_v59, %s6529_s1 }
 0x2b5   :  { %v941_v7 = vmul.f32 %v5851_v2, %v6890_v10 }
 0x2b7   :  { %4894 = vmatmul.msk.f32.gmra.mxu2 %vm740_vm0, %v941_v7  ;;  %v1730_v50 = vpop.f32.mrf.mxu1 }
 0x2b8   :  { %4930 = vmatpush.xpose.msk.msra.mxu2 %vm740_vm0, %v6843_v25  ;;  %v6982_v52 = vmul.f32 0.17677669, %v1730_v50 }
 0x2ba   :  { %v1811_v27 = vsel %vm740_vm0, %v6982_v52, -inf }
 0x2bc   :  { %4931 = vmatpush.xpose.msk.msra.mxu2 %vm740_vm0, %v6900_v13 }
 0x2c0   :  { %v6988_v28 = vpop.permute.xlu0 %1744 }
 0x2de   :  { %1812 = vmax.xlane.f32.xlu0 %v1811_v27 }
 0x2e6   :  { %v863_v10 = vpop.xlane.xlu2 %862 }
 0x2e7   :  { %v881_v21 = vsub.f32 %v6909_v18, %v863_v10 }
 0x2e9   :  { %v891_v31 = vmul.f32 1.442695, %v881_v21 }
 0x2eb   :  { %5852 = vpow2.f32 %v891_v31  ;;  %v857_v25 = vpop.xlane.xlu0 %856 }
 0x2ec   :  { %v879_v13 = vsub.f32 %v6913_v22, %v857_v25  ;;  %v7005_v22 = vpack.i.bf16 %v6765_v54, %v6776_v55  ;;  %v7022_v55 = vpack.i.bf16 %v6728_v45, %v6735_v48  ;;  %v1733_v48 = vpop.f32.mrf.mxu1 }
 0x2ed   :  { %v7042_v11 = vmul.f32 0.17677669, %v1733_v48 }
 0x2ee   :  { %v887_v32 = vmul.f32 1.442695, %v879_v13 }
 0x2ef   :  { %v1814_v19 = vsel %vm740_vm0, %v7042_v11, -inf }
 0x2f0   :  { %5854 = vpow2.f32 %v887_v32 }
 0x2f1   :  { %v6992_v34 = vpop.eup %5852 }
 0x2f2   :  { %5629 = vrot.lane.b32.xlu0 %v6970_v59, %s6514_s30  ;;  %v909_v35 = vsel %vm740_vm0, %v6992_v34, 0.0 }
 0x2f3   :  { %v866_v37 = vpop.xlane.xlu0 %865  ;;  %910 = vadd.xlane.f32.xlu2 %v909_v35 }
 0x2f4   :  { %v882_v18 = vsub.f32 %v6926_v30, %v866_v37  ;;  %v1487_v30 = vsel %vm740_vm0, %v7010_v47, -inf  ;;  %v1736_v2 = vpop.f32.mrf.mxu1 }
 0x2f5   :  { %v7046_v58 = vmul.f32 0.17677669, %v1736_v2 }
 0x2f6   :  { %v6998_v38 = vpop.eup %5854  ;;  %v893_v46 = vmul.f32 1.442695, %v882_v18 }
 0x2f7   :  { %v903_v41 = vsel %vm740_vm0, %v6998_v38, 0.0  ;;  %v1817_v1 = vsel %vm740_vm0, %v7046_v58, -inf }
 0x2f8   :  { %904 = vadd.xlane.f32.xlu1 %v903_v41  ;;  %5856 = vpow2.f32 %v893_v46 }
 0x2f9   :  { %5858 = vpow2.f32 %v901_v3 }
 0x2fa   :  { %5644 = vrot.lane.b32.xlu0 %v7005_v22, %s6529_s1 }
 0x2fb   :  { %v1163_v0 = vpop.xlane.xlu0 %1162 }
 0x2fc   :  { %v1181_v27 = vsub.f32 %v6936_v39, %v1163_v0  ;;  %v1739_v10 = vpop.f32.mrf.mxu1 }
 0x2fd   :  { %v7051_v31 = vmul.f32 0.17677669, %v1739_v10 }
 0x2fe   :  { %v7016_v4 = vpop.eup %5856  ;;  %v1191_v21 = vmul.f32 1.442695, %v1181_v27 }
 0x2ff   :  { %v912_v54 = vsel %vm740_vm0, %v7016_v4, 0.0  ;;  %v7028_v40 = vpop.eup %5858  ;;  %v1820_v13 = vsel %vm740_vm0, %v7051_v31, -inf }
 0x300   :  { %1488 = vmax.xlane.f32.xlu1 %v1487_v30  ;;  %v924_v16 = vsel %vm740_vm0, %v7028_v40, 0.0  ;;  %5860 = vpow2.f32 %v1191_v21  ;;  %v1160_v30 = vpop.xlane.xlu2 %1159 }
 0x303   :  { %v7024_v23 = vpop.xlane.xlu0 %907 }
 0x306   :  { %v7056_v35 = vpop.eup %5860 }
 0x307   :  { %v1209_v37 = vsel %vm740_vm0, %v7056_v35, 0.0 }
 0x308   :  { %913 = vadd.xlane.f32.xlu1 %v912_v54  ;;  %v1166_v3 = vpop.xlane.xlu2 %1165 }
 0x309   :  { %v1182_v54 = vsub.f32 %v6928_v33, %v1166_v3 }
 0x30b   :  { %5624 = vrot.lane.b32.xlu2 %v7022_v55, %s6529_s1  ;;  %v1492_v45 = vpop.xlane.xlu0 %1491 }
 0x30c   :  { %v1512_v25 = vsub.f32 %v6948_v44, %v1492_v45 }
 0x30e   :  { %v1521_v32 = vmul.f32 1.442695, %v1512_v25 }
 0x310   :  { %925 = vadd.xlane.f32.xlu1 %v924_v16  ;;  %5862 = vpow2.f32 %v1521_v32  ;;  %v1193_v16 = vmul.f32 1.442695, %v1182_v54 }
 0x313   :  { %5639 = vrot.lane.b32.xlu2 %v7034_v5, %s6529_s1  ;;  %v1495_v15 = vpop.xlane.xlu0 %1494 }
 0x314   :  { %v1513_v39 = vsub.f32 %v6954_v56, %v1495_v15  ;;  %v1180_v56 = vsub.f32 %v6917_v24, %v1160_v30 }
 0x316   :  { %v1523_v18 = vmul.f32 1.442695, %v1513_v39  ;;  %v7063_v41 = vpop.eup %5862  ;;  %v1189_v0 = vmul.f32 1.442695, %v1180_v56 }
 0x317   :  { %v1538_v44 = vsel %vm740_vm0, %v7063_v41, 0.0 }
 0x318   :  { %1497 = vmax.xlane.f32.xlu1 %v1496_v9  ;;  %5864 = vpow2.f32 %v1523_v18 }
 0x319   :  { %5866 = vpow2.f32 %v1189_v0 }
 0x31a   :  { %5868 = vpow2.f32 %v1193_v16 }
 0x31e   :  { %v7067_v46 = vpop.eup %5864 }
 0x31f   :  { %v1541_v62 = vsel %vm740_vm0, %v7067_v46, 0.0  ;;  %v7075_v9 = vpop.eup %5866 }
 0x320   :  { %1815 = vmax.xlane.f32.xlu1 %v1814_v19  ;;  %v1206_v15 = vsel %vm740_vm0, %v7075_v9, 0.0 }
 0x326   :  { %v5620_v61 = vpop.permute.xlu0 %5619 }
 0x327   :  { %v5621_v7 = vunpack.i.l.bf16 %v5620_v61  ;;  %v5622_v50 = vunpack.i.h.bf16 %v5620_v61  ;;  %v7079_v61 = vpop.eup %5868 }
 0x328   :  { %1818 = vmax.xlane.f32.xlu1 %v1817_v1 }
 0x329   :  { %1283 = vmatpush.msrb.mxu3 %v5621_v7 }
 0x32b   :  { %1284 = vmatpush.msrb.mxu3 %v5622_v50  ;;  %v1212_v50 = vsel %vm740_vm0, %v7079_v61, 0.0 }
 0x33c   :  { %1821 = vmax.xlane.f32.xlu2 %v1820_v13 }
 0x341   :  { %5634 = vrot.lane.b32.xlu1 %v7022_v55, %s6514_s30 }
 0x344   :  { %1210 = vadd.xlane.f32.xlu2 %v1209_v37 }
 0x34c   :  { %1539 = vadd.xlane.f32.xlu2 %v1538_v44 }
 0x351   :  { %v7073_v45 = vpop.xlane.xlu0 %1812 }
 0x354   :  { %1542 = vadd.xlane.f32.xlu2 %v1541_v62 }
 0x364   :  { %v5630_v2 = vpop.permute.xlu0 %5629 }
 0x365   :  { %v5631_v21 = vunpack.i.l.bf16 %v5630_v2  ;;  %v5632_v13 = vunpack.i.h.bf16 %v5630_v2 }
 0x366   :  { %v911_v48 = vpop.xlane.xlu2 %910 }
 0x36b   :  { %1207 = vadd.xlane.f32.xlu1 %v1206_v15  ;;  %v905_v19 = vpop.xlane.xlu1 %904 }
 0x36c   :  { %5870 = vrcp.f32 %v905_v19 }
 0x36d   :  { %5872 = vrcp.f32 %v7024_v23  ;;  %v5645_v23 = vpop.permute.xlu0 %5644 }
 0x36e   :  { %v5625_v24 = vpop.permute.xlu2 %5624 }
 0x36f   :  { %v5626_v7 = vunpack.i.l.bf16 %v5625_v24  ;;  %v5627_v1 = vunpack.i.h.bf16 %v5625_v24 }
 0x371   :  { %1285 = vmatpush.msrb.mxu3 %v5626_v7  ;;  %v1835_v7 = vsub.f32 %v6982_v52, %v7073_v45 }
 0x372   :  { %v5871_v33 = vpop.eup %5870 }
 0x373   :  { %v935_v27 = vmul.f32 %v5871_v33, %v6998_v38  ;;  %1213 = vadd.xlane.f32.xlu1 %v1212_v50  ;;  %1286 = vmatpush.msrb.mxu3 %v5627_v1  ;;  %v1489_v10 = vpop.xlane.xlu1 %1488  ;;  %v5873_v18 = vpop.eup %5872  ;;  %v5646_v38 = vunpack.i.l.bf16 %v5645_v23  ;;  %v1843_v1 = vmul.f32 1.442695, %v1835_v7 }
 0x374   :  { %v1511_v25 = vsub.f32 %v7010_v47, %v1489_v10  ;;  %v936_v30 = vmul.f32 %v5873_v18, %v6944_v43  ;;  %v5647_v47 = vunpack.i.h.bf16 %v5645_v23 }
 0x375   :  { %4888 = vmatmul.msk.f32.vlgmr.msra.gmra.mxu3 %vm740_vm0, %v935_v27 }
 0x376   :  { %v1519_v32 = vmul.f32 1.442695, %v1511_v25  ;;  %1611 = vmatpush.msra.mxu3 %v5631_v21  ;;  %v5640_v39 = vpop.permute.xlu2 %5639 }
 0x377   :  { %v5641_v37 = vunpack.i.l.bf16 %v5640_v39  ;;  %v5642_v44 = vunpack.i.h.bf16 %v5640_v39 }
 0x378   :  { %5874 = vpow2.f32 %v1519_v32  ;;  %1612 = vmatpush.msra.mxu3 %v5632_v13 }
 0x379   :  { %1340 = vmatpush.msrb.mxu0 %v5641_v37  ;;  %5876 = vrcp.f32 %v911_v48 }
 0x37b   :  { %1341 = vmatpush.msrb.mxu0 %v5642_v44  ;;  %v914_v62 = vpop.xlane.xlu1 %913 }
 0x37c   :  { %5878 = vrcp.f32 %v914_v62 }
 0x37d   :  { %4889 = vmatmul.msk.f32.gmra.mxu3 %vm740_vm0, %v936_v30  ;;  %1342 = vmatpush.msrb.mxu0 %v5646_v38 }
 0x37e   :  { %v7089_v56 = vpop.eup %5874 }
 0x37f   :  { %1343 = vmatpush.msrb.mxu0 %v5647_v47  ;;  %v1535_v0 = vsel %vm740_vm0, %v7089_v56, 0.0  ;;  %v5877_v3 = vpop.eup %5876 }
 0x380   :  { %1536 = vadd.xlane.f32.xlu1 %v1535_v0  ;;  %v937_v16 = vmul.f32 %v5877_v3, %v6992_v34 }
 0x382   :  { %v5879_v43 = vpop.eup %5878 }
 0x383   :  { %v926_v54 = vpop.xlane.xlu1 %925  ;;  %v938_v19 = vmul.f32 %v5879_v43, %v7016_v4  ;;  %v7106_v4 = vpop.f32.mrf.mxu0 }
 0x384   :  { %5880 = vrcp.f32 %v926_v54 }
 0x385   :  { %4890 = vmatmul.msk.f32.gmra.mxu3 %vm740_vm0, %v937_v16 }
 0x38a   :  { %v5881_v48 = vpop.eup %5880 }
 0x38b   :  { %v1498_v15 = vpop.xlane.xlu1 %1497  ;;  %v942_v2 = vmul.f32 %v5881_v48, %v7028_v40 }
 0x38c   :  { %v1514_v24 = vsub.f32 %v7036_v8, %v1498_v15  ;;  %v1074_v8 = vpop.f32.mrf.mxu0 }
 0x38d   :  { %4891 = vmatmul.msk.f32.gmra.mxu3 %vm740_vm0, %v938_v19  ;;  %4895 = vmatmul.msk.f32.gmra.mxu2 %vm740_vm0, %v942_v2  ;;  %v7124_v45 = vmul.f32 0.17677669, %v1074_v8 }
 0x38e   :  { %v1525_v34 = vmul.f32 1.442695, %v1514_v24 }
 0x390   :  { %5882 = vpow2.f32 %v1525_v34 }
 0x391   :  { %5884 = vpow2.f32 %v1843_v1 }
 0x395   :  { %4908 = vmatmul.msk.f32.vlgmr.msrb.gmra.mxu2 %vm740_vm0, %v6898_v12 }
 0x396   :  { %v7104_v33 = vpop.eup %5882  ;;  %4952 = vmatpush.xpose.msk.msrb.mxu2 %vm740_vm0, %v6932_v36  ;;  %v1816_v36 = vpop.xlane.xlu1 %1815 }
 0x397   :  { %v1544_v40 = vsel %vm740_vm0, %v7104_v33, 0.0  ;;  %v7114_v52 = vpop.eup %5884  ;;  %v1836_v15 = vsub.f32 %v7042_v11, %v1816_v36 }
 0x398   :  { %1545 = vadd.xlane.f32.xlu1 %v1544_v40  ;;  %v1859_v12 = vsel %vm740_vm0, %v7114_v52, 0.0 }
 0x399   :  { %v1845_v2 = vmul.f32 1.442695, %v1836_v15 }
 0x39a   :  { %4953 = vmatpush.xpose.msk.msrb.mxu2 %vm740_vm0, %v6878_v57 }
 0x39b   :  { %5886 = vpow2.f32 %v1845_v2 }
 0x39d   :  { %4909 = vmatmul.msk.f32.gmra.mxu2 %vm740_vm0, %v6850_v29  ;;  %v1155_v29 = vsel %vm740_vm0, %v7124_v45, -inf }
 0x39e   :  { %4954 = vmatpush.xpose.msk.msrb.mxu2 %vm740_vm0, %v6958_v6  ;;  %v7130_v57 = vpop.xlane.xlu1 %1818 }
 0x3a0   :  { %1860 = vadd.xlane.f32.xlu1 %v1859_v12 }
 0x3a1   :  { %v7204_v8 = vpop.eup %5886 }
 0x3a2   :  { %4955 = vmatpush.xpose.msk.msrb.mxu2 %vm740_vm0, %v6880_v63 }
 0x3a5   :  { %4910 = vmatmul.msk.f32.gmra.mxu2 %vm740_vm0, %v6906_v17 }
 0x3a8   :  { %1156 = vmax.xlane.f32.xlu1 %v1155_v29 }
 0x3ad   :  { %4911 = vmatmul.msk.f32.gmra.mxu2 %vm740_vm0, %v6919_v26 }
 0x3b3   :  { %v5635_v6 = vpop.permute.xlu1 %5634 }
 0x3b4   :  { %v5636_v50 = vunpack.i.l.bf16 %v5635_v6  ;;  %v5637_v63 = vunpack.i.h.bf16 %v5635_v6  ;;  %v1862_v6 = vsel %vm740_vm0, %v7204_v8, 0.0 }
 0x3b5   :  { %4932 = vmatmul.msk.f32.vlgmr.msra.gmra.mxu2 %vm740_vm0, %v6831_v20  ;;  %v7150_v20 = vpop.f32.mrf.mxu2 }
 0x3b6   :  { %1613 = vmatpush.msra.mxu3 %v5636_v50 }
 0x3b8   :  { %1614 = vmatpush.msra.mxu3 %v5637_v63  ;;  %v7214_v63 = vpop.xlane.xlu2 %1821 }
 0x3bd   :  { %4933 = vmatmul.msk.f32.gmra.mxu2 %vm740_vm0, %v6902_v14  ;;  %v7152_v14 = vpop.f32.mrf.mxu2 }
 0x3c5   :  { %4934 = vmatmul.msk.f32.gmra.mxu2 %vm740_vm0, %v6874_v49 }
 0x3cd   :  { %4935 = vmatmul.msk.f32.gmra.mxu2 %vm740_vm0, %v6942_v42 }
 0x3d5   :  { %4956 = vmatmul.msk.f32.vlgmr.msrb.gmra.mxu2 %vm740_vm0, %v6950_v60 }
 0x3dd   :  { %4957 = vmatmul.msk.f32.gmra.mxu2 %vm740_vm0, %v6988_v28 }
 0x3de   :  { %v7164_v27 = vpop.xlane.xlu1 %1207 }
 0x3e5   :  { %4958 = vmatmul.msk.f32.gmra.mxu2 %vm740_vm0, %v6915_v53 }
 0x3e6   :  { %v7172_v32 = vpop.xlane.xlu1 %1213 }
 0x3ed   :  { %4959 = vmatmul.msk.f32.gmra.mxu2 %vm740_vm0, %v6986_v51 }
 0x3f3   :  { %v7178_v23 = vpop.xlane.xlu1 %1536 }
 0x40b   :  { %v7184_v30 = vpop.xlane.xlu1 %1545 }
 0x410   :  { %v7154_v49 = vpop.f32.mrf.mxu2 }
 0x413   :  { %v7192_v16 = vpop.xlane.xlu1 %1860 }
 0x418   :  { %v1135_v17 = vpop.f32.mrf.mxu2 }
 0x419   :  { %v7156_v26 = vmul.f32 0.17677669, %v1135_v17 }
 0x41b   :  { %v1167_v42 = vsel %vm740_vm0, %v7156_v26, -inf  ;;  %v1157_v24 = vpop.xlane.xlu1 %1156 }
 0x41c   :  { %1168 = vmax.xlane.f32.xlu2 %v1167_v42  ;;  %v1179_v1 = vsub.f32 %v7124_v45, %v1157_v24 }
 0x41e   :  { %v1187_v12 = vmul.f32 1.442695, %v1179_v1 }
 0x420   :  { %v1138_v60 = vpop.f32.mrf.mxu2  ;;  %5888 = vpow2.f32 %v1187_v12 }
 0x421   :  { %v7160_v28 = vmul.f32 0.17677669, %v1138_v60 }
 0x423   :  { %v1170_v53 = vsel %vm740_vm0, %v7160_v28, -inf }
 0x424   :  { %1171 = vmax.xlane.f32.xlu1 %v1170_v53  ;;  %v7222_v53 = vpop.xlane.xlu2 %1210 }
 0x426   :  { %v7212_v45 = vpop.eup %5888 }
 0x427   :  { %v1203_v17 = vsel %vm740_vm0, %v7212_v45, 0.0 }
 0x428   :  { %v1141_v51 = vpop.f32.mrf.mxu2 }
 0x429   :  { %v7166_v10 = vmul.f32 0.17677669, %v1141_v51 }
 0x42b   :  { %v1173_v21 = vsel %vm740_vm0, %v7166_v10, -inf }
 0x42c   :  { %1174 = vmax.xlane.f32.xlu1 %v1173_v21  ;;  %v7228_v21 = vpop.xlane.xlu2 %1539 }
 0x430   :  { %v1144_v25 = vpop.f32.mrf.mxu2 }
 0x431   :  { %v7170_v13 = vmul.f32 0.17677669, %v1144_v25 }
 0x433   :  { %v1176_v39 = vsel %vm740_vm0, %v7170_v13, -inf }
 0x434   :  { %1177 = vmax.xlane.f32.xlu1 %v1176_v39  ;;  %v7232_v25 = vpop.xlane.xlu2 %1542 }
 0x438   :  { %v1467_v37 = vpop.f32.mrf.mxu2 }
 0x439   :  { %v7176_v18 = vmul.f32 0.17677669, %v1467_v37 }
 0x43b   :  { %v1499_v44 = vsel %vm740_vm0, %v7176_v18, -inf }
 0x43c   :  { %1500 = vmax.xlane.f32.xlu1 %v1499_v44 }
 0x440   :  { %v1470_v38 = vpop.f32.mrf.mxu2 }
 0x441   :  { %v7182_v62 = vmul.f32 0.17677669, %v1470_v38 }
 0x443   :  { %v1502_v47 = vsel %vm740_vm0, %v7182_v62, -inf }
 0x444   :  { %1503 = vmax.xlane.f32.xlu0 %v1502_v47 }
 0x448   :  { %v1473_v0 = vpop.f32.mrf.mxu2 }
 0x449   :  { %v7188_v3 = vmul.f32 0.17677669, %v1473_v0 }
 0x44b   :  { %v1505_v54 = vsel %vm740_vm0, %v7188_v3, -inf }
 0x44c   :  { %1506 = vmax.xlane.f32.xlu2 %v1505_v54 }
 0x450   :  { %v1476_v43 = vpop.f32.mrf.mxu2 }
 0x451   :  { %v7194_v48 = vmul.f32 0.17677669, %v1476_v43 }
 0x453   :  { %v1508_v19 = vsel %vm740_vm0, %v7194_v48, -inf }
 0x454   :  { %1509 = vmax.xlane.f32.xlu1 %v1508_v19 }
 0x458   :  { %v1791_v7 = vpop.f32.mrf.mxu2 }
 0x459   :  { %v7199_v34 = vmul.f32 0.17677669, %v1791_v7 }
 0x45b   :  { %v1823_v40 = vsel %vm740_vm0, %v7199_v34, -inf }
 0x45c   :  { %1824 = vmax.xlane.f32.xlu0 %v1823_v40 }
 0x460   :  { %v1794_v11 = vpop.f32.mrf.mxu2 }
 0x461   :  { %v7206_v36 = vmul.f32 0.17677669, %v1794_v11 }
 0x463   :  { %v1826_v29 = vsel %vm740_vm0, %v7206_v36, -inf }
 0x464   :  { %1827 = vmax.xlane.f32.xlu2 %v1826_v29  ;;  %1863 = vadd.xlane.f32.xlu0 %v1862_v6 }
 0x468   :  { %v1797_v50 = vpop.f32.mrf.mxu2 }
 0x469   :  { %v7251_v7 = vmul.f32 0.17677669, %v1797_v50 }
 0x46b   :  { %v1829_v11 = vsel %vm740_vm0, %v7251_v7, -inf }
 0x46c   :  { %1204 = vadd.xlane.f32.xlu2 %v1203_v17 }
 0x46d   :  { %5654 = vrot.lane.b32.xlu1 %v7022_v55, %s6528_s13  ;;  %v1837_v55 = vsub.f32 %v7046_v58, %v7130_v57 }
 0x46f   :  { %v1847_v44 = vmul.f32 1.442695, %v1837_v55 }
 0x470   :  { %v1800_v42 = vpop.f32.mrf.mxu2 }
 0x471   :  { %v7220_v60 = vmul.f32 0.17677669, %v1800_v42 }
 0x473   :  { %v1832_v51 = vsel %vm740_vm0, %v7220_v60, -inf }
 0x474   :  { %1833 = vmax.xlane.f32.xlu0 %v1832_v51 }
 0x475   :  { %5659 = vrot.lane.b32.xlu1 %v7034_v5, %s6514_s30 }
 0x484   :  { %5649 = vrot.lane.b32.xlu2 %v6970_v59, %s6528_s13 }
 0x48f   :  { %v1169_v39 = vpop.xlane.xlu2 %1168 }
 0x490   :  { %v1183_v37 = vsub.f32 %v7156_v26, %v1169_v39 }
 0x492   :  { %v1195_v38 = vmul.f32 1.442695, %v1183_v37 }
 0x494   :  { %5890 = vpow2.f32 %v1195_v38 }
 0x495   :  { %5892 = vpow2.f32 %v1847_v44 }
 0x497   :  { %v1172_v47 = vpop.xlane.xlu1 %1171 }
 0x498   :  { %v1184_v0 = vsub.f32 %v7160_v28, %v1172_v47 }
 0x49a   :  { %v7238_v54 = vpop.eup %5890  ;;  %v1197_v43 = vmul.f32 1.442695, %v1184_v0 }
 0x49b   :  { %v7240_v15 = vpop.eup %5892  ;;  %v1215_v59 = vsel %vm740_vm0, %v7238_v54, 0.0 }
 0x49c   :  { %1216 = vadd.xlane.f32.xlu0 %v1215_v59  ;;  %5894 = vpow2.f32 %v1197_v43  ;;  %v1865_v58 = vsel %vm740_vm0, %v7240_v15, 0.0 }
 0x49f   :  { %1866 = vadd.xlane.f32.xlu1 %v1865_v58  ;;  %v1175_v57 = vpop.xlane.xlu1 %1174 }
 0x4a0   :  { %v1185_v26 = vsub.f32 %v7166_v10, %v1175_v57 }
 0x4a2   :  { %v1199_v19 = vmul.f32 1.442695, %v1185_v26  ;;  %v7247_v2 = vpop.eup %5894 }
 0x4a3   :  { %v1218_v28 = vsel %vm740_vm0, %v7247_v2, 0.0 }
 0x4a4   :  { %5896 = vpow2.f32 %v1199_v19 }
 0x4a7   :  { %1219 = vadd.xlane.f32.xlu1 %v1218_v28  ;;  %v1178_v24 = vpop.xlane.xlu1 %1177 }
 0x4a8   :  { %v1186_v1 = vsub.f32 %v7170_v13, %v1178_v24 }
 0x4aa   :  { %v1201_v40 = vmul.f32 1.442695, %v1186_v1  ;;  %v7254_v12 = vpop.eup %5896 }
 0x4ab   :  { %v1221_v10 = vsel %vm740_vm0, %v7254_v12, 0.0 }
 0x4ac   :  { %5898 = vpow2.f32 %v1201_v40 }
 0x4ad   :  { %1830 = vmax.xlane.f32.xlu2 %v1829_v11 }
 0x4af   :  { %1222 = vadd.xlane.f32.xlu1 %v1221_v10  ;;  %v1501_v29 = vpop.xlane.xlu1 %1500 }
 0x4b0   :  { %v1515_v6 = vsub.f32 %v7176_v18, %v1501_v29 }
 0x4b2   :  { %v1527_v17 = vmul.f32 1.442695, %v1515_v6  ;;  %v7261_v50 = vpop.eup %5898 }
 0x4b3   :  { %v1224_v13 = vsel %vm740_vm0, %v7261_v50, 0.0 }
 0x4b4   :  { %5900 = vpow2.f32 %v1527_v17  ;;  %v1838_v17 = vsub.f32 %v7051_v31, %v7214_v63 }
 0x4b7   :  { %v1504_v42 = vpop.xlane.xlu0 %1503  ;;  %1225 = vadd.xlane.f32.xlu1 %v1224_v13 }
 0x4b8   :  { %v1516_v51 = vsub.f32 %v7182_v62, %v1504_v42 }
 0x4ba   :  { %v7266_v55 = vpop.eup %5900  ;;  %v1529_v39 = vmul.f32 1.442695, %v1516_v51 }
 0x4bb   :  { %v1547_v37 = vsel %vm740_vm0, %v7266_v55, 0.0 }
 0x4bc   :  { %5902 = vpow2.f32 %v1529_v39  ;;  %1548 = vadd.xlane.f32.xlu0 %v1547_v37 }
 0x4bf   :  { %v1507_v18 = vpop.xlane.xlu2 %1506 }
 0x4c0   :  { %v1517_v44 = vsub.f32 %v7188_v3, %v1507_v18 }
 0x4c2   :  { %v7271_v38 = vpop.eup %5902  ;;  %v1531_v47 = vmul.f32 1.442695, %v1517_v44  ;;  %v1849_v44 = vmul.f32 1.442695, %v1838_v17 }
 0x4c3   :  { %v1550_v0 = vsel %vm740_vm0, %v7271_v38, 0.0 }
 0x4c4   :  { %5904 = vpow2.f32 %v1531_v47  ;;  %1551 = vadd.xlane.f32.xlu2 %v1550_v0 }
 0x4c7   :  { %v1510_v62 = vpop.xlane.xlu1 %1509 }
 0x4c8   :  { %v1518_v43 = vsub.f32 %v7194_v48, %v1510_v62 }
 0x4ca   :  { %v7276_v59 = vpop.eup %5904  ;;  %v1533_v58 = vmul.f32 1.442695, %v1518_v43 }
 0x4cb   :  { %v1553_v57 = vsel %vm740_vm0, %v7276_v59, 0.0 }
 0x4cc   :  { %5906 = vpow2.f32 %v1533_v58  ;;  %1554 = vadd.xlane.f32.xlu2 %v1553_v57 }
 0x4cf   :  { %v1825_v3 = vpop.xlane.xlu0 %1824 }
 0x4d0   :  { %v1839_v26 = vsub.f32 %v7199_v34, %v1825_v3  ;;  %5664 = vrot.lane.b32.xlu0 %v7005_v22, %s6514_s30 }
 0x4d2   :  { %v7283_v19 = vpop.eup %5906  ;;  %v1851_v28 = vmul.f32 1.442695, %v1839_v26 }
 0x4d3   :  { %v1556_v48 = vsel %vm740_vm0, %v7283_v19, 0.0 }
 0x4d4   :  { %5908 = vpow2.f32 %v1851_v28  ;;  %1557 = vadd.xlane.f32.xlu2 %v1556_v48 }
 0x4d7   :  { %v1828_v24 = vpop.xlane.xlu2 %1827 }
 0x4d8   :  { %v1840_v63 = vsub.f32 %v7206_v36, %v1828_v24 }
 0x4da   :  { %v7287_v1 = vpop.eup %5908  ;;  %v1853_v62 = vmul.f32 1.442695, %v1840_v63 }
 0x4db   :  { %v1871_v40 = vsel %vm740_vm0, %v7287_v1, 0.0 }
 0x4dc   :  { %1872 = vadd.xlane.f32.xlu1 %v1871_v40 }
 0x4df   :  { %v1205_v11 = vpop.xlane.xlu2 %1204  ;;  %v5655_v34 = vpop.permute.xlu1 %5654 }
 0x4e0   :  { %5910 = vrcp.f32 %v1205_v11  ;;  %v5656_v47 = vunpack.i.l.bf16 %v5655_v34  ;;  %v5657_v31 = vunpack.i.h.bf16 %v5655_v34 }
 0x4e1   :  { %5912 = vrcp.f32 %v7164_v27  ;;  %v7298_v27 = vpop.xlane.xlu0 %1863 }
 0x4e2   :  { %5914 = vrcp.f32 %v7222_v53 }
 0x4e3   :  { %5916 = vpow2.f32 %v1849_v44 }
 0x4e4   :  { %5918 = vrcp.f32 %v7172_v32 }
 0x4e5   :  { %5920 = vpow2.f32 %v1853_v62 }
 0x4e6   :  { %v5911_v10 = vpop.eup %5910  ;;  %5922 = vrcp.f32 %v7178_v23 }
 0x4e7   :  { %v1235_v29 = vmul.f32 %v5911_v10, %v7212_v45  ;;  %v5650_v6 = vpop.permute.xlu2 %5649  ;;  %v5660_v42 = vpop.permute.xlu1 %5659 }
 0x4e8   :  { %v5651_v13 = vunpack.i.l.bf16 %v5650_v6  ;;  %v5661_v51 = vunpack.i.l.bf16 %v5660_v42  ;;  %v5652_v39 = vunpack.i.h.bf16 %v5650_v6  ;;  %v5662_v37 = vunpack.i.h.bf16 %v5660_v42  ;;  %v5913_v18 = vpop.eup %5912 }
 0x4e9   :  { %4912 = vmatmul.msk.f32.vlgmr.msrb.gmra.mxu3 %vm740_vm0, %v1235_v29  ;;  %v1236_v45 = vmul.f32 %v5913_v18, %v7075_v9  ;;  %v5915_v0 = vpop.eup %5914  ;;  %v1834_v43 = vpop.xlane.xlu0 %1833 }
 0x4ea   :  { %1935 = vmatpush.msrb.mxu3 %v5651_v13  ;;  %1664 = vmatpush.msra.mxu0 %v5661_v51  ;;  %v1237_v53 = vmul.f32 %v5915_v0, %v7056_v35  ;;  %v1842_v9 = vsub.f32 %v7220_v60, %v1834_v43  ;;  %v7357_v0 = vpop.f32.mrf.mxu3 }
 0x4ec   :  { %5669 = vrot.lane.b32.xlu2 %v7034_v5, %s6528_s13  ;;  %1936 = vmatpush.msrb.mxu3 %v5652_v39  ;;  %v7306_v5 = vpop.eup %5916  ;;  %v1857_v57 = vmul.f32 1.442695, %v1842_v9 }
 0x4ed   :  { %1665 = vmatpush.msra.mxu0 %v5662_v37  ;;  %v1868_v36 = vsel %vm740_vm0, %v7306_v5, 0.0  ;;  %v5919_v58 = vpop.eup %5918 }
 0x4ee   :  { %1937 = vmatpush.msrb.mxu3 %v5656_v47  ;;  %v7314_v3 = vpop.eup %5920  ;;  %5924 = vpow2.f32 %v1857_v57 }
 0x4ef   :  { %v1874_v35 = vsel %vm740_vm0, %v7314_v3, 0.0  ;;  %v5923_v32 = vpop.eup %5922  ;;  %5926 = vrcp.f32 %v7228_v21 }
 0x4f0   :  { %1938 = vmatpush.msrb.mxu3 %v5657_v31  ;;  %v1567_v26 = vmul.f32 %v5923_v32, %v7089_v56  ;;  %5928 = vrcp.f32 %v7232_v25 }
 0x4f1   :  { %4913 = vmatmul.msk.f32.gmra.mxu3 %vm740_vm0, %v1236_v45 }
 0x4f2   :  { %v7362_v9 = vpop.f32.mrf.mxu3 }
 0x4f4   :  { %v7321_v60 = vpop.eup %5924 }
 0x4f5   :  { %5674 = vrot.lane.b32.xlu1 %v7005_v22, %s6528_s13  ;;  %v1238_v22 = vmul.f32 %v5919_v58, %v7079_v61  ;;  %v1880_v23 = vsel %vm740_vm0, %v7321_v60, 0.0  ;;  %v5927_v61 = vpop.eup %5926 }
 0x4f6   :  { %v1568_v48 = vmul.f32 %v5927_v61, %v7063_v41  ;;  %v5929_v40 = vpop.eup %5928 }
 0x4f7   :  { %v1569_v11 = vmul.f32 %v5929_v40, %v7067_v46 }
 0x4f9   :  { %4914 = vmatmul.msk.f32.gmra.mxu3 %vm740_vm0, %v1237_v53 }
 0x4fa   :  { %1869 = vadd.xlane.f32.xlu0 %v1868_v36 }
 0x501   :  { %4915 = vmatmul.msk.f32.gmra.mxu3 %vm740_vm0, %v1238_v22  ;;  %v7367_v22 = vpop.f32.mrf.mxu3 }
 0x502   :  { %1875 = vadd.xlane.f32.xlu0 %v1874_v35 }
 0x509   :  { %4936 = vmatmul.msk.f32.vlgmr.msra.gmra.mxu3 %vm740_vm0, %v1567_v26  ;;  %v7371_v26 = vpop.f32.mrf.mxu3 }
 0x50a   :  { %1881 = vadd.xlane.f32.xlu0 %v1880_v23 }
 0x50f   :  { %v1217_v28 = vpop.xlane.xlu0 %1216 }
 0x510   :  { %5930 = vrcp.f32 %v1217_v28 }
 0x511   :  { %4937 = vmatmul.msk.f32.gmra.mxu3 %vm740_vm0, %v1568_v48  ;;  %5932 = vrcp.f32 %v7184_v30 }
 0x512   :  { %v1867_v24 = vpop.xlane.xlu1 %1866 }
 0x516   :  { %v5931_v21 = vpop.eup %5930 }
 0x517   :  { %v1239_v56 = vmul.f32 %v5931_v21, %v7238_v54  ;;  %v5933_v34 = vpop.eup %5932 }
 0x518   :  { %v1570_v41 = vmul.f32 %v5933_v34, %v7104_v33 }
 0x519   :  { %4916 = vmatmul.msk.f32.vlgmr.msrb.gmra.mxu0 %vm740_vm0, %v1239_v56  ;;  %4938 = vmatmul.msk.f32.gmra.mxu3 %vm740_vm0, %v1569_v11 }
 0x51a   :  { %v1220_v25 = vpop.xlane.xlu1 %1219 }
 0x51b   :  { %5934 = vrcp.f32 %v1220_v25 }
 0x51c   :  { %5936 = vrcp.f32 %v7192_v16 }
 0x520   :  { %v1831_v10 = vpop.xlane.xlu2 %1830 }
 0x521   :  { %v5935_v29 = vpop.eup %5934  ;;  %v1841_v6 = vsub.f32 %v7251_v7, %v1831_v10  ;;  %4939 = vmatmul.msk.f32.gmra.mxu3 %vm740_vm0, %v1570_v41 }
 0x522   :  { %v1223_v30 = vpop.xlane.xlu1 %1222  ;;  %v1240_v46 = vmul.f32 %v5935_v29, %v7247_v2  ;;  %v5937_v17 = vpop.eup %5936 }
 0x523   :  { %v1855_v54 = vmul.f32 1.442695, %v1841_v6  ;;  %5938 = vrcp.f32 %v1223_v30  ;;  %v1891_v16 = vmul.f32 %v5937_v17, %v7114_v52 }
 0x524   :  { %4917 = vmatmul.msk.f32.gmra.mxu0 %vm740_vm0, %v1240_v46 }
 0x525   :  { %5940 = vpow2.f32 %v1855_v54 }
 0x526   :  { %5942 = vrcp.f32 %v7298_v27 }
 0x529   :  { %v5939_v33 = vpop.eup %5938  ;;  %4960 = vmatmul.msk.f32.vlgmr.msrb.gmra.mxu3 %vm740_vm0, %v1891_v16 }
 0x52a   :  { %v1226_v13 = vpop.xlane.xlu1 %1225  ;;  %v1241_v7 = vmul.f32 %v5939_v33, %v7254_v12 }
 0x52b   :  { %v7346_v42 = vpop.eup %5940  ;;  %5944 = vrcp.f32 %v1226_v13 }
 0x52c   :  { %v5943_v2 = vpop.eup %5942  ;;  %4918 = vmatmul.msk.f32.gmra.mxu0 %vm740_vm0, %v1241_v7  ;;  %v1877_v51 = vsel %vm740_vm0, %v7346_v42, 0.0  ;;  %5946 = vrcp.f32 %v1867_v24 }
 0x52d   :  { %1878 = vadd.xlane.f32.xlu2 %v1877_v51  ;;  %v1892_v39 = vmul.f32 %v5943_v2, %v7204_v8 }
 0x52f   :  { %v1549_v47 = vpop.xlane.xlu0 %1548 }
 0x530   :  { %5948 = vrcp.f32 %v1549_v47 }
 0x531   :  { %v5945_v52 = vpop.eup %5944  ;;  %4961 = vmatmul.msk.f32.gmra.mxu3 %vm740_vm0, %v1892_v39 }
 0x532   :  { %v1242_v37 = vmul.f32 %v5945_v52, %v7261_v50  ;;  %v5947_v18 = vpop.eup %5946 }
 0x533   :  { %v1893_v44 = vmul.f32 %v5947_v18, %v7240_v15 }
 0x534   :  { %4919 = vmatmul.msk.f32.gmra.mxu0 %vm740_vm0, %v1242_v37 }
 0x536   :  { %v5949_v45 = vpop.eup %5948 }
 0x537   :  { %v1552_v12 = vpop.xlane.xlu2 %1551  ;;  %v1571_v50 = vmul.f32 %v5949_v45, %v7266_v55 }
 0x538   :  { %5950 = vrcp.f32 %v1552_v12 }
 0x539   :  { %4962 = vmatmul.msk.f32.gmra.mxu3 %vm740_vm0, %v1893_v44 }
 0x53e   :  { %v5951_v15 = vpop.eup %5950 }
 0x53f   :  { %v1555_v27 = vpop.xlane.xlu2 %1554  ;;  %v1572_v43 = vmul.f32 %v5951_v15, %v7271_v38  ;;  %v5493_v15 = vld [vmem:[#allocation13 + $0x28] sm:$0xff] }
 0x540   :  { %5952 = vrcp.f32 %v1555_v27 }
 0x542   :  { %v5665_v31 = vpop.permute.xlu0 %5664 }
 0x543   :  { %v5666_v63 = vunpack.i.l.bf16 %v5665_v31  ;;  %v5667_v8 = vunpack.i.h.bf16 %v5665_v31 }
 0x545   :  { %1666 = vmatpush.msra.mxu0 %v5666_v63  ;;  %v5495_v63 = vld [vmem:[#allocation13 + $0x38] sm:$0xff] }
 0x546   :  { %v5953_v57 = vpop.eup %5952  ;;  %2179 = vmatpush.bf16.msra.mxu1 %v5495_v63 }
 0x547   :  { %v1558_v62 = vpop.xlane.xlu2 %1557  ;;  %1667 = vmatpush.msra.mxu0 %v5667_v8  ;;  %v1573_v55 = vmul.f32 %v5953_v57, %v7276_v59  ;;  %v5494_v8 = vld [vmem:[#allocation13 + $0x30] sm:$0xff]  ;;  %v5491_v57 = vld [vmem:[#allocation13 + $0x18] sm:$0xff] }
 0x548   :  { %4940 = vmatmul.msk.f32.vlgmr.msra.gmra.mxu0 %vm740_vm0, %v1571_v50  ;;  %5954 = vrcp.f32 %v1558_v62 }
 0x54a   :  { %2180 = vmatpush.bf16.msra.mxu1 %v5494_v8 }
 0x54e   :  { %v5955_v35 = vpop.eup %5954  ;;  %2181 = vmatpush.bf16.msra.mxu1 %v5493_v15 }
 0x54f   :  { %v5670_v53 = vpop.permute.xlu2 %5669  ;;  %v1574_v38 = vmul.f32 %v5955_v35, %v7283_v19  ;;  %v1873_v32 = vpop.xlane.xlu1 %1872 }
 0x550   :  { %v5671_v36 = vunpack.i.l.bf16 %v5670_v53  ;;  %4941 = vmatmul.msk.f32.gmra.mxu0 %vm740_vm0, %v1572_v43  ;;  %v5672_v58 = vunpack.i.h.bf16 %v5670_v53  ;;  %5956 = vrcp.f32 %v1873_v32  ;;  %v5492_v43 = vld [vmem:[#allocation13 + $0x20] sm:$0xff]  ;;  %v5489_v32 = vld [vmem:[#allocation13 + $0x8] sm:$0xff] }
 0x552   :  { %1988 = vmatpush.msrb.mxu0 %v5671_v36  ;;  %2182 = vmatpush.bf16.msra.mxu1 %v5492_v43 }
 0x554   :  { %1989 = vmatpush.msrb.mxu0 %v5672_v58 }
 0x556   :  { %v5957_v61 = vpop.eup %5956  ;;  %2183 = vmatpush.bf16.msra.mxu1 %v5491_v57 }
 0x557   :  { %v1895_v59 = vmul.f32 %v5957_v61, %v7287_v1  ;;  %v5488_v61 = vld [vmem:[#allocation13] sm:$0xff] }
 0x558   :  { %4942 = vmatmul.msk.f32.gmra.mxu0 %vm740_vm0, %v1573_v55  ;;  %v5490_v55 = vld [vmem:[#allocation13 + $0x10] sm:$0xff] }
 0x55a   :  { %2184 = vmatpush.bf16.msra.mxu1 %v5490_v55 }
 0x55e   :  { %2185 = vmatpush.bf16.msra.mxu1 %v5489_v32 }
 0x560   :  { %4943 = vmatmul.msk.f32.gmra.mxu0 %vm740_vm0, %v1574_v38 }
 0x562   :  { %2186 = vmatpush.bf16.msra.mxu1 %v5488_v61 }
 0x567   :  { %v5675_v23 = vpop.permute.xlu1 %5674 }
 0x568   :  { %v5676_v28 = vunpack.i.l.bf16 %v5675_v23  ;;  %v5677_v48 = vunpack.i.h.bf16 %v5675_v23 }
 0x56a   :  { %1990 = vmatpush.msrb.mxu0 %v5676_v28 }
 0x56c   :  { %v1288_v24 = vpop.f32.mrf.mxu3  ;;  %1991 = vmatpush.msrb.mxu0 %v5677_v48 }
 0x56d   :  { %v1870_v40 = vpop.xlane.xlu0 %1869  ;;  %4964 = vmatmul.msk.f32.vlgmr.msrb.gmra.mxu0 %vm740_vm0, %v1895_v59 }
 0x56e   :  { %5958 = vrcp.f32 %v1870_v40 }
 0x574   :  { %v5959_v19 = vpop.eup %5958  ;;  %v1291_v21 = vpop.f32.mrf.mxu3 }
 0x575   :  { %v5678_v56 = vpack.i.bf16 %v1291_v21, %v1288_v24  ;;  %v1876_v11 = vpop.xlane.xlu0 %1875  ;;  %v1894_v25 = vmul.f32 %v5959_v19, %v7306_v5 }
 0x576   :  { %5960 = vrcp.f32 %v1876_v11 }
 0x577   :  { %5679 = vrot.lane.b32.xlu1 %v5678_v56, %s6528_s13  ;;  %4963 = vmatmul.msk.f32.gmra.mxu3 %vm740_vm0, %v1894_v25 }
 0x57c   :  { %v5961_v34 = vpop.eup %5960  ;;  %v1294_v41 = vpop.f32.mrf.mxu3 }
 0x57d   :  { %v1896_v1 = vmul.f32 %v5961_v34, %v7314_v3  ;;  %v1882_v17 = vpop.xlane.xlu0 %1881 }
 0x57f   :  { %4965 = vmatmul.msk.f32.gmra.mxu0 %vm740_vm0, %v1896_v1 }
 0x584   :  { %v1297_v10 = vpop.f32.mrf.mxu3 }
 0x585   :  { %v5693_v18 = vpack.i.bf16 %v1297_v10, %v1294_v41 }
 0x58c   :  { %v1616_v29 = vpop.f32.mrf.mxu3 }
 0x594   :  { %v1619_v6 = vpop.f32.mrf.mxu3 }
 0x595   :  { %v5683_v30 = vpack.i.bf16 %v1619_v6, %v1616_v29 }
 0x596   :  { %v1345_v5 = vpop.f32.mrf.mxu0 }
 0x597   :  { %5684 = vrot.lane.b32.xlu0 %v5683_v30, %s6514_s30 }
 0x59c   :  { %v1622_v46 = vpop.f32.mrf.mxu3 }
 0x5a0   :  { %v1879_v54 = vpop.xlane.xlu2 %1878 }
 0x5a1   :  { %5962 = vrcp.f32 %v1879_v54  ;;  %v1348_v7 = vpop.f32.mrf.mxu0 }
 0x5a2   :  { %5964 = vrcp.f32 %v1882_v17  ;;  %v5708_v47 = vpack.i.bf16 %v1348_v7, %v1345_v5 }
 0x5a4   :  { %v1625_v16 = vpop.f32.mrf.mxu3 }
 0x5a7   :  { %v5963_v33 = vpop.eup %5962 }
 0x5a8   :  { %v1897_v13 = vmul.f32 %v5963_v33, %v7346_v42  ;;  %v5965_v2 = vpop.eup %5964  ;;  %v5698_v42 = vpack.i.bf16 %v1625_v16, %v1622_v46 }
 0x5a9   :  { %v1898_v51 = vmul.f32 %v5965_v2, %v7321_v60  ;;  %v1351_v39 = vpop.f32.mrf.mxu0 }
 0x5aa   :  { %4966 = vmatmul.msk.f32.gmra.mxu0 %vm740_vm0, %v1897_v13 }
 0x5ac   :  { %v1940_v3 = vpop.f32.mrf.mxu3 }
 0x5b1   :  { %v1354_v12 = vpop.f32.mrf.mxu0 }
 0x5b2   :  { %4967 = vmatmul.msk.f32.gmra.mxu0 %vm740_vm0, %v1898_v51  ;;  %v5723_v60 = vpack.i.bf16 %v1354_v12, %v1351_v39 }
 0x5b4   :  { %v1943_v52 = vpop.f32.mrf.mxu3 }
 0x5b5   :  { %v5688_v37 = vpack.i.bf16 %v1943_v52, %v1940_v3 }
 0x5b7   :  { %5689 = vrot.lane.b32.xlu1 %v5688_v37, %s6529_s1 }
 0x5bc   :  { %v1946_v62 = vpop.f32.mrf.mxu3 }
 0x5bf   :  { %5694 = vrot.lane.b32.xlu1 %v5693_v18, %s6528_s13 }
 0x5c5   :  { %v1669_v44 = vpop.f32.mrf.mxu0 }
 0x5c7   :  { %5699 = vrot.lane.b32.xlu1 %v5698_v42, %s6514_s30 }
 0x5cd   :  { %v1672_v27 = vpop.f32.mrf.mxu0 }
 0x5ce   :  { %v5713_v31 = vpack.i.bf16 %v1672_v27, %v1669_v44 }
 0x5cf   :  { %5709 = vrot.lane.b32.xlu1 %v5708_v47, %s6528_s13 }
 0x5d0   :  { %5714 = vrot.lane.b32.xlu2 %v5713_v31, %s6514_s30 }
 0x5d5   :  { %v1675_v45 = vpop.f32.mrf.mxu0 }
 0x5d7   :  { %5724 = vrot.lane.b32.xlu1 %v5723_v60, %s6528_s13 }
 0x5dd   :  { %v1678_v50 = vpop.f32.mrf.mxu0 }
 0x5de   :  { %v5728_v23 = vpack.i.bf16 %v1678_v50, %v1675_v45 }
 0x5e9   :  { %v5680_v28 = vpop.permute.xlu1 %5679 }
 0x5ea   :  { %v1993_v53 = vpop.f32.mrf.mxu0  ;;  %v5682_v59 = vunpack.i.h.bf16 %v5680_v28  ;;  %v5681_v24 = vunpack.i.l.bf16 %v5680_v28 }
 0x5ec   :  { %v2102_v11 = vsel %vm740_vm0, %v7362_v9, %v5682_v59  ;;  %v2101_v25 = vsel %vm740_vm0, %v7357_v0, %v5681_v24 }
 0x5fa   :  { %v1949_v36 = vpop.f32.mrf.mxu3 }
 0x5fb   :  { %v5703_v58 = vpack.i.bf16 %v1949_v36, %v1946_v62 }
 0x5fc   :  { %v1996_v35 = vpop.f32.mrf.mxu0 }
 0x5fd   :  { %5704 = vrot.lane.b32.xlu0 %v5703_v58, %s6529_s1  ;;  %v5718_v38 = vpack.i.bf16 %v1996_v35, %v1993_v53 }
 0x605   :  { %5719 = vrot.lane.b32.xlu0 %v5718_v38, %s6529_s1 }
 0x609   :  { %v5685_v48 = vpop.permute.xlu0 %5684 }
 0x60a   :  { %v5687_v40 = vunpack.i.h.bf16 %v5685_v48  ;;  %v5686_v19 = vunpack.i.l.bf16 %v5685_v48 }
 0x60c   :  { %v2111_v1 = vsel %vm2109_vm1, %v2102_v11, %v5687_v40  ;;  %v2110_v10 = vsel %vm2109_vm1, %v2101_v25, %v5686_v19 }
 0x60d   :  { %5729 = vrot.lane.b32.xlu0 %v5728_v23, %s6514_s30 }
 0x627   :  { %v1999_v21 = vpop.f32.mrf.mxu0 }
 0x629   :  { %v5690_v56 = vpop.permute.xlu1 %5689 }
 0x62a   :  { %v5692_v34 = vunpack.i.h.bf16 %v5690_v56  ;;  %v5691_v41 = vunpack.i.l.bf16 %v5690_v56 }
 0x62c   :  { %v2120_v29 = vsel %vm2118_vm2, %v2111_v1, %v5692_v34  ;;  %v2119_v6 = vsel %vm2118_vm2, %v2110_v10, %v5691_v41  ;;  %v6096_v41 = vld [vmem:[#allocation2 + $0x8] sm:$0xff]  ;;  %v6097_v10 = vld [vmem:[#allocation2] sm:$0xff] }
 0x62d   :  { %v2127_v30 = vpack.c.bf16 %v2120_v29, %v2119_v6  ;;  %v269_v6 = vld [vmem:[#allocation7] sm:$0xff] }
 0x62f   :  { %v2002_v46 = vpop.f32.mrf.mxu0  ;;  %2187 = vmatmul.bf16.vlgmr.msra.gmra.mxu1 %v2127_v30  ;;  %v5511_v30 = vld [vmem:[#allocation16 + $0x38] sm:$0xff] }
 0x630   :  { %v5733_v54 = vpack.i.bf16 %v2002_v46, %v1999_v21  ;;  %v5510_v46 = vld [vmem:[#allocation16 + $0x30] sm:$0xff] }
 0x631   :  { %v5695_v9 = vpop.permute.xlu1 %5694 }
 0x632   :  { %5734 = vrot.lane.b32.xlu1 %v5733_v54, %s6529_s1  ;;  %v5697_v17 = vunpack.i.h.bf16 %v5695_v9  ;;  %v5696_v0 = vunpack.i.l.bf16 %v5695_v9  ;;  %v270_v54 = vld [vmem:[#allocation7 + $0x8] sm:$0xff] }
 0x633   :  { %v5509_v9 = vld [vmem:[#allocation16 + $0x28] sm:$0xff] }
 0x634   :  { %v2104_v7 = vsel %vm740_vm0, %v7371_v26, %v5697_v17  ;;  %v2103_v3 = vsel %vm740_vm0, %v7367_v22, %v5696_v0  ;;  %v5715_v26 = vpop.permute.xlu2 %5714  ;;  %v271_v17 = vld [vmem:[#allocation7 + $0x10] sm:$0xff]  ;;  %v5507_v0 = vld [vmem:[#allocation16 + $0x18] sm:$0xff] }
 0x635   :  { %v5717_v63 = vunpack.i.h.bf16 %v5715_v26  ;;  %v5716_v8 = vunpack.i.l.bf16 %v5715_v26  ;;  %v5503_v26 = vld [vmem:[#allocation14 + $0x38] sm:$0xff] }
 0x636   :  { %2355 = vmatpush.bf16.msra.mxu0 %v5503_v26 }
 0x639   :  { %v5700_v5 = vpop.permute.xlu1 %5699 }
 0x63a   :  { %v5702_v16 = vunpack.i.h.bf16 %v5700_v5  ;;  %v5701_v33 = vunpack.i.l.bf16 %v5700_v5  ;;  %v5508_v5 = vld [vmem:[#allocation16 + $0x20] sm:$0xff] }
 0x63c   :  { %v2112_v39 = vsel %vm2109_vm1, %v2103_v3, %v5701_v33  ;;  %v2113_v52 = vsel %vm2109_vm1, %v2104_v7, %v5702_v16  ;;  %v5506_v33 = vld [vmem:[#allocation16 + $0x10] sm:$0xff]  ;;  %v5505_v7 = vld [vmem:[#allocation16 + $0x8] sm:$0xff]  ;;  %v5504_v3 = vld [vmem:[#allocation16] sm:$0xff] }
 0x641   :  { %v5710_v44 = vpop.permute.xlu1 %5709 }
 0x642   :  { %v5712_v42 = vunpack.i.h.bf16 %v5710_v44  ;;  %v5711_v47 = vunpack.i.l.bf16 %v5710_v44 }
 0x644   :  { %v2106_v22 = vsel %vm740_vm0, %v7150_v20, %v5712_v42  ;;  %v2105_v31 = vsel %vm740_vm0, %v7106_v4, %v5711_v47  ;;  %v6098_v42 = vld [vmem:[#allocation2 + $0x38] sm:$0xff] }
 0x645   :  { %v2114_v50 = vsel %vm2109_vm1, %v2105_v31, %v5716_v8  ;;  %v2115_v62 = vsel %vm2109_vm1, %v2106_v22, %v5717_v63  ;;  %v6099_v22 = vld [vmem:[#allocation2 + $0x30] sm:$0xff]  ;;  %v6101_v8 = vld [vmem:[#allocation2 + $0x20] sm:$0xff] }
 0x649   :  { %v5725_v36 = vpop.permute.xlu1 %5724 }
 0x64a   :  { %v5727_v20 = vunpack.i.h.bf16 %v5725_v36  ;;  %v5726_v57 = vunpack.i.l.bf16 %v5725_v36  ;;  %v5499_v36 = vld [vmem:[#allocation14 + $0x18] sm:$0xff] }
 0x64c   :  { %v2108_v38 = vsel %vm740_vm0, %v7154_v49, %v5727_v20  ;;  %v2107_v32 = vsel %vm740_vm0, %v7152_v14, %v5726_v57  ;;  %v6094_v49 = vld [vmem:[#allocation2 + $0x18] sm:$0xff]  ;;  %v6095_v14 = vld [vmem:[#allocation2 + $0x10] sm:$0xff]  ;;  %v5498_v20 = vld [vmem:[#allocation14 + $0x10] sm:$0xff] }
 0x64d   :  { %v5497_v57 = vld [vmem:[#allocation14 + $0x8] sm:$0xff] }
 0x66f   :  { %v5705_v13 = vpop.permute.xlu0 %5704 }
 0x670   :  { %v5707_v2 = vunpack.i.h.bf16 %v5705_v13  ;;  %v5706_v51 = vunpack.i.l.bf16 %v5705_v13  ;;  %v272_v13 = vld [vmem:[#allocation7 + $0x18] sm:$0xff] }
 0x672   :  { %v2121_v37 = vsel %vm2118_vm2, %v2112_v39, %v5706_v51  ;;  %v2122_v18 = vsel %vm2118_vm2, %v2113_v52, %v5707_v2  ;;  %v2294_v2 = vld [vmem:[#allocation5] sm:$0xff]  ;;  %v2295_v51 = vld [vmem:[#allocation5 + $0x8] sm:$0xff] }
 0x673   :  { %v2128_v12 = vpack.c.bf16 %v2122_v18, %v2121_v37  ;;  %v7443_v52 = vpack.c.bf16 %v2295_v51, %v2294_v2  ;;  %v2296_v18 = vld [vmem:[#allocation5 + $0x10] sm:$0xff] }
 0x675   :  { %2192 = vmatmul.bf16.gmra.mxu1 %v2128_v12  ;;  %v2297_v12 = vld [vmem:[#allocation5 + $0x18] sm:$0xff] }
 0x677   :  { %v5720_v27 = vpop.permute.xlu0 %5719 }
 0x678   :  { %v5722_v60 = vunpack.i.h.bf16 %v5720_v27  ;;  %v5721_v45 = vunpack.i.l.bf16 %v5720_v27  ;;  %v7448_v27 = vpack.c.bf16 %v2297_v12, %v2296_v18 }
 0x67a   :  { %v2123_v15 = vsel %vm2118_vm2, %v2114_v50, %v5721_v45  ;;  %v2124_v43 = vsel %vm2118_vm2, %v2115_v62, %v5722_v60  ;;  %v5502_v60 = vld [vmem:[#allocation14 + $0x30] sm:$0xff]  ;;  %v6100_v45 = vld [vmem:[#allocation2 + $0x28] sm:$0xff]  ;;  %v5501_v62 = vld [vmem:[#allocation14 + $0x28] sm:$0xff] }
 0x67b   :  { %v2129_v53 = vpack.c.bf16 %v2124_v43, %v2123_v15  ;;  %2356 = vmatpush.bf16.msra.mxu0 %v5502_v60  ;;  %v5500_v15 = vld [vmem:[#allocation14 + $0x20] sm:$0xff]  ;;  %v2298_v43 = vld [vmem:[#allocation5 + $0x20] sm:$0xff] }
 0x67f   :  { %v5730_v58 = vpop.permute.xlu0 %5729  ;;  %2357 = vmatpush.bf16.msra.mxu0 %v5501_v62 }
 0x680   :  { %v5732_v55 = vunpack.i.h.bf16 %v5730_v58  ;;  %v5731_v4 = vunpack.i.l.bf16 %v5730_v58 }
 0x682   :  { %v2117_v28 = vsel %vm2109_vm1, %v2108_v38, %v5732_v55  ;;  %v2116_v48 = vsel %vm2109_vm1, %v2107_v32, %v5731_v4  ;;  %v5496_v55 = vld [vmem:[#allocation14] sm:$0xff]  ;;  %v5519_v4 = vld [vmem:[#allocation17 + $0x38] sm:$0xff]  ;;  %v5517_v38 = vld [vmem:[#allocation17 + $0x28] sm:$0xff] }
 0x683   :  { %2358 = vmatpush.bf16.msra.mxu0 %v5500_v15  ;;  %v5516_v32 = vld [vmem:[#allocation17 + $0x20] sm:$0xff] }
 0x685   :  { %2197 = vmatmul.bf16.gmra.mxu1 %v2129_v53  ;;  %v2299_v53 = vld [vmem:[#allocation5 + $0x28] sm:$0xff] }
 0x686   :  { %v2306_v58 = vpack.c.bf16 %v2299_v53, %v2298_v43 }
 0x687   :  { %2359 = vmatpush.bf16.msra.mxu0 %v5499_v36 }
 0x68b   :  { %2360 = vmatpush.bf16.msra.mxu0 %v5498_v20 }
 0x68f   :  { %2361 = vmatpush.bf16.msra.mxu0 %v5497_v57 }
 0x693   :  { %2362 = vmatpush.bf16.msra.mxu0 %v5496_v55 }
 0x6a4   :  { %v5735_v35 = vpop.permute.xlu1 %5734 }
 0x6a5   :  { %v5737_v23 = vunpack.i.h.bf16 %v5735_v35  ;;  %v5736_v61 = vunpack.i.l.bf16 %v5735_v35  ;;  %v5518_v35 = vld [vmem:[#allocation17 + $0x30] sm:$0xff] }
 0x6a7   :  { %v2125_v59 = vsel %vm2118_vm2, %v2116_v48, %v5736_v61  ;;  %v2126_v24 = vsel %vm2118_vm2, %v2117_v28, %v5737_v23  ;;  %v5515_v61 = vld [vmem:[#allocation17 + $0x18] sm:$0xff]  ;;  %v5514_v28 = vld [vmem:[#allocation17 + $0x10] sm:$0xff] }
 0x6a8   :  { %v2130_v40 = vpack.c.bf16 %v2126_v24, %v2125_v59 }
 0x6aa   :  { %2202 = vmatmul.bf16.gmra.mxu1 %v2130_v40  ;;  %v5513_v40 = vld [vmem:[#allocation17 + $0x8] sm:$0xff] }
 0x6ac   :  { %v2188_v19 = vpop.f32.mrf.mxu1 }
 0x6ad   :  { %v7435_v29 = vadd.f32 %v6097_v10, %v2188_v19 }
 0x6b4   :  { %v2190_v21 = vpop.f32.mrf.mxu1 }
 0x6b5   :  { %v7432_v1 = vadd.f32 %v6096_v41, %v2190_v21  ;;  %v5512_v21 = vld [vmem:[#allocation17] sm:$0xff] }
 0x6f2   :  { %v2193_v56 = vpop.f32.mrf.mxu1 }
 0x6f3   :  { %v7429_v34 = vadd.f32 %v6095_v14, %v2193_v56 }
 0x6fa   :  { %v2195_v11 = vpop.f32.mrf.mxu1 }
 0x6fb   :  { %v7427_v25 = vadd.f32 %v6094_v49, %v2195_v11 }
 0x6fd   :  { %2240 = vmatpush.msra.mxu2 %v7427_v25 }
 0x6ff   :  { %2241 = vmatpush.msra.mxu2 %v7429_v34 }
 0x701   :  { %2242 = vmatpush.msra.mxu2 %v7432_v1 }
 0x702   :  { %v2198_v16 = vpop.f32.mrf.mxu1 }
 0x703   :  { %2243 = vmatpush.msra.mxu2 %v7435_v29  ;;  %v7457_v50 = vadd.f32 %v6101_v8, %v2198_v16 }
 0x704   :  { %5000 = vmatmul.msk.f32.vlgmr.msra.gmra.mxu2 %vm740_vm0, %v269_v6 }
 0x705   :  { %2432 = vmatpush.bf16.msrb.mxu2 %v5511_v30 }
 0x709   :  { %2433 = vmatpush.bf16.msrb.mxu2 %v5510_v46 }
 0x70a   :  { %v2200_v39 = vpop.f32.mrf.mxu1 }
 0x70b   :  { %v7453_v63 = vadd.f32 %v6100_v45, %v2200_v39 }
 0x70c   :  { %5001 = vmatmul.msk.f32.gmra.mxu2 %vm740_vm0, %v270_v54 }
 0x70d   :  { %2434 = vmatpush.bf16.msrb.mxu2 %v5509_v9 }
 0x711   :  { %2435 = vmatpush.bf16.msrb.mxu2 %v5508_v5 }
 0x714   :  { %5002 = vmatmul.msk.f32.gmra.mxu2 %vm740_vm0, %v271_v17 }
 0x715   :  { %2436 = vmatpush.bf16.msrb.mxu2 %v5507_v0 }
 0x719   :  { %2437 = vmatpush.bf16.msrb.mxu2 %v5506_v33 }
 0x71c   :  { %5003 = vmatmul.msk.f32.gmra.mxu2 %vm740_vm0, %v272_v13 }
 0x71d   :  { %2438 = vmatpush.bf16.msrb.mxu2 %v5505_v7 }
 0x721   :  { %2439 = vmatpush.bf16.msrb.mxu2 %v5504_v3 }
 0x724   :  { %2440 = vmatmul.bf16.vlgmr.msrb.gmra.mxu2 %v7443_v52 }
 0x727   :  { %v2203_v37 = vpop.f32.mrf.mxu1 }
 0x728   :  { %v7450_v31 = vadd.f32 %v6099_v22, %v2203_v37 }
 0x72f   :  { %v2205_v44 = vpop.f32.mrf.mxu1 }
 0x730   :  { %v7446_v47 = vadd.f32 %v6098_v42, %v2205_v44 }
 0x732   :  { %2269 = vmatpush.msra.mxu3 %v7446_v47 }
 0x734   :  { %2270 = vmatpush.msra.mxu3 %v7450_v31  ;;  %2445 = vmatmul.bf16.gmra.mxu2 %v7448_v27 }
 0x736   :  { %2271 = vmatpush.msra.mxu3 %v7453_v63 }
 0x738   :  { %2272 = vmatpush.msra.mxu3 %v7457_v50 }
 0x739   :  { %5004 = vmatmul.msk.f32.vlgmr.msra.gmra.mxu3 %vm740_vm0, %v269_v6 }
 0x73a   :  { %2504 = vmatpush.bf16.msrb.mxu3 %v5519_v4 }
 0x73e   :  { %2505 = vmatpush.bf16.msrb.mxu3 %v5518_v35 }
 0x741   :  { %5005 = vmatmul.msk.f32.gmra.mxu3 %vm740_vm0, %v270_v54 }
 0x742   :  { %2506 = vmatpush.bf16.msrb.mxu3 %v5517_v38 }
 0x744   :  { %2450 = vmatmul.bf16.gmra.mxu2 %v2306_v58 }
 0x746   :  { %2507 = vmatpush.bf16.msrb.mxu3 %v5516_v32 }
 0x749   :  { %5006 = vmatmul.msk.f32.gmra.mxu3 %vm740_vm0, %v271_v17 }
 0x74a   :  { %2508 = vmatpush.bf16.msrb.mxu3 %v5515_v61 }
 0x74e   :  { %2509 = vmatpush.bf16.msrb.mxu3 %v5514_v28 }
 0x751   :  { %5007 = vmatmul.msk.f32.gmra.mxu3 %vm740_vm0, %v272_v13 }
 0x752   :  { %2510 = vmatpush.bf16.msrb.mxu3 %v5513_v40 }
 0x756   :  { %2511 = vmatpush.bf16.msrb.mxu3 %v5512_v21 }
 0x759   :  { %2512 = vmatmul.bf16.vlgmr.msrb.gmra.mxu3 %v7443_v52 }
 0x769   :  { %2517 = vmatmul.bf16.gmra.mxu3 %v7448_v27 }
 0x779   :  { %2522 = vmatmul.bf16.gmra.mxu3 %v2306_v58 }
 0x787   :  { %v7465_v23 = vpop.f32.mrf.mxu2 }
 0x788   :  { %v7471_v59 = vsub.f32 %v7435_v29, %v7465_v23 }
 0x78f   :  { %v7467_v48 = vpop.f32.mrf.mxu2 }
 0x790   :  { %v7475_v24 = vsub.f32 %v7432_v1, %v7467_v48 }
 0x792   :  { %v2300_v19 = vpack.c.bf16 %v7475_v24, %v7471_v59 }
 0x794   :  { %2363 = vmatmul.bf16.vlgmr.msra.gmra.mxu0 %v2300_v19 }
 0x797   :  { %v7479_v56 = vpop.f32.mrf.mxu2 }
 0x798   :  { %v7486_v49 = vsub.f32 %v7429_v34, %v7479_v56 }
 0x79f   :  { %v7482_v11 = vpop.f32.mrf.mxu2 }
 0x7a0   :  { %v7490_v14 = vsub.f32 %v7427_v25, %v7482_v11 }
 0x7a2   :  { %v2301_v41 = vpack.c.bf16 %v7490_v14, %v7486_v49 }
 0x7a4   :  { %2368 = vmatmul.bf16.gmra.mxu0 %v2301_v41 }
 0x7a7   :  { %v2441_v1 = vpop.f32.mrf.mxu2 }
 0x7a8   :  { %2815 = vrot.lane.b32.xlu2 %v2441_v1, %s6529_s1 }
 0x7af   :  { %v2443_v10 = vpop.f32.mrf.mxu2 }
 0x7b0   :  { %2817 = vrot.lane.b32.xlu1 %v2443_v10, %s6529_s1  ;;  %3133 = vrot.lane.b32.xlu2 %v2443_v10, %s6514_s30 }
 0x7b7   :  { %v2446_v34 = vpop.f32.mrf.mxu2 }
 0x7b8   :  { %2819 = vrot.lane.b32.xlu0 %v2446_v34, %s6529_s1  ;;  %5104 = vmatpush.xpose.msk.msrb.mxu1 %vm740_vm0, %v2446_v34 }
 0x7b9   :  { %3131 = vrot.lane.b32.xlu1 %v2441_v1, %s6514_s30 }
 0x7bc   :  { %v7501_v25 = vpop.f32.mrf.mxu3  ;;  %5105 = vmatpush.xpose.msk.msrb.mxu1 %vm740_vm0, %v2443_v10 }
 0x7bd   :  { %8354 = vst [vmem:[#allocation38_spill] sm:$0xff] %v7501_v25  ;;  %v7512_v30 = vsub.f32 %v7457_v50, %v7501_v25 }
 0x7bf   :  { %v7504_v29 = vpop.f32.mrf.mxu2 }
 0x7c0   :  { %3135 = vrot.lane.b32.xlu0 %v2446_v34, %s6514_s30  ;;  %5106 = vmatpush.xpose.msk.msrb.mxu1 %vm740_vm0, %v2441_v1 }
 0x7c4   :  { %v7508_v6 = vpop.f32.mrf.mxu3 }
 0x7c5   :  { %8355 = vst [vmem:[#allocation39_spill] sm:$0xff] %v7508_v6  ;;  %v7516_v46 = vsub.f32 %v7453_v63, %v7508_v6 }
 0x7c7   :  { %v2302_v54 = vpack.c.bf16 %v7516_v46, %v7512_v30  ;;  %v7520_v9 = vpop.f32.mrf.mxu2 }
 0x7c8   :  { %2874 = vrot.lane.b32.xlu2 %v7520_v9, %s6529_s1 }
 0x7c9   :  { %2373 = vmatmul.bf16.gmra.mxu0 %v2302_v54 }
 0x7cc   :  { %v7524_v5 = vpop.f32.mrf.mxu3 }
 0x7cd   :  { %8356 = vst [vmem:[#allocation40_spill] sm:$0xff] %v7524_v5  ;;  %v7538_v16 = vsub.f32 %v7450_v31, %v7524_v5 }
 0x7cf   :  { %v7526_v17 = vpop.f32.mrf.mxu2 }
 0x7d0   :  { %2876 = vrot.lane.b32.xlu0 %v7526_v17, %s6529_s1  ;;  %5111 = vmatpush.xpose.msk.msra.mxu2 %vm740_vm0, %v7526_v17 }
 0x7d4   :  { %v7532_v0 = vpop.f32.mrf.mxu3  ;;  %5112 = vmatpush.xpose.msk.msra.mxu2 %vm740_vm0, %v7520_v9 }
 0x7d5   :  { %8357 = vst [vmem:[#allocation41_spill] sm:$0xff] %v7532_v0  ;;  %v7542_v33 = vsub.f32 %v7446_v47, %v7532_v0 }
 0x7d7   :  { %v2303_v13 = vpack.c.bf16 %v7542_v33, %v7538_v16 }
 0x7d8   :  { %5113 = vmatpush.xpose.msk.msra.mxu2 %vm740_vm0, %v7504_v29 }
 0x7d9   :  { %2378 = vmatmul.bf16.gmra.mxu0 %v2303_v13 }
 0x7dc   :  { %v7553_v2 = vpop.f32.mrf.mxu3 }
 0x7e4   :  { %v7560_v39 = vpop.f32.mrf.mxu3 }
 0x7ec   :  { %v2518_v44 = vpop.f32.mrf.mxu3 }
 0x7ed   :  { %2750 = vmatpush.msrb.mxu0 %v2518_v44  ;;  %v7620_v43 = vpack.i.bf16 %v7560_v39, %v2518_v44 }
 0x7ef   :  { %2751 = vmatpush.msrb.mxu0 %v7560_v39 }
 0x7f1   :  { %2752 = vmatpush.msrb.mxu0 %v7553_v2 }
 0x7f4   :  { %v7576_v27 = vpop.f32.mrf.mxu3 }
 0x7fc   :  { %v7584_v26 = vpop.f32.mrf.mxu3 }
 0x7fd   :  { %v7629_v36 = vpack.i.bf16 %v7576_v27, %v7584_v26 }
 0x802   :  { %v2816_v18 = vpop.permute.xlu2 %2815 }
 0x804   :  { %v7590_v45 = vpop.f32.mrf.mxu3 }
 0x805   :  { %2791 = vmatpush.msra.mxu1 %v7590_v45  ;;  %v5753_v15 = vpack.i.bf16 %v7590_v45, %v7553_v2 }
 0x807   :  { %2792 = vmatpush.msra.mxu1 %v7584_v26 }
 0x809   :  { %2793 = vmatpush.msra.mxu1 %v7576_v27 }
 0x80a   :  { %v3134_v47 = vpop.permute.xlu2 %3133 }
 0x811   :  { %v2364_v7 = vpop.f32.mrf.mxu0 }
 0x812   :  { %5107 = vmatmul.msk.f32.vlgmr.msrb.gmra.mxu1 %vm740_vm0, %v2364_v7  ;;  %2807 = vrot.lane.b32.xlu0 %v2364_v7, %s6529_s1 }
 0x819   :  { %v2366_v3 = vpop.f32.mrf.mxu0 }
 0x81a   :  { %2809 = vrot.lane.b32.xlu1 %v2366_v3, %s6529_s1  ;;  %5108 = vmatmul.msk.f32.gmra.mxu1 %vm740_vm0, %v2366_v3 }
 0x81b   :  { %3123 = vrot.lane.b32.xlu0 %v2364_v7, %s6514_s30 }
 0x821   :  { %v2369_v51 = vpop.f32.mrf.mxu0 }
 0x822   :  { %2872 = vrot.lane.b32.xlu1 %v7504_v29, %s6529_s1  ;;  %2811 = vrot.lane.b32.xlu2 %v2369_v51, %s6529_s1  ;;  %v2818_v12 = vpop.permute.xlu1 %2817  ;;  %v2875_v63 = vpop.permute.xlu2 %2874 }
 0x823   :  { %3445 = vrot.lane.b32.xlu0 %v2446_v34, %s6528_s13  ;;  %5109 = vmatmul.msk.f32.gmra.mxu1 %vm740_vm0, %v2369_v51 }
 0x829   :  { %v2371_v52 = vpop.f32.mrf.mxu0 }
 0x82a   :  { %3127 = vrot.lane.b32.xlu2 %v2369_v51, %s6514_s30  ;;  %2813 = vrot.lane.b32.xlu1 %v2371_v52, %s6529_s1  ;;  %v2820_v37 = vpop.permute.xlu0 %2819 }
 0x82b   :  { %3443 = vrot.lane.b32.xlu0 %v2443_v10, %s6528_s13  ;;  %5110 = vmatmul.msk.f32.gmra.mxu1 %vm740_vm0, %v2371_v52  ;;  %v3132_v22 = vpop.permute.xlu1 %3131 }
 0x82c   :  { %5126 = vmatpush.xpose.msk.msra.mxu3 %vm740_vm0, %v2820_v37 }
 0x830   :  { %5127 = vmatpush.xpose.msk.msra.mxu3 %vm740_vm0, %v2818_v12 }
 0x832   :  { %3441 = vrot.lane.b32.xlu2 %v2441_v1, %s6528_s13  ;;  %3192 = vrot.lane.b32.xlu1 %v7526_v17, %s6514_s30  ;;  %v3136_v42 = vpop.permute.xlu0 %3135 }
 0x833   :  { %3125 = vrot.lane.b32.xlu0 %v2366_v3, %s6514_s30 }
 0x834   :  { %5128 = vmatpush.xpose.msk.msra.mxu3 %vm740_vm0, %v2816_v18 }
 0x838   :  { %5148 = vmatpush.xpose.msk.msrb.mxu3 %vm740_vm0, %v3136_v42 }
 0x83a   :  { %3433 = vrot.lane.b32.xlu2 %v2364_v7, %s6528_s13  ;;  %3190 = vrot.lane.b32.xlu1 %v7520_v9, %s6514_s30 }
 0x83b   :  { %3188 = vrot.lane.b32.xlu0 %v7504_v29, %s6514_s30 }
 0x83c   :  { %5149 = vmatpush.xpose.msk.msrb.mxu3 %vm740_vm0, %v3134_v47 }
 0x840   :  { %5150 = vmatpush.xpose.msk.msrb.mxu3 %vm740_vm0, %v3132_v22 }
 0x842   :  { %3129 = vrot.lane.b32.xlu2 %v2371_v52, %s6514_s30  ;;  %v2877_v31 = vpop.permute.xlu0 %2876 }
 0x843   :  { %5133 = vmatpush.xpose.msk.msrb.mxu2 %vm740_vm0, %v2877_v31 }
 0x846   :  { %v2374_v60 = vpop.f32.mrf.mxu0 }
 0x847   :  { %5114 = vmatmul.msk.f32.vlgmr.msra.gmra.mxu2 %vm740_vm0, %v2374_v60 }
 0x848   :  { %5134 = vmatpush.xpose.msk.msrb.mxu2 %vm740_vm0, %v2875_v63 }
 0x84a   :  { %2864 = vrot.lane.b32.xlu2 %v2374_v60, %s6529_s1 }
 0x84e   :  { %v2376_v8 = vpop.f32.mrf.mxu0 }
 0x84f   :  { %3182 = vrot.lane.b32.xlu0 %v2376_v8, %s6514_s30  ;;  %2866 = vrot.lane.b32.xlu1 %v2376_v8, %s6529_s1 }
 0x850   :  { %5115 = vmatmul.msk.f32.gmra.mxu2 %vm740_vm0, %v2376_v8 }
 0x852   :  { %3435 = vrot.lane.b32.xlu2 %v2366_v3, %s6528_s13 }
 0x856   :  { %v2379_v50 = vpop.f32.mrf.mxu0 }
 0x857   :  { %3439 = vrot.lane.b32.xlu0 %v2371_v52, %s6528_s13  ;;  %2868 = vrot.lane.b32.xlu1 %v2379_v50, %s6529_s1 }
 0x858   :  { %5116 = vmatmul.msk.f32.gmra.mxu2 %vm740_vm0, %v2379_v50 }
 0x85a   :  { %3490 = vrot.lane.b32.xlu2 %v2374_v60, %s6528_s13 }
 0x85e   :  { %v2381_v62 = vpop.f32.mrf.mxu0 }
 0x85f   :  { %3500 = vrot.lane.b32.xlu0 %v7520_v9, %s6528_s13  ;;  %3180 = vrot.lane.b32.xlu1 %v2374_v60, %s6514_s30 }
 0x860   :  { %5117 = vmatmul.msk.f32.gmra.mxu2 %vm740_vm0, %v2381_v62 }
 0x862   :  { %3184 = vrot.lane.b32.xlu2 %v2379_v50, %s6514_s30 }
 0x867   :  { %3492 = vrot.lane.b32.xlu0 %v2376_v8, %s6528_s13  ;;  %3437 = vrot.lane.b32.xlu1 %v2369_v51, %s6528_s13 }
 0x86a   :  { %5754 = vrot.lane.b32.xlu2 %v5753_v15, %s6514_s30 }
 0x86f   :  { %3502 = vrot.lane.b32.xlu1 %v7526_v17, %s6528_s13  ;;  %2870 = vrot.lane.b32.xlu0 %v2381_v62, %s6529_s1 }
 0x872   :  { %3186 = vrot.lane.b32.xlu2 %v2381_v62, %s6514_s30 }
 0x877   :  { %3498 = vrot.lane.b32.xlu1 %v7504_v29, %s6528_s13  ;;  %5739 = vrot.lane.b32.xlu0 %v7620_v43, %s6529_s1 }
 0x87a   :  { %3496 = vrot.lane.b32.xlu2 %v2381_v62, %s6528_s13 }
 0x87c   :  { %v2812_v53 = vpop.permute.xlu2 %2811 }
 0x87f   :  { %3494 = vrot.lane.b32.xlu1 %v2379_v50, %s6528_s13  ;;  %5759 = vrot.lane.b32.xlu0 %v7629_v36, %s6529_s1 }
 0x884   :  { %v2808_v58 = vpop.permute.xlu0 %2807  ;;  %v3128_v20 = vpop.permute.xlu2 %3127 }
 0x885   :  { %5129 = vmatmul.msk.f32.vlgmr.msra.gmra.mxu3 %vm740_vm0, %v2808_v58 }
 0x887   :  { %5744 = vrot.lane.b32.xlu1 %v5753_v15, %s6529_s1 }
 0x88c   :  { %v2810_v57 = vpop.permute.xlu1 %2809  ;;  %v3442_v55 = vpop.permute.xlu2 %3441 }
 0x88d   :  { %v3124_v4 = vpop.permute.xlu0 %3123  ;;  %5130 = vmatmul.msk.f32.gmra.mxu3 %vm740_vm0, %v2810_v57 }
 0x88f   :  { %v2566_v35 = vpop.f32.mrf.mxu1  ;;  %5749 = vrot.lane.b32.xlu1 %v7620_v43, %s6514_s30 }
 0x890   :  { %v7649_v34 = vmul.f32 0.17677669, %v2566_v35 }
 0x892   :  { %v2637_v17 = vsel %vm2636_vm3, %v7649_v34, -inf }
 0x894   :  { %v2873_v38 = vpop.permute.xlu1 %2872  ;;  %v3434_v32 = vpop.permute.xlu2 %3433 }
 0x895   :  { %v3446_v61 = vpop.permute.xlu0 %3445  ;;  %5131 = vmatmul.msk.f32.gmra.mxu3 %vm740_vm0, %v2812_v53  ;;  %5135 = vmatpush.xpose.msk.msrb.mxu2 %vm740_vm0, %v2873_v38 }
 0x896   :  { %5170 = vmatpush.xpose.msk.msra.mxu3 %vm740_vm0, %v3446_v61 }
 0x897   :  { %v2569_v28 = vpop.f32.mrf.mxu1 }
 0x898   :  { %v7663_v52 = vmul.f32 0.17677669, %v2569_v28 }
 0x89a   :  { %v2640_v37 = vsel %vm2636_vm3, %v7663_v52, -inf }
 0x89c   :  { %v3130_v40 = vpop.permute.xlu2 %3129  ;;  %v2814_v19 = vpop.permute.xlu1 %2813 }
 0x89d   :  { %v3444_v21 = vpop.permute.xlu0 %3443  ;;  %5132 = vmatmul.msk.f32.gmra.mxu3 %vm740_vm0, %v2814_v19 }
 0x89e   :  { %5171 = vmatpush.xpose.msk.msra.mxu3 %vm740_vm0, %v3444_v21 }
 0x8a0   :  { %v2572_v41 = vpop.f32.mrf.mxu1 }
 0x8a1   :  { %v7644_v1 = vmul.f32 0.17677669, %v2572_v41 }
 0x8a2   :  { %5172 = vmatpush.xpose.msk.msra.mxu3 %vm740_vm0, %v3442_v55 }
 0x8a3   :  { %v2643_v10 = vsel %vm2636_vm3, %v7644_v1, -inf }
 0x8a4   :  { %2644 = vmax.xlane.f32.xlu2 %v2643_v10  ;;  %v3193_v29 = vpop.permute.xlu1 %3192  ;;  %v2865_v54 = vpop.permute.xlu2 %2864 }
 0x8a5   :  { %5136 = vmatmul.msk.f32.vlgmr.msrb.gmra.mxu2 %vm740_vm0, %v2865_v54  ;;  %5151 = vmatmul.msk.f32.vlgmr.msrb.gmra.mxu3 %vm740_vm0, %v3124_v4  ;;  %v3126_v9 = vpop.permute.xlu0 %3125 }
 0x8a6   :  { %5155 = vmatpush.xpose.msk.msra.mxu2 %vm740_vm0, %v3193_v29 }
 0x8a8   :  { %v2575_v13 = vpop.f32.mrf.mxu1 }
 0x8a9   :  { %2638 = vmax.xlane.f32.xlu0 %v2637_v17  ;;  %v7656_v7 = vmul.f32 0.17677669, %v2575_v13 }
 0x8ab   :  { %v2646_v39 = vsel %vm2636_vm3, %v7656_v7, -inf }
 0x8ac   :  { %v3191_v3 = vpop.permute.xlu1 %3190  ;;  %v3436_v31 = vpop.permute.xlu2 %3435 }
 0x8ad   :  { %5152 = vmatmul.msk.f32.gmra.mxu3 %vm740_vm0, %v3126_v9  ;;  %5156 = vmatpush.xpose.msk.msra.mxu2 %vm740_vm0, %v3191_v3  ;;  %v3189_v51 = vpop.permute.xlu0 %3188 }
 0x8b1   :  { %5157 = vmatpush.xpose.msk.msra.mxu2 %vm740_vm0, %v3189_v51  ;;  %2647 = vmax.xlane.f32.xlu0 %v2646_v39 }
 0x8b4   :  { %v3491_v38 = vpop.permute.xlu2 %3490 }
 0x8b5   :  { %5153 = vmatmul.msk.f32.gmra.mxu3 %vm740_vm0, %v3128_v20 }
 0x8b9   :  { %2641 = vmax.xlane.f32.xlu1 %v2640_v37 }
 0x8bc   :  { %v3185_v10 = vpop.permute.xlu2 %3184 }
 0x8bd   :  { %5154 = vmatmul.msk.f32.gmra.mxu3 %vm740_vm0, %v3130_v40 }
 0x8c1   :  { %v3183_v18 = vpop.permute.xlu0 %3182  ;;  %v2867_v12 = vpop.permute.xlu1 %2866 }
 0x8c2   :  { %5137 = vmatmul.msk.f32.gmra.mxu2 %vm740_vm0, %v2867_v12 }
 0x8c4   :  { %v7697_v54 = vpop.permute.xlu2 %5754 }
 0x8c5   :  { %5173 = vmatmul.msk.f32.vlgmr.msra.gmra.mxu3 %vm740_vm0, %v3434_v32 }
 0x8c9   :  { %v3440_v44 = vpop.permute.xlu0 %3439  ;;  %v2869_v42 = vpop.permute.xlu1 %2868 }
 0x8ca   :  { %v2616_v47 = vpop.f32.mrf.mxu2  ;;  %5138 = vmatmul.msk.f32.gmra.mxu2 %vm740_vm0, %v2869_v42 }
 0x8cb   :  { %v7672_v22 = vmul.f32 0.17677669, %v2616_v47 }
 0x8cc   :  { %v3187_v37 = vpop.permute.xlu2 %3186 }
 0x8cd   :  { %5174 = vmatmul.msk.f32.gmra.mxu3 %vm740_vm0, %v3436_v31  ;;  %v2649_v60 = vsel %vm2636_vm3, %v7672_v22, -inf }
 0x8ce   :  { %2650 = vmax.xlane.f32.xlu2 %v2649_v60 }
 0x8d1   :  { %v3501_v63 = vpop.permute.xlu0 %3500  ;;  %v3181_v8 = vpop.permute.xlu1 %3180 }
 0x8d3   :  { %v2619_v50 = vpop.f32.mrf.mxu2 }
 0x8d4   :  { %v7677_v62 = vmul.f32 0.17677669, %v2619_v50 }
 0x8d6   :  { %v2652_v15 = vsel %vm2636_vm3, %v7677_v62, -inf }
 0x8d7   :  { %2653 = vmax.xlane.f32.xlu1 %v2652_v15 }
 0x8d9   :  { %v3493_v53 = vpop.permute.xlu0 %3492  ;;  %v3438_v58 = vpop.permute.xlu1 %3437 }
 0x8da   :  { %5175 = vmatmul.msk.f32.gmra.mxu3 %vm740_vm0, %v3438_v58  ;;  %v3497_v58 = vpop.permute.xlu2 %3496 }
 0x8db   :  { %v2622_v20 = vpop.f32.mrf.mxu2 }
 0x8dc   :  { %v7682_v57 = vmul.f32 0.17677669, %v2622_v20 }
 0x8de   :  { %v2655_v55 = vsel %vm2636_vm3, %v7682_v57, -inf }
 0x8df   :  { %2656 = vmax.xlane.f32.xlu1 %v2655_v55 }
 0x8e1   :  { %v3503_v4 = vpop.permute.xlu1 %3502  ;;  %v2871_v35 = vpop.permute.xlu0 %2870 }
 0x8e2   :  { %5139 = vmatmul.msk.f32.gmra.mxu2 %vm740_vm0, %v2871_v35  ;;  %5176 = vmatmul.msk.f32.gmra.mxu3 %vm740_vm0, %v3440_v44 }
 0x8e3   :  { %v2625_v32 = vpop.f32.mrf.mxu2  ;;  %5177 = vmatpush.xpose.msk.msrb.mxu2 %vm740_vm0, %v3503_v4 }
 0x8e4   :  { %v7689_v61 = vmul.f32 0.17677669, %v2625_v32 }
 0x8e6   :  { %v2658_v28 = vsel %vm2636_vm3, %v7689_v61, -inf }
 0x8e7   :  { %5178 = vmatpush.xpose.msk.msrb.mxu2 %vm740_vm0, %v3501_v63  ;;  %2659 = vmax.xlane.f32.xlu1 %v2658_v28 }
 0x8e9   :  { %v3499_v40 = vpop.permute.xlu1 %3498  ;;  %v5740_v19 = vpop.permute.xlu0 %5739 }
 0x8ea   :  { %v5741_v21 = vunpack.i.l.bf16 %v5740_v19  ;;  %5158 = vmatmul.msk.f32.vlgmr.msra.gmra.mxu2 %vm740_vm0, %v3181_v8  ;;  %v5742_v41 = vunpack.i.h.bf16 %v5740_v19 }
 0x8eb   :  { %5179 = vmatpush.xpose.msk.msrb.mxu2 %vm740_vm0, %v3499_v40 }
 0x8ec   :  { %3054 = vmatpush.msra.mxu0 %v5741_v21 }
 0x8ee   :  { %3055 = vmatpush.msra.mxu0 %v5742_v41 }
 0x8f1   :  { %v3495_v29 = vpop.permute.xlu1 %3494  ;;  %v5760_v9 = vpop.permute.xlu0 %5759 }
 0x8f2   :  { %5159 = vmatmul.msk.f32.gmra.mxu2 %vm740_vm0, %v3183_v18  ;;  %v5761_v51 = vunpack.i.l.bf16 %v5760_v9  ;;  %v5762_v39 = vunpack.i.h.bf16 %v5760_v9 }
 0x8f9   :  { %v5745_v17 = vpop.permute.xlu1 %5744 }
 0x8fa   :  { %v5747_v13 = vunpack.i.h.bf16 %v5745_v17  ;;  %v5746_v3 = vunpack.i.l.bf16 %v5745_v17  ;;  %5160 = vmatmul.msk.f32.gmra.mxu2 %vm740_vm0, %v3185_v10 }
 0x8fc   :  { %3056 = vmatpush.msra.mxu0 %v5746_v3  ;;  %3107 = vmatpush.msrb.mxu1 %v5747_v13 }
 0x8fe   :  { %3108 = vmatpush.msrb.mxu1 %v5761_v51 }
 0x900   :  { %3109 = vmatpush.msrb.mxu1 %v5762_v39 }
 0x901   :  { %v7718_v55 = vpop.permute.xlu1 %5749 }
 0x902   :  { %5161 = vmatmul.msk.f32.gmra.mxu2 %vm740_vm0, %v3187_v37 }
 0x908   :  { %v2852_v12 = vpop.f32.mrf.mxu3 }
 0x909   :  { %v7701_v44 = vmul.f32 0.17677669, %v2852_v12 }
 0x90a   :  { %5180 = vmatmul.msk.f32.vlgmr.msrb.gmra.mxu2 %vm740_vm0, %v3491_v38 }
 0x90b   :  { %v2929_v18 = vsel %vm2636_vm3, %v7701_v44, -inf }
 0x90c   :  { %2930 = vmax.xlane.f32.xlu1 %v2929_v18 }
 0x910   :  { %v2855_v42 = vpop.f32.mrf.mxu3 }
 0x911   :  { %v7732_v21 = vmul.f32 0.17677669, %v2855_v42 }
 0x912   :  { %5181 = vmatmul.msk.f32.gmra.mxu2 %vm740_vm0, %v3493_v53 }
 0x913   :  { %v2932_v3 = vsel %vm2636_vm3, %v7732_v21, -inf }
 0x917   :  { %v2645_v41 = vpop.xlane.xlu2 %2644 }
 0x918   :  { %v2858_v47 = vpop.f32.mrf.mxu3  ;;  %v2663_v9 = vsub.f32 %v7644_v1, %v2645_v41 }
 0x919   :  { %v7707_v31 = vmul.f32 0.17677669, %v2858_v47 }
 0x91a   :  { %5182 = vmatmul.msk.f32.gmra.mxu2 %vm740_vm0, %v3495_v29  ;;  %v2673_v39 = vmul.f32 1.442695, %v2663_v9 }
 0x91b   :  { %v2935_v60 = vsel %vm2636_vm3, %v7707_v31, -inf }
 0x91c   :  { %2936 = vmax.xlane.f32.xlu2 %v2935_v60  ;;  %v2639_v63 = vpop.xlane.xlu0 %2638 }
 0x91d   :  { %v2661_v8 = vsub.f32 %v7649_v34, %v2639_v63 }
 0x91f   :  { %v2669_v50 = vmul.f32 1.442695, %v2661_v8 }
 0x920   :  { %v2861_v15 = vpop.f32.mrf.mxu3 }
 0x921   :  { %5966 = vpow2.f32 %v2669_v50  ;;  %v7713_v20 = vmul.f32 0.17677669, %v2861_v15 }
 0x922   :  { %5183 = vmatmul.msk.f32.gmra.mxu2 %vm740_vm0, %v3497_v58 }
 0x923   :  { %v2938_v53 = vsel %vm2636_vm3, %v7713_v20, -inf }
 0x924   :  { %2939 = vmax.xlane.f32.xlu2 %v2938_v53  ;;  %v2648_v12 = vpop.xlane.xlu0 %2647 }
 0x925   :  { %v2664_v1 = vsub.f32 %v7656_v7, %v2648_v12 }
 0x927   :  { %v7720_v4 = vpop.eup %5966  ;;  %v2675_v60 = vmul.f32 1.442695, %v2664_v1 }
 0x928   :  { %v2909_v35 = vpop.f32.mrf.mxu2  ;;  %v3168_v38 = vpop.f32.mrf.mxu3  ;;  %v2685_v34 = vsel %vm2636_vm3, %v7720_v4, 0.0 }
 0x929   :  { %v7724_v32 = vmul.f32 0.17677669, %v2909_v35  ;;  %v7726_v28 = vmul.f32 0.17677669, %v3168_v38  ;;  %2686 = vadd.xlane.f32.xlu0 %v2685_v34 }
 0x92b   :  { %v3245_v40 = vsel %vm2636_vm3, %v7726_v28, -inf  ;;  %v2941_v19 = vsel %vm2636_vm3, %v7724_v32, -inf }
 0x92c   :  { %v2642_v10 = vpop.xlane.xlu1 %2641  ;;  %3246 = vmax.xlane.f32.xlu2 %v3245_v40  ;;  %2942 = vmax.xlane.f32.xlu1 %v2941_v19 }
 0x92d   :  { %v2662_v29 = vsub.f32 %v7663_v52, %v2642_v10 }
 0x92f   :  { %v2671_v17 = vmul.f32 1.442695, %v2662_v29 }
 0x930   :  { %v3171_v13 = vpop.f32.mrf.mxu3 }
 0x931   :  { %5968 = vpow2.f32 %v2671_v17  ;;  %v7738_v51 = vmul.f32 0.17677669, %v3171_v13  ;;  %2933 = vmax.xlane.f32.xlu0 %v2932_v3 }
 0x932   :  { %5970 = vpow2.f32 %v2673_v39 }
 0x933   :  { %v3248_v37 = vsel %vm2636_vm3, %v7738_v51, -inf  ;;  %5972 = vpow2.f32 %v2675_v60 }
 0x934   :  { %3249 = vmax.xlane.f32.xlu2 %v3248_v37 }
 0x937   :  { %v7742_v18 = vpop.eup %5968 }
 0x938   :  { %v3174_v52 = vpop.f32.mrf.mxu3  ;;  %v2688_v42 = vsel %vm2636_vm3, %v7742_v18, 0.0  ;;  %v7751_v8 = vpop.eup %5970 }
 0x939   :  { %v7747_v47 = vmul.f32 0.17677669, %v3174_v52  ;;  %2689 = vadd.xlane.f32.xlu0 %v2688_v42  ;;  %v2691_v15 = vsel %vm2636_vm3, %v7751_v8, 0.0  ;;  %v7756_v35 = vpop.eup %5972 }
 0x93a   :  { %v2694_v40 = vsel %vm2636_vm3, %v7756_v35, 0.0 }
 0x93b   :  { %v3251_v63 = vsel %vm2636_vm3, %v7747_v47, -inf }
 0x93c   :  { %3252 = vmax.xlane.f32.xlu2 %v3251_v63 }
 0x940   :  { %v3177_v50 = vpop.f32.mrf.mxu3 }
 0x941   :  { %v2651_v7 = vpop.xlane.xlu2 %2650  ;;  %2692 = vadd.xlane.f32.xlu0 %v2691_v15  ;;  %v7781_v42 = vmul.f32 0.17677669, %v3177_v50 }
 0x942   :  { %v2665_v58 = vsub.f32 %v7672_v22, %v2651_v7 }
 0x944   :  { %v2677_v53 = vmul.f32 1.442695, %v2665_v58  ;;  %v3254_v58 = vsel %vm2636_vm3, %v7781_v42, -inf }
 0x945   :  { %v2912_v38 = vpop.f32.mrf.mxu2 }
 0x946   :  { %v7758_v34 = vmul.f32 0.17677669, %v2912_v38  ;;  %5974 = vpow2.f32 %v2677_v53 }
 0x948   :  { %v2944_v19 = vsel %vm2636_vm3, %v7758_v34, -inf  ;;  %v3478_v41 = vpop.f32.mrf.mxu3 }
 0x949   :  { %2695 = vadd.xlane.f32.xlu0 %v2694_v40  ;;  %2945 = vmax.xlane.f32.xlu1 %v2944_v19  ;;  %v7765_v22 = vmul.f32 0.17677669, %v3478_v41 }
 0x94a   :  { %v2654_v10 = vpop.xlane.xlu1 %2653 }
 0x94b   :  { %v2666_v29 = vsub.f32 %v7677_v62, %v2654_v10  ;;  %v3555_v13 = vsel %vm2636_vm3, %v7765_v22, -inf }
 0x94c   :  { %v7767_v9 = vpop.eup %5974 }
 0x94d   :  { %v2679_v17 = vmul.f32 1.442695, %v2666_v29  ;;  %v2697_v3 = vsel %vm2636_vm3, %v7767_v9, 0.0  ;;  %v2915_v39 = vpop.f32.mrf.mxu2 }
 0x94e   :  { %v7773_v37 = vmul.f32 0.17677669, %v2915_v39 }
 0x94f   :  { %5976 = vpow2.f32 %v2679_v17 }
 0x950   :  { %v3481_v62 = vpop.f32.mrf.mxu3  ;;  %v2947_v52 = vsel %vm2636_vm3, %v7773_v37, -inf }
 0x951   :  { %3556 = vmax.xlane.f32.xlu0 %v3555_v13  ;;  %2698 = vadd.xlane.f32.xlu1 %v2697_v3  ;;  %v7783_v60 = vmul.f32 0.17677669, %v3481_v62 }
 0x952   :  { %v2657_v63 = vpop.xlane.xlu1 %2656 }
 0x953   :  { %v2667_v53 = vsub.f32 %v7682_v57, %v2657_v63  ;;  %v3558_v40 = vsel %vm2636_vm3, %v7783_v60, -inf }
 0x955   :  { %v7775_v12 = vpop.eup %5976  ;;  %v2681_v50 = vmul.f32 1.442695, %v2667_v53 }
 0x956   :  { %v2700_v1 = vsel %vm2636_vm3, %v7775_v12, 0.0 }
 0x957   :  { %2701 = vadd.xlane.f32.xlu2 %v2700_v1  ;;  %5978 = vpow2.f32 %v2681_v50 }
 0x959   :  { %2948 = vmax.xlane.f32.xlu1 %v2947_v52 }
 0x95a   :  { %v2660_v13 = vpop.xlane.xlu1 %2659 }
 0x95b   :  { %v2668_v62 = vsub.f32 %v7689_v61, %v2660_v13 }
 0x95d   :  { %v3484_v15 = vpop.f32.mrf.mxu3  ;;  %v7802_v3 = vpop.eup %5978  ;;  %v2683_v52 = vmul.f32 1.442695, %v2668_v62 }
 0x95e   :  { %v7785_v7 = vmul.f32 0.17677669, %v3484_v15  ;;  %v2703_v1 = vsel %vm2636_vm3, %v7802_v3, 0.0 }
 0x95f   :  { %3255 = vmax.xlane.f32.xlu2 %v3254_v58  ;;  %5980 = vpow2.f32 %v2683_v52 }
 0x960   :  { %v3561_v38 = vsel %vm2636_vm3, %v7785_v7, -inf }
 0x961   :  { %3562 = vmax.xlane.f32.xlu0 %v3561_v38  ;;  %3559 = vmax.xlane.f32.xlu1 %v3558_v40 }
 0x965   :  { %v2918_v19 = vpop.f32.mrf.mxu2  ;;  %v3487_v41 = vpop.f32.mrf.mxu3 }
 0x966   :  { %v7794_v10 = vmul.f32 0.17677669, %v2918_v19  ;;  %v7796_v29 = vmul.f32 0.17677669, %v3487_v41  ;;  %v7811_v53 = vpop.eup %5980 }
 0x967   :  { %v2706_v40 = vsel %vm2636_vm3, %v7811_v53, 0.0 }
 0x968   :  { %v3564_v57 = vsel %vm2636_vm3, %v7796_v29, -inf  ;;  %v2950_v17 = vsel %vm2636_vm3, %v7794_v10, -inf }
 0x969   :  { %3565 = vmax.xlane.f32.xlu0 %v3564_v57  ;;  %2951 = vmax.xlane.f32.xlu2 %v2950_v17 }
 0x96d   :  { %v3225_v39 = vpop.f32.mrf.mxu2 }
 0x96e   :  { %v7807_v63 = vmul.f32 0.17677669, %v3225_v39 }
 0x970   :  { %v3257_v58 = vsel %vm2636_vm3, %v7807_v63, -inf }
 0x971   :  { %2704 = vadd.xlane.f32.xlu2 %v2703_v1 }
 0x975   :  { %v3228_v15 = vpop.f32.mrf.mxu2 }
 0x976   :  { %v7815_v61 = vmul.f32 0.17677669, %v3228_v15 }
 0x978   :  { %v3260_v13 = vsel %vm2636_vm3, %v7815_v61, -inf }
 0x979   :  { %3258 = vmax.xlane.f32.xlu2 %v3257_v58 }
 0x97d   :  { %v3231_v38 = vpop.f32.mrf.mxu2 }
 0x97e   :  { %v7824_v62 = vmul.f32 0.17677669, %v3231_v38 }
 0x97f   :  { %v2931_v50 = vpop.xlane.xlu1 %2930 }
 0x980   :  { %v2953_v57 = vsub.f32 %v7701_v44, %v2931_v50  ;;  %v3263_v44 = vsel %vm2636_vm3, %v7824_v62, -inf }
 0x981   :  { %2707 = vadd.xlane.f32.xlu2 %v2706_v40 }
 0x982   :  { %v2961_v39 = vmul.f32 1.442695, %v2953_v57 }
 0x984   :  { %5982 = vpow2.f32 %v2961_v39 }
 0x985   :  { %v3234_v19 = vpop.f32.mrf.mxu2 }
 0x986   :  { %v7817_v41 = vmul.f32 0.17677669, %v3234_v19 }
 0x988   :  { %v3266_v17 = vsel %vm2636_vm3, %v7817_v41, -inf }
 0x989   :  { %3267 = vmax.xlane.f32.xlu0 %v3266_v17  ;;  %3261 = vmax.xlane.f32.xlu2 %v3260_v13 }
 0x98a   :  { %v7832_v40 = vpop.eup %5982 }
 0x98b   :  { %v2977_v17 = vsel %vm2636_vm3, %v7832_v40, 0.0 }
 0x98d   :  { %v3535_v1 = vpop.f32.mrf.mxu2 }
 0x98e   :  { %v7826_v52 = vmul.f32 0.17677669, %v3535_v1 }
 0x98f   :  { %v2937_v15 = vpop.xlane.xlu2 %2936 }
 0x990   :  { %v3567_v58 = vsel %vm2636_vm3, %v7826_v52, -inf }
 0x991   :  { %3568 = vmax.xlane.f32.xlu0 %v3567_v58  ;;  %3264 = vmax.xlane.f32.xlu2 %v3263_v44 }
 0x995   :  { %v3538_v50 = vpop.f32.mrf.mxu2 }
 0x996   :  { %v7834_v19 = vmul.f32 0.17677669, %v3538_v50 }
 0x997   :  { %v2940_v38 = vpop.xlane.xlu2 %2939 }
 0x998   :  { %v3570_v57 = vsel %vm2636_vm3, %v7834_v19, -inf }
 0x999   :  { %3571 = vmax.xlane.f32.xlu2 %v3570_v57  ;;  %2978 = vadd.xlane.f32.xlu0 %v2977_v17  ;;  %v5751_v57 = vunpack.i.l.bf16 %v7718_v55 }
 0x99c   :  { %v2687_v13 = vpop.xlane.xlu0 %2686 }
 0x99d   :  { %5984 = vrcp.f32 %v2687_v13  ;;  %v3541_v39 = vpop.f32.mrf.mxu2  ;;  %v5752_v13 = vunpack.i.h.bf16 %v7718_v55  ;;  %v2956_v55 = vsub.f32 %v7713_v20, %v2940_v38 }
 0x99e   :  { %v7840_v1 = vmul.f32 0.17677669, %v3541_v39 }
 0x99f   :  { %v3247_v58 = vpop.xlane.xlu2 %3246 }
 0x9a0   :  { %v3269_v44 = vsub.f32 %v7726_v28, %v3247_v58  ;;  %v3573_v50 = vsel %vm2636_vm3, %v7840_v1, -inf  ;;  %v2955_v28 = vsub.f32 %v7707_v31, %v2937_v15 }
 0x9a1   :  { %3574 = vmax.xlane.f32.xlu2 %v3573_v50  ;;  %v5756_v50 = vunpack.i.l.bf16 %v7697_v54 }
 0x9a2   :  { %v3277_v0 = vmul.f32 1.442695, %v3269_v44 }
 0x9a3   :  { %v5985_v5 = vpop.eup %5984 }
 0x9a4   :  { %v2717_v6 = vmul.f32 %v5985_v5, %v7720_v4  ;;  %5986 = vpow2.f32 %v3277_v0  ;;  %v2934_v25 = vpop.xlane.xlu0 %2933  ;;  %v2965_v4 = vmul.f32 1.442695, %v2955_v28 }
 0x9a5   :  { %v2954_v17 = vsub.f32 %v7732_v21, %v2934_v25 }
 0x9a6   :  { %5118 = vmatmul.msk.f32.vlgmr.msrb.gmra.mxu0 %vm2636_vm3, %v2717_v6 }
 0x9a7   :  { %v2963_v39 = vmul.f32 1.442695, %v2954_v17  ;;  %3367 = vmatpush.msrb.mxu0 %v5751_v57  ;;  %v3250_v58 = vpop.xlane.xlu2 %3249  ;;  %v2967_v57 = vmul.f32 1.442695, %v2956_v55 }
 0x9a8   :  { %v3270_v44 = vsub.f32 %v7738_v51, %v3250_v58 }
 0x9a9   :  { %5988 = vpow2.f32 %v2963_v39  ;;  %3368 = vmatpush.msrb.mxu0 %v5752_v13  ;;  %v2943_v13 = vpop.xlane.xlu1 %2942 }
 0x9aa   :  { %v7853_v5 = vpop.eup %5986  ;;  %v3279_v0 = vmul.f32 1.442695, %v3270_v44  ;;  %v2957_v20 = vsub.f32 %v7724_v32, %v2943_v13 }
 0x9ab   :  { %3369 = vmatpush.msrb.mxu0 %v5756_v50  ;;  %v3293_v25 = vsel %vm2636_vm3, %v7853_v5, 0.0 }
 0x9ac   :  { %5990 = vpow2.f32 %v3279_v0  ;;  %v2690_v6 = vpop.xlane.xlu0 %2689  ;;  %3294 = vadd.xlane.f32.xlu0 %v3293_v25  ;;  %v2969_v50 = vmul.f32 1.442695, %v2957_v20 }
 0x9ad   :  { %5992 = vrcp.f32 %v2690_v6 }
 0x9ae   :  { %5994 = vpow2.f32 %v2965_v4 }
 0x9af   :  { %v7857_v31 = vpop.eup %5988  ;;  %v3253_v0 = vpop.xlane.xlu2 %3252 }
 0x9b0   :  { %v2980_v21 = vsel %vm2636_vm3, %v7857_v31, 0.0  ;;  %v3271_v32 = vsub.f32 %v7747_v47, %v3253_v0  ;;  %v5757_v0 = vunpack.i.h.bf16 %v7697_v54 }
 0x9b1   :  { %2981 = vadd.xlane.f32.xlu2 %v2980_v21 }
 0x9b2   :  { %v7862_v51 = vpop.eup %5990 }
 0x9b3   :  { %v5993_v15 = vpop.eup %5992  ;;  %v3296_v17 = vsel %vm2636_vm3, %v7862_v51, 0.0 }
 0x9b4   :  { %v2693_v28 = vpop.xlane.xlu0 %2692  ;;  %3297 = vadd.xlane.f32.xlu0 %v3296_v17  ;;  %v2718_v39 = vmul.f32 %v5993_v15, %v7742_v18  ;;  %v7867_v58 = vpop.eup %5994  ;;  %v3281_v17 = vmul.f32 1.442695, %v3271_v32 }
 0x9b5   :  { %5996 = vrcp.f32 %v2693_v28  ;;  %v2983_v38 = vsel %vm2636_vm3, %v7867_v58, 0.0 }
 0x9b6   :  { %5119 = vmatmul.msk.f32.gmra.mxu0 %vm2636_vm3, %v2718_v39  ;;  %5998 = vpow2.f32 %v2967_v57 }
 0x9b9   :  { %2984 = vadd.xlane.f32.xlu2 %v2983_v38 }
 0x9bb   :  { %v5997_v44 = vpop.eup %5996 }
 0x9bc   :  { %v2696_v4 = vpop.xlane.xlu0 %2695  ;;  %v2946_v25 = vpop.xlane.xlu1 %2945  ;;  %v2719_v6 = vmul.f32 %v5997_v44, %v7751_v8 }
 0x9bd   :  { %v7874_v18 = vpop.eup %5998  ;;  %6000 = vrcp.f32 %v2696_v4  ;;  %v2958_v55 = vsub.f32 %v7758_v34, %v2946_v25 }
 0x9be   :  { %5120 = vmatmul.msk.f32.gmra.mxu0 %vm2636_vm3, %v2719_v6  ;;  %6002 = vpow2.f32 %v2969_v50  ;;  %v2986_v15 = vsel %vm2636_vm3, %v7874_v18, 0.0 }
 0x9bf   :  { %v2971_v21 = vmul.f32 1.442695, %v2958_v55  ;;  %v3544_v55 = vpop.f32.mrf.mxu2 }
 0x9c1   :  { %6004 = vpow2.f32 %v2971_v21  ;;  %2987 = vadd.xlane.f32.xlu2 %v2986_v15  ;;  %v7902_v21 = vmul.f32 0.17677669, %v3544_v55 }
 0x9c3   :  { %v6001_v57 = vpop.eup %6000 }
 0x9c4   :  { %v2699_v13 = vpop.xlane.xlu1 %2698  ;;  %v2720_v8 = vmul.f32 %v6001_v57, %v7756_v35  ;;  %v7882_v28 = vpop.eup %6002  ;;  %v3576_v57 = vsel %vm2636_vm3, %v7902_v21, -inf }
 0x9c5   :  { %6006 = vrcp.f32 %v2699_v13  ;;  %v2989_v47 = vsel %vm2636_vm3, %v7882_v28, 0.0 }
 0x9c6   :  { %5121 = vmatmul.msk.f32.gmra.mxu0 %vm2636_vm3, %v2720_v8  ;;  %6008 = vpow2.f32 %v3281_v17  ;;  %v3557_v8 = vpop.xlane.xlu0 %3556 }
 0x9c7   :  { %v7885_v34 = vpop.eup %6004 }
 0x9c8   :  { %3643 = vrot.lane.b32.xlu0 %v7553_v2, %s6528_s13  ;;  %v2992_v39 = vsel %vm2636_vm3, %v7885_v34, 0.0 }
 0x9c9   :  { %2990 = vadd.xlane.f32.xlu2 %v2989_v47  ;;  %2993 = vadd.xlane.f32.xlu1 %v2992_v39  ;;  %v3579_v39 = vsub.f32 %v7765_v22, %v3557_v8 }
 0x9ca   :  { %v2702_v35 = vpop.xlane.xlu2 %2701 }
 0x9cb   :  { %v6007_v20 = vpop.eup %6006  ;;  %6010 = vrcp.f32 %v2702_v35 }
 0x9cc   :  { %v2721_v38 = vmul.f32 %v6007_v20, %v7767_v9  ;;  %v2949_v44 = vpop.xlane.xlu1 %2948  ;;  %v7894_v50 = vpop.eup %6008  ;;  %v3587_v20 = vmul.f32 1.442695, %v3579_v39 }
 0x9cd   :  { %v2959_v2 = vsub.f32 %v7773_v37, %v2949_v44  ;;  %v3299_v25 = vsel %vm2636_vm3, %v7894_v50, 0.0 }
 0x9ce   :  { %5122 = vmatmul.msk.f32.vlgmr.msra.gmra.mxu1 %vm2636_vm3, %v2721_v38 }
 0x9cf   :  { %v2973_v4 = vmul.f32 1.442695, %v2959_v2  ;;  %3417 = vmatpush.msra.mxu1 %v5757_v0 }
 0x9d1   :  { %v6011_v6 = vpop.eup %6010  ;;  %6012 = vpow2.f32 %v2973_v4  ;;  %3300 = vadd.xlane.f32.xlu2 %v3299_v25 }
 0x9d2   :  { %v3256_v32 = vpop.xlane.xlu2 %3255  ;;  %v2722_v54 = vmul.f32 %v6011_v6, %v7775_v12 }
 0x9d3   :  { %v3272_v9 = vsub.f32 %v7781_v42, %v3256_v32 }
 0x9d4   :  { %v3563_v2 = vpop.xlane.xlu0 %3562 }
 0x9d5   :  { %v3283_v15 = vmul.f32 1.442695, %v3272_v9  ;;  %v3581_v32 = vsub.f32 %v7785_v7, %v3563_v2 }
 0x9d6   :  { %5123 = vmatmul.msk.f32.gmra.mxu1 %vm2636_vm3, %v2722_v54 }
 0x9d7   :  { %v7906_v37 = vpop.eup %6012  ;;  %6014 = vpow2.f32 %v3283_v15  ;;  %v3591_v54 = vmul.f32 1.442695, %v3581_v32 }
 0x9d8   :  { %v2995_v17 = vsel %vm2636_vm3, %v7906_v37, 0.0 }
 0x9d9   :  { %3577 = vmax.xlane.f32.xlu2 %v3576_v57  ;;  %2996 = vadd.xlane.f32.xlu1 %v2995_v17 }
 0x9dc   :  { %v2952_v13 = vpop.xlane.xlu2 %2951  ;;  %v3566_v15 = vpop.xlane.xlu0 %3565 }
 0x9dd   :  { %v7912_v42 = vpop.eup %6014  ;;  %v2960_v12 = vsub.f32 %v7794_v10, %v2952_v13 }
 0x9de   :  { %v3302_v35 = vsel %vm2636_vm3, %v7912_v42, 0.0 }
 0x9df   :  { %v2975_v47 = vmul.f32 1.442695, %v2960_v12 }
 0x9e1   :  { %3303 = vadd.xlane.f32.xlu1 %v3302_v35  ;;  %6016 = vpow2.f32 %v2975_v47 }
 0x9e4   :  { %v2705_v38 = vpop.xlane.xlu2 %2704 }
 0x9e5   :  { %6018 = vrcp.f32 %v2705_v38 }
 0x9e6   :  { %6020 = vpow2.f32 %v3587_v20  ;;  %v3560_v20 = vpop.xlane.xlu1 %3559 }
 0x9e7   :  { %v7918_v44 = vpop.eup %6016 }
 0x9e8   :  { %v2998_v0 = vsel %vm2636_vm3, %v7918_v44, 0.0 }
 0x9e9   :  { %2999 = vadd.xlane.f32.xlu1 %v2998_v0 }
 0x9eb   :  { %v6019_v10 = vpop.eup %6018 }
 0x9ec   :  { %v3259_v4 = vpop.xlane.xlu2 %3258  ;;  %v2723_v22 = vmul.f32 %v6019_v10, %v7802_v3  ;;  %v7924_v6 = vpop.eup %6020 }
 0x9ed   :  { %v3273_v25 = vsub.f32 %v7807_v63, %v3259_v4  ;;  %v3603_v9 = vsel %vm2636_vm3, %v7924_v6, 0.0 }
 0x9ee   :  { %5124 = vmatmul.msk.f32.gmra.mxu1 %vm2636_vm3, %v2723_v22 }
 0x9ef   :  { %v3285_v55 = vmul.f32 1.442695, %v3273_v25 }
 0x9f1   :  { %6022 = vpow2.f32 %v3285_v55  ;;  %5769 = vrot.lane.b32.xlu2 %v7629_v36, %s6514_s30 }
 0x9f2   :  { %3604 = vadd.xlane.f32.xlu0 %v3603_v9 }
 0x9f4   :  { %v2708_v3 = vpop.xlane.xlu2 %2707 }
 0x9f5   :  { %6024 = vrcp.f32 %v2708_v3 }
 0x9f6   :  { %6026 = vpow2.f32 %v3591_v54 }
 0x9f7   :  { %v7932_v63 = vpop.eup %6022 }
 0x9f8   :  { %v3305_v57 = vsel %vm2636_vm3, %v7932_v63, 0.0 }
 0x9fa   :  { %3306 = vadd.xlane.f32.xlu0 %v3305_v57 }
 0x9fb   :  { %v6025_v7 = vpop.eup %6024 }
 0x9fc   :  { %v3268_v17 = vpop.xlane.xlu0 %3267  ;;  %v2724_v13 = vmul.f32 %v6025_v7, %v7811_v53  ;;  %v7938_v8 = vpop.eup %6026  ;;  %v3580_v53 = vsub.f32 %v7783_v60, %v3560_v20  ;;  %v3582_v7 = vsub.f32 %v7796_v29, %v3566_v15 }
 0x9fd   :  { %v3276_v36 = vsub.f32 %v7817_v41, %v3268_v17  ;;  %v3262_v12 = vpop.xlane.xlu2 %3261  ;;  %v3609_v39 = vsel %vm2636_vm3, %v7938_v8, 0.0 }
 0x9fe   :  { %5125 = vmatmul.msk.f32.gmra.mxu1 %vm2636_vm3, %v2724_v13  ;;  %v3589_v2 = vmul.f32 1.442695, %v3580_v53  ;;  %v3274_v9 = vsub.f32 %v7815_v61, %v3262_v12  ;;  %v3593_v13 = vmul.f32 1.442695, %v3582_v7 }
 0x9ff   :  { %v3291_v47 = vmul.f32 1.442695, %v3276_v36 }
 0xa01   :  { %6028 = vpow2.f32 %v3291_v47 }
 0xa02   :  { %3610 = vadd.xlane.f32.xlu0 %v3609_v39  ;;  %5764 = vrot.lane.b32.xlu1 %v7620_v43, %s6528_s13 }
 0xa04   :  { %v3569_v35 = vpop.xlane.xlu0 %3568 }
 0xa05   :  { %v3265_v41 = vpop.xlane.xlu2 %3264 }
 0xa06   :  { %v3275_v4 = vsub.f32 %v7824_v62, %v3265_v41  ;;  %v5773_v62 = vpack.i.bf16 %v7584_v26, %v7590_v45  ;;  %v3583_v26 = vsub.f32 %v7826_v52, %v3569_v35 }
 0xa07   :  { %v7945_v38 = vpop.eup %6028 }
 0xa08   :  { %v3314_v0 = vsel %vm2636_vm3, %v7945_v38, 0.0  ;;  %v3289_v43 = vmul.f32 1.442695, %v3275_v4  ;;  %v3595_v29 = vmul.f32 1.442695, %v3583_v26 }
 0xa0a   :  { %3315 = vadd.xlane.f32.xlu0 %v3314_v0 }
 0xa0c   :  { %v2979_v10 = vpop.xlane.xlu0 %2978 }
 0xa0d   :  { %6030 = vrcp.f32 %v2979_v10  ;;  %v3572_v22 = vpop.xlane.xlu2 %3571 }
 0xa0e   :  { %6032 = vpow2.f32 %v3589_v2  ;;  %v3584_v39 = vsub.f32 %v7834_v19, %v3572_v22 }
 0xa0f   :  { %6034 = vpow2.f32 %v3289_v43 }
 0xa13   :  { %v6031_v25 = vpop.eup %6030 }
 0xa14   :  { %v3009_v55 = vmul.f32 %v6031_v25, %v7832_v40  ;;  %v7952_v32 = vpop.eup %6032  ;;  %v3287_v40 = vmul.f32 1.442695, %v3274_v9 }
 0xa15   :  { %v3606_v60 = vsel %vm2636_vm3, %v7952_v32, 0.0  ;;  %v3575_v54 = vpop.xlane.xlu2 %3574  ;;  %v7960_v3 = vpop.eup %6034 }
 0xa16   :  { %5140 = vmatmul.msk.f32.vlgmr.msra.gmra.mxu0 %vm2636_vm3, %v3009_v55  ;;  %v3311_v57 = vsel %vm2636_vm3, %v7960_v3, 0.0  ;;  %6036 = vpow2.f32 %v3287_v40  ;;  %v3585_v2 = vsub.f32 %v7840_v1, %v3575_v54 }
 0xa18   :  { %v3599_v22 = vmul.f32 1.442695, %v3585_v2 }
 0xa1a   :  { %3607 = vadd.xlane.f32.xlu2 %v3606_v60 }
 0xa1c   :  { %v7966_v61 = vpop.eup %6036 }
 0xa1d   :  { %v3308_v12 = vsel %vm2636_vm3, %v7966_v61, 0.0 }
 0xa1e   :  { %5774 = vrot.lane.b32.xlu0 %v5773_v62, %s6528_s13 }
 0xa1f   :  { %v3295_v41 = vpop.xlane.xlu0 %3294 }
 0xa22   :  { %3312 = vadd.xlane.f32.xlu2 %v3311_v57 }
 0xa24   :  { %v2982_v17 = vpop.xlane.xlu2 %2981 }
 0xa25   :  { %6038 = vrcp.f32 %v2982_v17 }
 0xa26   :  { %6040 = vpow2.f32 %v3593_v13 }
 0xa27   :  { %v3298_v25 = vpop.xlane.xlu0 %3297 }
 0xa2b   :  { %v6039_v36 = vpop.eup %6038 }
 0xa2c   :  { %v2985_v45 = vpop.xlane.xlu2 %2984  ;;  %v3010_v47 = vmul.f32 %v6039_v36, %v7857_v31  ;;  %3309 = vadd.xlane.f32.xlu1 %v3308_v12  ;;  %v7973_v15 = vpop.eup %6040  ;;  %v3597_v31 = vmul.f32 1.442695, %v3584_v39 }
 0xa2d   :  { %6042 = vrcp.f32 %v2985_v45  ;;  %v3612_v52 = vsel %vm2636_vm3, %v7973_v15, 0.0 }
 0xa2e   :  { %5141 = vmatmul.msk.f32.gmra.mxu0 %vm2636_vm3, %v3010_v47  ;;  %6044 = vpow2.f32 %v3595_v29 }
 0xa33   :  { %v6043_v20 = vpop.eup %6042 }
 0xa34   :  { %v2988_v53 = vpop.xlane.xlu2 %2987  ;;  %v3011_v35 = vmul.f32 %v6043_v20, %v7867_v58  ;;  %3613 = vadd.xlane.f32.xlu1 %v3612_v52  ;;  %v7980_v0 = vpop.eup %6044 }
 0xa35   :  { %6046 = vrcp.f32 %v2988_v53  ;;  %v3615_v58 = vsel %vm2636_vm3, %v7980_v0, 0.0 }
 0xa36   :  { %5142 = vmatmul.msk.f32.gmra.mxu0 %vm2636_vm3, %v3011_v35  ;;  %6048 = vpow2.f32 %v3597_v31 }
 0xa37   :  { %6050 = vrcp.f32 %v3295_v41 }
 0xa3a   :  { %3693 = vrot.lane.b32.xlu2 %v7576_v27, %s6528_s13  ;;  %v3644_v35 = vpop.permute.xlu0 %3643 }
 0xa3b   :  { %v6047_v19 = vpop.eup %6046 }
 0xa3c   :  { %v2991_v10 = vpop.xlane.xlu2 %2990  ;;  %v3012_v4 = vmul.f32 %v6047_v19, %v7874_v18  ;;  %3616 = vadd.xlane.f32.xlu1 %v3615_v58  ;;  %v7989_v43 = vpop.eup %6048 }
 0xa3d   :  { %6052 = vrcp.f32 %v2991_v10  ;;  %v2994_v1 = vpop.xlane.xlu1 %2993  ;;  %v6051_v55 = vpop.eup %6050  ;;  %v3618_v18 = vsel %vm2636_vm3, %v7989_v43, 0.0 }
 0xa3e   :  { %5143 = vmatmul.msk.f32.gmra.mxu0 %vm2636_vm3, %v3012_v4  ;;  %6054 = vpow2.f32 %v3599_v22  ;;  %v3325_v60 = vmul.f32 %v6051_v55, %v7853_v5  ;;  %v8022_v55 = vpop.f32.mrf.mxu0 }
 0xa3f   :  { %6056 = vrcp.f32 %v3298_v25 }
 0xa40   :  { %6058 = vrcp.f32 %v2994_v1 }
 0xa43   :  { %v6053_v27 = vpop.eup %6052 }
 0xa44   :  { %v3013_v9 = vmul.f32 %v6053_v27, %v7882_v28  ;;  %v3301_v54 = vpop.xlane.xlu2 %3300  ;;  %3619 = vadd.xlane.f32.xlu1 %v3618_v18  ;;  %v7997_v62 = vpop.eup %6054 }
 0xa45   :  { %v6057_v40 = vpop.eup %6056  ;;  %6060 = vrcp.f32 %v3301_v54  ;;  %v3621_v5 = vsel %vm2636_vm3, %v7997_v62, 0.0 }
 0xa46   :  { %5144 = vmatmul.msk.f32.vlgmr.msrb.gmra.mxu1 %vm2636_vm3, %v3013_v9  ;;  %5162 = vmatmul.msk.f32.vlgmr.msrb.gmra.mxu0 %vm2636_vm3, %v3325_v60  ;;  %v6059_v57 = vpop.eup %6058  ;;  %v3326_v13 = vmul.f32 %v6057_v40, %v7862_v51  ;;  %v8024_v27 = vpop.f32.mrf.mxu0 }
 0xa47   :  { %v3014_v28 = vmul.f32 %v6059_v57, %v7885_v34 }
 0xa4b   :  { %v6061_v45 = vpop.eup %6060 }
 0xa4c   :  { %v3578_v7 = vpop.xlane.xlu2 %3577  ;;  %v2997_v17 = vpop.xlane.xlu1 %2996  ;;  %3622 = vadd.xlane.f32.xlu1 %v3621_v5  ;;  %v3327_v34 = vmul.f32 %v6061_v45, %v7894_v50 }
 0xa4d   :  { %v3586_v36 = vsub.f32 %v7902_v21, %v3578_v7  ;;  %6062 = vrcp.f32 %v2997_v17  ;;  %v8034_v45 = vpop.f32.mrf.mxu1 }
 0xa4e   :  { %5145 = vmatmul.msk.f32.gmra.mxu1 %vm2636_vm3, %v3014_v28  ;;  %5163 = vmatmul.msk.f32.gmra.mxu0 %vm2636_vm3, %v3326_v13  ;;  %v8026_v54 = vpop.f32.mrf.mxu0 }
 0xa4f   :  { %v3601_v26 = vmul.f32 1.442695, %v3586_v36 }
 0xa51   :  { %6064 = vpow2.f32 %v3601_v26 }
 0xa53   :  { %v6063_v12 = vpop.eup %6062 }
 0xa54   :  { %v5770_v47 = vpop.permute.xlu2 %5769  ;;  %v3304_v29 = vpop.xlane.xlu1 %3303  ;;  %v3015_v39 = vmul.f32 %v6063_v12, %v7906_v37 }
 0xa55   :  { %v5771_v20 = vunpack.i.l.bf16 %v5770_v47  ;;  %6066 = vrcp.f32 %v3304_v29  ;;  %v5772_v21 = vunpack.i.h.bf16 %v5770_v47 }
 0xa56   :  { %5146 = vmatmul.msk.f32.gmra.mxu1 %vm2636_vm3, %v3015_v39  ;;  %5164 = vmatmul.msk.f32.gmra.mxu0 %vm2636_vm3, %v3327_v34  ;;  %v8030_v17 = vpop.f32.mrf.mxu0 }
 0xa57   :  { %v8010_v51 = vpop.eup %6064  ;;  %3418 = vmatpush.msra.mxu1 %v5771_v20  ;;  %v8039_v20 = vpop.f32.mrf.mxu1 }
 0xa58   :  { %v3624_v53 = vsel %vm2636_vm3, %v8010_v51, 0.0 }
 0xa59   :  { %3625 = vadd.xlane.f32.xlu0 %v3624_v53  ;;  %3419 = vmatpush.msra.mxu1 %v5772_v21 }
 0xa5b   :  { %v6067_v52 = vpop.eup %6066 }
 0xa5c   :  { %v3328_v37 = vmul.f32 %v6067_v52, %v7912_v42  ;;  %v3000_v50 = vpop.xlane.xlu1 %2999 }
 0xa5d   :  { %6068 = vrcp.f32 %v3000_v50 }
 0xa5e   :  { %5165 = vmatmul.msk.f32.gmra.mxu0 %vm2636_vm3, %v3328_v37 }
 0xa63   :  { %v6069_v41 = vpop.eup %6068 }
 0xa64   :  { %v3016_v2 = vmul.f32 %v6069_v41, %v7918_v44 }
 0xa65   :  { %v3605_v31 = vpop.xlane.xlu0 %3604 }
 0xa66   :  { %5147 = vmatmul.msk.f32.gmra.mxu1 %vm2636_vm3, %v3016_v2 }
 0xa6d   :  { %v3307_v19 = vpop.xlane.xlu0 %3306 }
 0xa6e   :  { %6070 = vrcp.f32 %v3307_v19 }
 0xa6f   :  { %6072 = vrcp.f32 %v3605_v31 }
 0xa74   :  { %v6071_v10 = vpop.eup %6070  ;;  %v5765_v4 = vpop.permute.xlu1 %5764 }
 0xa75   :  { %v3329_v58 = vmul.f32 %v6071_v10, %v7932_v63  ;;  %v5766_v22 = vunpack.i.l.bf16 %v5765_v4  ;;  %v6073_v42 = vpop.eup %6072  ;;  %v5767_v25 = vunpack.i.h.bf16 %v5765_v4  ;;  %v3611_v44 = vpop.xlane.xlu0 %3610 }
 0xa76   :  { %v3635_v1 = vmul.f32 %v6073_v42, %v7924_v6 }
 0xa77   :  { %5166 = vmatmul.msk.f32.vlgmr.msra.gmra.mxu1 %vm2636_vm3, %v3329_v58  ;;  %3677 = vmatpush.msra.mxu0 %v5766_v22 }
 0xa79   :  { %3678 = vmatpush.msra.mxu0 %v5767_v25 }
 0xa7b   :  { %3679 = vmatpush.msra.mxu0 %v3644_v35  ;;  %v8045_v35 = vpop.f32.mrf.mxu1 }
 0xa7c   :  { %5184 = vmatmul.msk.f32.vlgmr.msra.gmra.mxu0 %vm2636_vm3, %v3635_v1 }
 0xa7d   :  { %v3316_v60 = vpop.xlane.xlu0 %3315 }
 0xa8d   :  { %v3608_v63 = vpop.xlane.xlu2 %3607 }
 0xa8e   :  { %6074 = vrcp.f32 %v3608_v63 }
 0xa8f   :  { %6076 = vrcp.f32 %v3611_v44 }
 0xa90   :  { %v5775_v9 = vpop.permute.xlu0 %5774 }
 0xa91   :  { %v5776_v18 = vunpack.i.l.bf16 %v5775_v9  ;;  %v5777_v40 = vunpack.i.h.bf16 %v5775_v9 }
 0xa93   :  { %3727 = vmatpush.msrb.mxu1 %v5776_v18  ;;  %v3058_v26 = vpop.f32.mrf.mxu0 }
 0xa94   :  { %v6075_v57 = vpop.eup %6074 }
 0xa95   :  { %3728 = vmatpush.msrb.mxu1 %v5777_v40  ;;  %v3313_v6 = vpop.xlane.xlu2 %3312  ;;  %v3636_v7 = vmul.f32 %v6075_v57, %v7952_v32  ;;  %v6077_v5 = vpop.eup %6076 }
 0xa96   :  { %v3637_v13 = vmul.f32 %v6077_v5, %v7938_v8 }
 0xa97   :  { %5185 = vmatmul.msk.f32.gmra.mxu0 %vm2636_vm3, %v3636_v7 }
 0xa9d   :  { %v3694_v28 = vpop.permute.xlu2 %3693 }
 0xa9e   :  { %3729 = vmatpush.msrb.mxu1 %v3694_v28 }
 0xa9f   :  { %5186 = vmatmul.msk.f32.gmra.mxu0 %vm2636_vm3, %v3637_v13  ;;  %v3310_v36 = vpop.xlane.xlu1 %3309 }
 0xaa0   :  { %6078 = vrcp.f32 %v3310_v36 }
 0xaa1   :  { %6080 = vrcp.f32 %v3313_v6 }
 0xaa6   :  { %v6079_v12 = vpop.eup %6078 }
 0xaa7   :  { %v3614_v47 = vpop.xlane.xlu1 %3613  ;;  %v3330_v32 = vmul.f32 %v6079_v12, %v7966_v61  ;;  %v6081_v34 = vpop.eup %6080 }
 0xaa8   :  { %6082 = vrcp.f32 %v3614_v47  ;;  %v3331_v53 = vmul.f32 %v6081_v34, %v7960_v3  ;;  %v8050_v3 = vpop.f32.mrf.mxu1  ;;  %v5527_v34 = vld [vmem:[#allocation19 + $0x38] sm:$0xff] }
 0xaa9   :  { %5167 = vmatmul.msk.f32.gmra.mxu1 %vm2636_vm3, %v3330_v32  ;;  %6084 = vrcp.f32 %v3316_v60  ;;  %3915 = vmatpush.bf16.msrb.mxu3 %v5527_v34 }
 0xaab   :  { %v3061_v29 = vpop.f32.mrf.mxu0 }
 0xaac   :  { %v5778_v39 = vpack.i.bf16 %v3061_v29, %v3058_v26 }
 0xaae   :  { %5779 = vrot.lane.b32.xlu1 %v5778_v39, %s6528_s13  ;;  %v6083_v8 = vpop.eup %6082 }
 0xaaf   :  { %v3617_v21 = vpop.xlane.xlu1 %3616  ;;  %v3638_v52 = vmul.f32 %v6083_v8, %v7973_v15  ;;  %v6085_v37 = vpop.eup %6084  ;;  %v5526_v8 = vld [vmem:[#allocation19 + $0x30] sm:$0xff] }
 0xab0   :  { %6086 = vrcp.f32 %v3617_v21  ;;  %v3332_v50 = vmul.f32 %v6085_v37, %v7945_v38  ;;  %3916 = vmatpush.bf16.msrb.mxu3 %v5526_v8  ;;  %v5525_v21 = vld [vmem:[#allocation19 + $0x28] sm:$0xff]  ;;  %v5523_v37 = vld [vmem:[#allocation19 + $0x18] sm:$0xff] }
 0xab1   :  { %5168 = vmatmul.msk.f32.gmra.mxu1 %vm2636_vm3, %v3331_v53  ;;  %5187 = vmatmul.msk.f32.gmra.mxu0 %vm2636_vm3, %v3638_v52 }
 0xab3   :  { %v3064_v61 = vpop.f32.mrf.mxu0 }
 0xab4   :  { %3917 = vmatpush.bf16.msrb.mxu3 %v5525_v21 }
 0xab6   :  { %v6087_v19 = vpop.eup %6086 }
 0xab7   :  { %v3620_v41 = vpop.xlane.xlu1 %3619  ;;  %v3639_v15 = vmul.f32 %v6087_v19, %v7980_v0 }
 0xab8   :  { %6088 = vrcp.f32 %v3620_v41 }
 0xab9   :  { %5169 = vmatmul.msk.f32.gmra.mxu1 %vm2636_vm3, %v3332_v50 }
 0xabb   :  { %v3067_v31 = vpop.f32.mrf.mxu0 }
 0xabc   :  { %v5793_v2 = vpack.i.bf16 %v3067_v31, %v3064_v61  ;;  %v5524_v61 = vld [vmem:[#allocation19 + $0x20] sm:$0xff]  ;;  %v5522_v31 = vld [vmem:[#allocation19 + $0x10] sm:$0xff] }
 0xabd   :  { %3918 = vmatpush.bf16.msrb.mxu3 %v5524_v61 }
 0xabe   :  { %5794 = vrot.lane.b32.xlu1 %v5793_v2, %s6528_s13  ;;  %v6089_v4 = vpop.eup %6088  ;;  %v5521_v2 = vld [vmem:[#allocation19 + $0x8] sm:$0xff] }
 0xabf   :  { %v3623_v58 = vpop.xlane.xlu1 %3622  ;;  %v3640_v22 = vmul.f32 %v6089_v4, %v7989_v43 }
 0xac0   :  { %6090 = vrcp.f32 %v3623_v58 }
 0xac1   :  { %5188 = vmatmul.msk.f32.vlgmr.msrb.gmra.mxu1 %vm2636_vm3, %v3639_v15  ;;  %3919 = vmatpush.bf16.msrb.mxu3 %v5523_v37  ;;  %v5520_v15 = vld [vmem:[#allocation19] sm:$0xff] }
 0xac3   :  { %v3371_v10 = vpop.f32.mrf.mxu0  ;;  %v3111_v38 = vpop.f32.mrf.mxu1 }
 0xac5   :  { %3920 = vmatpush.bf16.msrb.mxu3 %v5522_v31 }
 0xac6   :  { %v6091_v44 = vpop.eup %6090 }
 0xac7   :  { %v3641_v0 = vmul.f32 %v6091_v44, %v7997_v62 }
 0xac9   :  { %5189 = vmatmul.msk.f32.gmra.mxu1 %vm2636_vm3, %v3640_v22  ;;  %3921 = vmatpush.bf16.msrb.mxu3 %v5521_v2 }
 0xacb   :  { %v3374_v42 = vpop.f32.mrf.mxu0  ;;  %v3114_v60 = vpop.f32.mrf.mxu1 }
 0xacc   :  { %v5783_v25 = vpack.i.bf16 %v3374_v42, %v3371_v10  ;;  %v3626_v1 = vpop.xlane.xlu0 %3625  ;;  %v5808_v36 = vpack.i.bf16 %v3114_v60, %v3111_v38 }
 0xacd   :  { %6092 = vrcp.f32 %v3626_v1  ;;  %3922 = vmatpush.bf16.msrb.mxu3 %v5520_v15 }
 0xace   :  { %5784 = vrot.lane.b32.xlu2 %v5783_v25, %s6514_s30 }
 0xad1   :  { %5190 = vmatmul.msk.f32.gmra.mxu1 %vm2636_vm3, %v3641_v0 }
 0xad3   :  { %v6093_v63 = vpop.eup %6092  ;;  %v3117_v43 = vpop.f32.mrf.mxu1 }
 0xad4   :  { %v3642_v9 = vmul.f32 %v6093_v63, %v8010_v51  ;;  %v3377_v57 = vpop.f32.mrf.mxu0 }
 0xad9   :  { %5191 = vmatmul.msk.f32.gmra.mxu1 %vm2636_vm3, %v3642_v9 }
 0xadc   :  { %v3380_v6 = vpop.f32.mrf.mxu0 }
 0xadd   :  { %v5798_v62 = vpack.i.bf16 %v3380_v6, %v3377_v57 }
 0xae3   :  { %v3120_v18 = vpop.f32.mrf.mxu1 }
 0xae4   :  { %v5823_v40 = vpack.i.bf16 %v3120_v18, %v3117_v43 }
 0xae6   :  { %5824 = vrot.lane.b32.xlu0 %v5823_v40, %s6528_s13 }
 0xaf4   :  { %v3421_v13 = vpop.f32.mrf.mxu1 }
 0xaf9   :  { %v3681_v7 = vpop.f32.mrf.mxu0 }
 0xb14   :  { %v3684_v5 = vpop.f32.mrf.mxu0 }
 0xb15   :  { %v5788_v28 = vpack.i.bf16 %v3684_v5, %v3681_v7 }
 0xb17   :  { %5789 = vrot.lane.b32.xlu2 %v5788_v28, %s6529_s1 }
 0xb1c   :  { %v3687_v51 = vpop.f32.mrf.mxu0 }
 0xb1f   :  { %5799 = vrot.lane.b32.xlu2 %v5798_v62, %s6514_s30 }
 0xb20   :  { %v5780_v38 = vpop.permute.xlu1 %5779 }
 0xb21   :  { %v5782_v22 = vunpack.i.h.bf16 %v5780_v38  ;;  %v5781_v42 = vunpack.i.l.bf16 %v5780_v38 }
 0xb23   :  { %v3840_v0 = vsel %vm740_vm0, %v8024_v27, %v5782_v22  ;;  %v3839_v60 = vsel %vm740_vm0, %v8022_v55, %v5781_v42 }
 0xb26   :  { %v3424_v26 = vpop.f32.mrf.mxu1 }
 0xb27   :  { %5809 = vrot.lane.b32.xlu2 %v5808_v36, %s6528_s13  ;;  %v5813_v39 = vpack.i.bf16 %v3424_v26, %v3421_v13 }
 0xb28   :  { %v5785_v4 = vpop.permute.xlu2 %5784 }
 0xb29   :  { %v5787_v25 = vunpack.i.h.bf16 %v5785_v4  ;;  %v5786_v1 = vunpack.i.l.bf16 %v5785_v4 }
 0xb2b   :  { %v3847_v43 = vsel %vm2109_vm1, %v3839_v60, %v5786_v1  ;;  %v3848_v18 = vsel %vm2109_vm1, %v3840_v0, %v5787_v25 }
 0xb2e   :  { %v3427_v12 = vpop.f32.mrf.mxu1  ;;  %v3690_v47 = vpop.f32.mrf.mxu0 }
 0xb2f   :  { %v5803_v32 = vpack.i.bf16 %v3690_v47, %v3687_v51 }
 0xb30   :  { %v5795_v7 = vpop.permute.xlu1 %5794 }
 0xb31   :  { %5804 = vrot.lane.b32.xlu1 %v5803_v32, %s6529_s1  ;;  %v5797_v28 = vunpack.i.h.bf16 %v5795_v7  ;;  %v5796_v62 = vunpack.i.l.bf16 %v5795_v7 }
 0xb33   :  { %v3842_v55 = vsel %vm740_vm0, %v8030_v17, %v5797_v28  ;;  %v3841_v51 = vsel %vm740_vm0, %v8026_v54, %v5796_v62 }
 0xb36   :  { %v3430_v29 = vpop.f32.mrf.mxu1 }
 0xb37   :  { %v5828_v52 = vpack.i.bf16 %v3430_v29, %v3427_v12 }
 0xb39   :  { %5814 = vrot.lane.b32.xlu1 %v5813_v39, %s6514_s30 }
 0xb3e   :  { %v3731_v53 = vpop.f32.mrf.mxu1 }
 0xb41   :  { %5829 = vrot.lane.b32.xlu1 %v5828_v52, %s6514_s30  ;;  %s6530_s30 = smov [#allocation25]  }
 0xb42   :  { %s4736_s18 = sshll.u32 %s6530_s30, 4  ;;  %s4737_s18 = int_to_ptr.vmem [resolvable:$true] %s4736_s18 }
 0xb46   :  { %v3734_v50 = vpop.f32.mrf.mxu1 }
 0xb47   :  { %v5818_v41 = vpack.i.bf16 %v3734_v50, %v3731_v53 }
 0xb49   :  { %5819 = vrot.lane.b32.xlu2 %v5818_v41, %s6529_s1 }
 0xb4e   :  { %v3737_v19 = vpop.f32.mrf.mxu1 }
 0xb56   :  { %v3740_v10 = vpop.f32.mrf.mxu1 }
 0xb57   :  { %v5833_v58 = vpack.i.bf16 %v3740_v10, %v3737_v19 }
 0xb58   :  { %v5825_v4 = vpop.permute.xlu0 %5824 }
 0xb59   :  { %5834 = vrot.lane.b32.xlu2 %v5833_v58, %s6529_s1  ;;  %v5827_v22 = vunpack.i.h.bf16 %v5825_v4  ;;  %v5826_v42 = vunpack.i.l.bf16 %v5825_v4  ;;  %v5258_v4 = vld [vmem:[#allocation20 + $0x30] sm:$0xf] }
 0xb71   :  { %v5790_v44 = vpop.permute.xlu2 %5789 }
 0xb72   :  { %v5792_v63 = vunpack.i.h.bf16 %v5790_v44  ;;  %v5791_v9 = vunpack.i.l.bf16 %v5790_v44  ;;  %v3845_v44 = vsel %vm740_vm0, %v8045_v35, %v5826_v42  ;;  %v5260_v42 = vld [vmem:[#allocation20 + $0x38] sm:$0xf0] }
 0xb74   :  { %v3856_v40 = vsel %vm2118_vm2, %v3848_v18, %v5792_v63  ;;  %v3855_v57 = vsel %vm2118_vm2, %v3847_v43, %v5791_v9 }
 0xb75   :  { %v3863_v6 = vpack.c.bf16 %v3856_v40, %v3855_v57 }
 0xb77   :  { %3923 = vmatmul.bf16.vlgmr.msrb.gmra.mxu3 %v3863_v6 }
 0xb79   :  { %v5800_v5 = vpop.permute.xlu2 %5799 }
 0xb7a   :  { %v5802_v27 = vunpack.i.h.bf16 %v5800_v5  ;;  %v5801_v13 = vunpack.i.l.bf16 %v5800_v5 }
 0xb7c   :  { %v3850_v47 = vsel %vm2109_vm1, %v3842_v55, %v5802_v27  ;;  %v3849_v32 = vsel %vm2109_vm1, %v3841_v51, %v5801_v13  ;;  %v8122_v13 = vld [vmem:[#allocation7 + $0x8] sm:$0xff]  ;;  %v8133_v51 = vld [vmem:[#allocation7 + $0x18] sm:$0xff] }
 0xb81   :  { %v5810_v34 = vpop.permute.xlu2 %5809 }
 0xb82   :  { %v5812_v53 = vunpack.i.h.bf16 %v5810_v34  ;;  %v5811_v52 = vunpack.i.l.bf16 %v5810_v34  ;;  %v5282_v34 = vld [vmem:[#allocation20 + $0x60] sm:$0xf] }
 0xb84   :  { %v3844_v54 = vsel %vm740_vm0, %v8039_v20, %v5812_v53  ;;  %v3843_v50 = vsel %vm740_vm0, %v8034_v45, %v5811_v52  ;;  %v3846_v45 = vsel %vm740_vm0, %v8050_v3, %v5827_v22  ;;  %v5284_v53 = vld [vmem:[#allocation20 + $0x68] sm:$0xf0]  ;;  %v5534_v22 = vld [vmem:[#allocation20 + $0x34] sm:$0xf] }
 0xba3   :  { %v5805_v36 = vpop.permute.xlu1 %5804  ;;  %v5820_v37 = vpop.permute.xlu2 %5819 }
 0xba4   :  { %v5807_v26 = vunpack.i.h.bf16 %v5805_v36  ;;  %v5806_v12 = vunpack.i.l.bf16 %v5805_v36  ;;  %v5822_v2 = vunpack.i.h.bf16 %v5820_v37  ;;  %v5821_v19 = vunpack.i.l.bf16 %v5820_v37  ;;  %v8126_v36 = vld [vmem:[#allocation7 + $0x10] sm:$0xff]  ;;  %v5539_v37 = vld [vmem:[#allocation20 + $0x54] sm:$0xf0] }
 0xba6   :  { %v3857_v29 = vsel %vm2118_vm2, %v3849_v32, %v5806_v12  ;;  %v3858_v39 = vsel %vm2118_vm2, %v3850_v47, %v5807_v26  ;;  %v5290_v26 = vld [vmem:[#allocation20 + $0x70] sm:$0xf]  ;;  %v5543_v12 = vld [vmem:[#allocation20 + $0x74] sm:$0xf0]  ;;  %v5542_v47 = vld [vmem:[#allocation20 + $0x74] sm:$0xf] }
 0xba7   :  { %v3864_v8 = vpack.c.bf16 %v3858_v39, %v3857_v29  ;;  %v5291_v29 = vor.u32 %v5543_v12, %v5290_v26  ;;  %v5292_v39 = vld [vmem:[#allocation20 + $0x78] sm:$0xf0] }
 0xba9   :  { %3928 = vmatmul.bf16.gmra.mxu3 %v3864_v8  ;;  %v5541_v8 = vld [vmem:[#allocation20 + $0x64] sm:$0xf0]  ;;  %4102 = vmatpush.bf16.msra.mxu1 %v5291_v29 }
 0xbab   :  { %v5815_v21 = vpop.permute.xlu1 %5814 }
 0xbac   :  { %v5817_v17 = vunpack.i.h.bf16 %v5815_v21  ;;  %v5816_v61 = vunpack.i.l.bf16 %v5815_v21  ;;  %v5295_v21 = vor.u32 %v5542_v47, %v5292_v39 }
 0xbae   :  { %v3852_v41 = vsel %vm2109_vm1, %v3844_v54, %v5817_v17  ;;  %v3851_v31 = vsel %vm2109_vm1, %v3843_v50, %v5816_v61  ;;  %v5283_v17 = vor.u32 %v5541_v8, %v5282_v34  ;;  %v5538_v50 = vld [vmem:[#allocation20 + $0x54] sm:$0xf] }
 0xbaf   :  { %v3859_v15 = vsel %vm2118_vm2, %v3851_v31, %v5821_v19  ;;  %v3860_v10 = vsel %vm2118_vm2, %v3852_v41, %v5822_v2  ;;  %v5276_v41 = vld [vmem:[#allocation20 + $0x58] sm:$0xf0]  ;;  %v5266_v2 = vld [vmem:[#allocation20 + $0x40] sm:$0xf]  ;;  %v5537_v19 = vld [vmem:[#allocation20 + $0x44] sm:$0xf0] }
 0xbb0   :  { %v3865_v58 = vpack.c.bf16 %v3860_v10, %v3859_v15  ;;  %4103 = vmatpush.bf16.msra.mxu1 %v5283_v17  ;;  %v5279_v31 = vor.u32 %v5538_v50, %v5276_v41  ;;  %v5536_v15 = vld [vmem:[#allocation20 + $0x44] sm:$0xf]  ;;  %v5268_v10 = vld [vmem:[#allocation20 + $0x48] sm:$0xf0]  ;;  %v5559_v17 = vld [vmem:[#allocation22 + $0x78] sm:$0xff] }
 0xbb1   :  { %4309 = vmatpush.bf16.msra.mxu3 %v5559_v17  ;;  %v5548_v41 = vld [vmem:[#allocation22 + $0x20] sm:$0xff] }
 0xbb3   :  { %v5830_v38 = vpop.permute.xlu1 %5829  ;;  %v5835_v20 = vpop.permute.xlu2 %5834 }
 0xbb4   :  { %v5832_v25 = vunpack.i.h.bf16 %v5830_v38  ;;  %v5831_v1 = vunpack.i.l.bf16 %v5830_v38  ;;  %v5837_v0 = vunpack.i.h.bf16 %v5835_v20  ;;  %v5836_v60 = vunpack.i.l.bf16 %v5835_v20  ;;  %v5535_v38 = vld [vmem:[#allocation20 + $0x34] sm:$0xf0] }
 0xbb5   :  { %v5259_v20 = vor.u32 %v5535_v38, %v5258_v4  ;;  %v5555_v4 = vld [vmem:[#allocation22 + $0x58] sm:$0xff]  ;;  %v5545_v38 = vld [vmem:[#allocation22 + $0x8] sm:$0xff] }
 0xbb6   :  { %v3854_v63 = vsel %vm2109_vm1, %v3846_v45, %v5832_v25  ;;  %v3853_v9 = vsel %vm2109_vm1, %v3845_v44, %v5831_v1  ;;  %v5263_v25 = vor.u32 %v5534_v22, %v5260_v42  ;;  %v5250_v1 = vld [vmem:[#allocation20 + $0x20] sm:$0xf]  ;;  %v5533_v45 = vld [vmem:[#allocation20 + $0x24] sm:$0xf0]  ;;  %v5532_v44 = vld [vmem:[#allocation20 + $0x24] sm:$0xf] }
 0xbb7   :  { %v3861_v43 = vsel %vm2118_vm2, %v3853_v9, %v5836_v60  ;;  %v3862_v18 = vsel %vm2118_vm2, %v3854_v63, %v5837_v0  ;;  %v5251_v0 = vor.u32 %v5533_v45, %v5250_v1  ;;  %v5252_v60 = vld [vmem:[#allocation20 + $0x28] sm:$0xf0]  ;;  %v5242_v63 = vld [vmem:[#allocation20 + $0x10] sm:$0xf]  ;;  %v5531_v9 = vld [vmem:[#allocation20 + $0x14] sm:$0xf0] }
 0xbb8   :  { %v3866_v40 = vpack.c.bf16 %v3862_v18, %v3861_v43  ;;  %v5255_v43 = vor.u32 %v5532_v44, %v5252_v60  ;;  %v5530_v18 = vld [vmem:[#allocation20 + $0x14] sm:$0xf]  ;;  %v5553_v42 = vld [vmem:[#allocation22 + $0x48] sm:$0xff] }
 0xbb9   :  { %3933 = vmatmul.bf16.gmra.mxu3 %v3865_v58  ;;  %v5271_v58 = vor.u32 %v5536_v15, %v5268_v10  ;;  %v5554_v22 = vld [vmem:[#allocation22 + $0x50] sm:$0xff] }
 0xbc9   :  { %3938 = vmatmul.bf16.gmra.mxu3 %v3866_v40  ;;  %v5244_v40 = vld [vmem:[#allocation20 + $0x18] sm:$0xf0] }
 0xbfa   :  { %v3924_v57 = vpop.f32.mrf.mxu3 }
 0xbfb   :  { %v8114_v62 = vadd.f32 %v3924_v57, %v7471_v59  ;;  %v5243_v57 = vor.u32 %v5531_v9, %v5242_v63 }
 0xc02   :  { %v3926_v6 = vpop.f32.mrf.mxu3 }
 0xc03   :  { %v8110_v28 = vadd.f32 %v3926_v6, %v7475_v24  ;;  %v5247_v6 = vor.u32 %v5530_v18, %v5244_v40 }
 0xc2c   :  { %v3929_v7 = vpop.f32.mrf.mxu3 }
 0xc2d   :  { %v8106_v35 = vadd.f32 %v3929_v7, %v7486_v49  ;;  %v5234_v7 = vld [vmem:[#allocation20] sm:$0xf] }
 0xc34   :  { %v3931_v5 = vpop.f32.mrf.mxu3 }
 0xc35   :  { %v8103_v3 = vadd.f32 %v3931_v5, %v7490_v14  ;;  %v8118_v14 = vld [vmem:[#allocation7] sm:$0xff]  ;;  %v5529_v5 = vld [vmem:[#allocation20 + $0x4] sm:$0xf0] }
 0xc37   :  { %3964 = vmatpush.msra.mxu2 %v8103_v3 }
 0xc39   :  { %3965 = vmatpush.msra.mxu2 %v8106_v35 }
 0xc3b   :  { %3966 = vmatpush.msra.mxu2 %v8110_v28 }
 0xc3c   :  { %v3934_v27 = vpop.f32.mrf.mxu3 }
 0xc3d   :  { %3967 = vmatpush.msra.mxu2 %v8114_v62  ;;  %v8146_v54 = vadd.f32 %v3934_v27, %v7512_v30  ;;  %v5267_v30 = vor.u32 %v5537_v19, %v5266_v2  ;;  %v5528_v27 = vld [vmem:[#allocation20 + $0x4] sm:$0xf]  ;;  %v5547_v19 = vld [vmem:[#allocation22 + $0x18] sm:$0xff] }
 0xc3e   :  { %5224 = vmatmul.msk.f32.vlgmr.msra.gmra.mxu2 %vm740_vm0, %v8118_v14 }
 0xc3f   :  { %4131 = vmatpush.bf16.msrb.mxu2 %v5295_v21 }
 0xc44   :  { %v3936_v49 = vpop.f32.mrf.mxu3 }
 0xc45   :  { %v8142_v52 = vadd.f32 %v3936_v49, %v7516_v46  ;;  %v5235_v49 = vor.u32 %v5529_v5, %v5234_v7 }
 0xc46   :  { %5225 = vmatmul.msk.f32.gmra.mxu2 %vm740_vm0, %v8122_v13 }
 0xc4c   :  { %v3939_v24 = vpop.f32.mrf.mxu3 }
 0xc4d   :  { %v8138_v32 = vadd.f32 %v3939_v24, %v7538_v16  ;;  %v5274_v16 = vld [vmem:[#allocation20 + $0x50] sm:$0xf]  ;;  %v5236_v24 = vld [vmem:[#allocation20 + $0x8] sm:$0xf0] }
 0xc4e   :  { %5226 = vmatmul.msk.f32.gmra.mxu2 %vm740_vm0, %v8126_v36  ;;  %v5275_v46 = vor.u32 %v5539_v37, %v5274_v16  ;;  %v5558_v16 = vld [vmem:[#allocation22 + $0x70] sm:$0xff] }
 0xc4f   :  { %4310 = vmatpush.bf16.msra.mxu3 %v5558_v16 }
 0xc50   :  { %4104 = vmatpush.bf16.msra.mxu1 %v5275_v46 }
 0xc54   :  { %v3941_v59 = vpop.f32.mrf.mxu3  ;;  %4105 = vmatpush.bf16.msra.mxu1 %v5267_v30  ;;  %v5556_v30 = vld [vmem:[#allocation22 + $0x60] sm:$0xff] }
 0xc55   :  { %v8131_v55 = vadd.f32 %v3941_v59, %v7542_v33  ;;  %v5540_v33 = vld [vmem:[#allocation20 + $0x64] sm:$0xf]  ;;  %v5239_v59 = vor.u32 %v5528_v27, %v5236_v24 }
 0xc56   :  { %5227 = vmatmul.msk.f32.gmra.mxu2 %vm740_vm0, %v8133_v51  ;;  %v5287_v61 = vor.u32 %v5540_v33, %v5284_v53  ;;  %v5551_v53 = vld [vmem:[#allocation22 + $0x38] sm:$0xff] }
 0xc57   :  { %3993 = vmatpush.msrb.mxu0 %v8131_v55 }
 0xc58   :  { %4132 = vmatpush.bf16.msrb.mxu2 %v5287_v61  ;;  %4106 = vmatpush.bf16.msra.mxu1 %v5259_v20  ;;  %v5550_v61 = vld [vmem:[#allocation22 + $0x30] sm:$0xff] }
 0xc59   :  { %3994 = vmatpush.msrb.mxu0 %v8138_v32 }
 0xc5b   :  { %3995 = vmatpush.msrb.mxu0 %v8142_v52 }
 0xc5c   :  { %4133 = vmatpush.bf16.msrb.mxu2 %v5279_v31  ;;  %4107 = vmatpush.bf16.msra.mxu1 %v5251_v0 }
 0xc5d   :  { %3996 = vmatpush.msrb.mxu0 %v8146_v54 }
 0xc5e   :  { %5228 = vmatmul.msk.f32.vlgmr.msrb.gmra.mxu0 %vm740_vm0, %v8118_v14 }
 0xc5f   :  { %4280 = vmatpush.bf16.msra.mxu0 %v5551_v53 }
 0xc60   :  { %4134 = vmatpush.bf16.msrb.mxu2 %v5271_v58  ;;  %4108 = vmatpush.bf16.msra.mxu1 %v5243_v57  ;;  %v5546_v58 = vld [vmem:[#allocation22 + $0x10] sm:$0xff] }
 0xc63   :  { %4281 = vmatpush.bf16.msra.mxu0 %v5550_v61 }
 0xc64   :  { %4135 = vmatpush.bf16.msrb.mxu2 %v5263_v25  ;;  %4109 = vmatpush.bf16.msra.mxu1 %v5235_v49 }
 0xc66   :  { %5229 = vmatmul.msk.f32.gmra.mxu0 %vm740_vm0, %v8122_v13 }
 0xc68   :  { %4136 = vmatpush.bf16.msrb.mxu2 %v5255_v43 }
 0xc6c   :  { %4137 = vmatpush.bf16.msrb.mxu2 %v5247_v6 }
 0xc6e   :  { %5230 = vmatmul.msk.f32.gmra.mxu0 %vm740_vm0, %v8126_v36 }
 0xc70   :  { %4138 = vmatpush.bf16.msrb.mxu2 %v5239_v59 }
 0xc76   :  { %5231 = vmatmul.msk.f32.gmra.mxu0 %vm740_vm0, %v8133_v51 }
 0xcc1   :  { %v8158_v26 = vpop.f32.mrf.mxu2 }
 0xcc2   :  { %v8164_v47 = vsub.f32 %v8114_v62, %v8158_v26 }
 0xcc9   :  { %v8160_v12 = vpop.f32.mrf.mxu2 }
 0xcca   :  { %v8168_v29 = vsub.f32 %v8110_v28, %v8160_v12 }
 0xccc   :  { %v4018_v39 = vpack.c.bf16 %v8168_v29, %v8164_v47 }
 0xcce   :  { %4110 = vmatmul.bf16.vlgmr.msra.gmra.mxu1 %v4018_v39  ;;  %4139 = vmatmul.bf16.vlgmr.msrb.gmra.mxu2 %v4018_v39 }
 0xcd1   :  { %v8172_v34 = vpop.f32.mrf.mxu2 }
 0xcd2   :  { %v8178_v21 = vsub.f32 %v8106_v35, %v8172_v34  ;;  %v5549_v35 = vld [vmem:[#allocation22 + $0x28] sm:$0xff] }
 0xcd3   :  { %4282 = vmatpush.bf16.msra.mxu0 %v5549_v35 }
 0xcd7   :  { %4283 = vmatpush.bf16.msra.mxu0 %v5548_v41 }
 0xcd9   :  { %v8174_v8 = vpop.f32.mrf.mxu2 }
 0xcda   :  { %v8182_v62 = vsub.f32 %v8103_v3, %v8174_v8  ;;  %v5557_v3 = vld [vmem:[#allocation22 + $0x68] sm:$0xff] }
 0xcdb   :  { %v8184_v33 = vpop.f32.mrf.mxu0  ;;  %4311 = vmatpush.bf16.msra.mxu3 %v5557_v3  ;;  %4284 = vmatpush.bf16.msra.mxu0 %v5547_v19 }
 0xcdc   :  { %v4019_v28 = vpack.c.bf16 %v8182_v62, %v8178_v21  ;;  %v8196_v46 = vsub.f32 %v8146_v54, %v8184_v33 }
 0xcde   :  { %4115 = vmatmul.bf16.gmra.mxu1 %v4019_v28  ;;  %4144 = vmatmul.bf16.gmra.mxu2 %v4019_v28 }
 0xcdf   :  { %4312 = vmatpush.bf16.msra.mxu3 %v5556_v30  ;;  %4285 = vmatpush.bf16.msra.mxu0 %v5546_v58 }
 0xce3   :  { %v8188_v37 = vpop.f32.mrf.mxu0  ;;  %4313 = vmatpush.bf16.msra.mxu3 %v5555_v4  ;;  %4286 = vmatpush.bf16.msra.mxu0 %v5545_v38 }
 0xce4   :  { %v8192_v50 = vsub.f32 %v8142_v52, %v8188_v37 }
 0xce6   :  { %v4020_v2 = vpack.c.bf16 %v8192_v50, %v8196_v46 }
 0xce7   :  { %4314 = vmatpush.bf16.msra.mxu3 %v5554_v22 }
 0xceb   :  { %v8198_v31 = vpop.f32.mrf.mxu0  ;;  %4315 = vmatpush.bf16.msra.mxu3 %v5553_v42 }
 0xcec   :  { %v8210_v54 = vsub.f32 %v8138_v32, %v8198_v31  ;;  %v5552_v32 = vld [vmem:[#allocation22 + $0x40] sm:$0xff] }
 0xcee   :  { %4120 = vmatmul.bf16.gmra.mxu1 %v4020_v2  ;;  %4149 = vmatmul.bf16.gmra.mxu2 %v4020_v2 }
 0xcef   :  { %4316 = vmatpush.bf16.msra.mxu3 %v5552_v32 }
 0xcf3   :  { %v8202_v15 = vpop.f32.mrf.mxu0 }
 0xcf4   :  { %v8206_v52 = vsub.f32 %v8131_v55, %v8202_v15  ;;  %v5544_v55 = vld [vmem:[#allocation22] sm:$0xff] }
 0xcf5   :  { %4287 = vmatpush.bf16.msra.mxu0 %v5544_v55 }
 0xcf6   :  { %v4021_v10 = vpack.c.bf16 %v8206_v52, %v8210_v54 }
 0xcfe   :  { %4125 = vmatmul.bf16.gmra.mxu1 %v4021_v10  ;;  %4154 = vmatmul.bf16.gmra.mxu2 %v4021_v10 }
 0xd4b   :  { %v4111_v20 = vpop.f32.mrf.mxu1 }
 0xd4c   :  { %v4160_v45 = vmax.f32 %v4111_v20, 0.0 }
 0xd51   :  { %v4140_v25 = vpop.f32.mrf.mxu2 }
 0xd52   :  { %v4161_v63 = vmax.f32 %v4140_v25, 0.0 }
 0xd53   :  { %v4113_v1 = vpop.f32.mrf.mxu1 }
 0xd54   :  { %v4162_v44 = vmax.f32 %v4113_v1, 0.0 }
 0xd56   :  { %v4176_v0 = vpack.c.bf16 %v4162_v44, %v4160_v45 }
 0xd58   :  { %4288 = vmatmul.bf16.vlgmr.msra.gmra.mxu0 %v4176_v0 }
 0xd59   :  { %v4142_v60 = vpop.f32.mrf.mxu2 }
 0xd5a   :  { %v4163_v9 = vmax.f32 %v4142_v60, 0.0 }
 0xd5b   :  { %v4116_v43 = vpop.f32.mrf.mxu1 }
 0xd5c   :  { %v4177_v18 = vpack.c.bf16 %v4163_v9, %v4161_v63  ;;  %v4164_v6 = vmax.f32 %v4116_v43, 0.0 }
 0xd5e   :  { %4317 = vmatmul.bf16.vlgmr.msra.gmra.mxu3 %v4177_v18 }
 0xd61   :  { %v4145_v40 = vpop.f32.mrf.mxu2 }
 0xd62   :  { %v4165_v49 = vmax.f32 %v4145_v40, 0.0 }
 0xd63   :  { %v4118_v57 = vpop.f32.mrf.mxu1 }
 0xd64   :  { %v4166_v7 = vmax.f32 %v4118_v57, 0.0 }
 0xd66   :  { %v4178_v5 = vpack.c.bf16 %v4166_v7, %v4164_v6 }
 0xd68   :  { %4293 = vmatmul.bf16.gmra.mxu0 %v4178_v5 }
 0xd69   :  { %v4147_v27 = vpop.f32.mrf.mxu2 }
 0xd6a   :  { %v4167_v24 = vmax.f32 %v4147_v27, 0.0 }
 0xd6b   :  { %v4121_v59 = vpop.f32.mrf.mxu1 }
 0xd6c   :  { %v4179_v39 = vpack.c.bf16 %v4167_v24, %v4165_v49  ;;  %v4168_v17 = vmax.f32 %v4121_v59, 0.0 }
 0xd6e   :  { %4322 = vmatmul.bf16.gmra.mxu3 %v4179_v39 }
 0xd71   :  { %v4150_v28 = vpop.f32.mrf.mxu2 }
 0xd72   :  { %v4169_v3 = vmax.f32 %v4150_v28, 0.0 }
 0xd73   :  { %v4123_v53 = vpop.f32.mrf.mxu1 }
 0xd74   :  { %v4170_v61 = vmax.f32 %v4123_v53, 0.0 }
 0xd76   :  { %v4180_v16 = vpack.c.bf16 %v4170_v61, %v4168_v17  ;;  %v5567_v61 = vld [vmem:[#allocation23 + $0x38] sm:$0xff] }
 0xd77   :  { %4488 = vmatpush.bf16.msrb.mxu0 %v5567_v61  ;;  %v8360_v61 = vld [vmem:[#allocation40_spill] sm:$0xff] }
 0xd78   :  { %4298 = vmatmul.bf16.gmra.mxu0 %v4180_v16  ;;  %v5575_v16 = vld [vmem:[#allocation23 + $0x78] sm:$0xff] }
 0xd79   :  { %v4152_v35 = vpop.f32.mrf.mxu2 }
 0xd7a   :  { %v4171_v41 = vmax.f32 %v4152_v35, 0.0  ;;  %v5583_v35 = vld [vmem:[#allocation23 + $0xb8] sm:$0xff] }
 0xd7b   :  { %v4126_v2 = vpop.f32.mrf.mxu1  ;;  %4642 = vmatpush.bf16.msrb.mxu3 %v5583_v35 }
 0xd7c   :  { %v4181_v19 = vpack.c.bf16 %v4171_v41, %v4169_v3  ;;  %v4172_v58 = vmax.f32 %v4126_v2, 0.0  ;;  %v5566_v2 = vld [vmem:[#allocation23 + $0x30] sm:$0xff] }
 0xd7d   :  { %4489 = vmatpush.bf16.msrb.mxu0 %v5566_v2 }
 0xd7e   :  { %4327 = vmatmul.bf16.gmra.mxu3 %v4181_v19  ;;  %v5574_v19 = vld [vmem:[#allocation23 + $0x70] sm:$0xff] }
 0xd81   :  { %v4155_v10 = vpop.f32.mrf.mxu2 }
 0xd82   :  { %v4173_v55 = vmax.f32 %v4155_v10, 0.0 }
 0xd83   :  { %v4128_v30 = vpop.f32.mrf.mxu1 }
 0xd84   :  { %v4174_v4 = vmax.f32 %v4128_v30, 0.0 }
 0xd86   :  { %v4182_v38 = vpack.c.bf16 %v4174_v4, %v4172_v58  ;;  %v5573_v58 = vld [vmem:[#allocation23 + $0x68] sm:$0xff] }
 0xd87   :  { %v5581_v4 = vld [vmem:[#allocation23 + $0xa8] sm:$0xff] }
 0xd88   :  { %4303 = vmatmul.bf16.gmra.mxu0 %v4182_v38  ;;  %v5572_v38 = vld [vmem:[#allocation23 + $0x60] sm:$0xff] }
 0xd89   :  { %v4157_v22 = vpop.f32.mrf.mxu2 }
 0xd8a   :  { %v4175_v42 = vmax.f32 %v4157_v22, 0.0  ;;  %v5563_v22 = vld [vmem:[#allocation23 + $0x18] sm:$0xff] }
 0xd8c   :  { %v4183_v32 = vpack.c.bf16 %v4175_v42, %v4173_v55  ;;  %v5571_v55 = vld [vmem:[#allocation23 + $0x58] sm:$0xff] }
 0xd8d   :  { %v5579_v42 = vld [vmem:[#allocation23 + $0x98] sm:$0xff] }
 0xd8e   :  { %4332 = vmatmul.bf16.gmra.mxu3 %v4183_v32  ;;  %v5570_v32 = vld [vmem:[#allocation23 + $0x50] sm:$0xff] }
 0xdd5   :  { %v4289_v20 = vpop.f32.mrf.mxu0 }
 0xddd   :  { %v4291_v25 = vpop.f32.mrf.mxu0 }
 0xde1   :  { %v4318_v1 = vpop.f32.mrf.mxu3 }
 0xde2   :  { %v4319_v6 = vadd.f32 %v4318_v1, %v4289_v20  ;;  %v5578_v20 = vld [vmem:[#allocation23 + $0x90] sm:$0xff]  ;;  %v5569_v1 = vld [vmem:[#allocation23 + $0x48] sm:$0xff] }
 0xde4   :  { %v8226_v49 = vadd.f32 %v4319_v6, %v8164_v47 }
 0xde5   :  { %v4294_v45 = vpop.f32.mrf.mxu0 }
 0xde9   :  { %v4320_v44 = vpop.f32.mrf.mxu3 }
 0xdea   :  { %v4321_v40 = vadd.f32 %v4320_v44, %v4291_v25  ;;  %v5561_v25 = vld [vmem:[#allocation23 + $0x8] sm:$0xff]  ;;  %v5568_v44 = vld [vmem:[#allocation23 + $0x40] sm:$0xff] }
 0xdec   :  { %v8222_v5 = vadd.f32 %v4321_v40, %v8168_v29 }
 0xded   :  { %v4296_v0 = vpop.f32.mrf.mxu0 }
 0xdf1   :  { %v4323_v60 = vpop.f32.mrf.mxu3 }
 0xdf2   :  { %v4324_v9 = vadd.f32 %v4323_v60, %v4294_v45  ;;  %v5577_v45 = vld [vmem:[#allocation23 + $0x88] sm:$0xff]  ;;  %v4420_v60 = vadd.f32 %v8158_v26, %v7465_v23  ;;  %v4422_v23 = vadd.f32 %v8172_v34, %v7479_v56 }
 0xdf3   :  { %v8359_v34 = vld [vmem:[#allocation39_spill] sm:$0xff] }
 0xdf4   :  { %v8218_v7 = vadd.f32 %v4324_v9, %v8178_v21 }
 0xdf5   :  { %v4299_v18 = vpop.f32.mrf.mxu0 }
 0xdf9   :  { %v4325_v63 = vpop.f32.mrf.mxu3 }
 0xdfa   :  { %v4326_v43 = vadd.f32 %v4325_v63, %v4296_v0  ;;  %v5576_v0 = vld [vmem:[#allocation23 + $0x80] sm:$0xff]  ;;  %v4421_v63 = vadd.f32 %v8160_v12, %v7467_v48  ;;  %v4423_v48 = vadd.f32 %v8174_v8, %v7482_v11  ;;  %v4425_v11 = vadd.f32 %v8188_v37, %v8359_v34 }
 0xdfc   :  { %v8215_v57 = vadd.f32 %v4326_v43, %v8182_v62 }
 0xdfd   :  { %v4301_v62 = vpop.f32.mrf.mxu0 }
 0xdfe   :  { %4358 = vmatpush.msrb.mxu1 %v8215_v57 }
 0xe00   :  { %4359 = vmatpush.msrb.mxu1 %v8218_v7 }
 0xe01   :  { %v4328_v27 = vpop.f32.mrf.mxu3 }
 0xe02   :  { %4360 = vmatpush.msrb.mxu1 %v8222_v5  ;;  %v4329_v3 = vadd.f32 %v4328_v27, %v4299_v18 }
 0xe04   :  { %4361 = vmatpush.msrb.mxu1 %v8226_v49  ;;  %v8250_v30 = vadd.f32 %v4329_v3, %v8196_v46  ;;  %v5580_v46 = vld [vmem:[#allocation23 + $0xa0] sm:$0xff] }
 0xe05   :  { %5360 = vmatmul.msk.f32.vlgmr.msrb.gmra.mxu1 %vm740_vm0, %v8118_v14  ;;  %v4304_v29 = vpop.f32.mrf.mxu0 }
 0xe06   :  { %4565 = vmatpush.bf16.msra.mxu1 %v5575_v16  ;;  %v8361_v16 = vld [vmem:[#allocation41_spill] sm:$0xff] }
 0xe07   :  { %v4427_v37 = vadd.f32 %v8202_v15, %v8361_v16 }
 0xe09   :  { %v4330_v21 = vpop.f32.mrf.mxu3 }
 0xe0a   :  { %v4331_v53 = vadd.f32 %v4330_v21, %v4301_v62  ;;  %4566 = vmatpush.bf16.msra.mxu1 %v5574_v19 }
 0xe0c   :  { %v8246_v10 = vadd.f32 %v4331_v53, %v8192_v50  ;;  %v5564_v50 = vld [vmem:[#allocation23 + $0x20] sm:$0xff] }
 0xe0d   :  { %5361 = vmatmul.msk.f32.gmra.mxu1 %vm740_vm0, %v8122_v13  ;;  %v4306_v59 = vpop.f32.mrf.mxu0 }
 0xe0e   :  { %4567 = vmatpush.bf16.msra.mxu1 %v5573_v58 }
 0xe11   :  { %v4333_v24 = vpop.f32.mrf.mxu3 }
 0xe12   :  { %v4334_v39 = vadd.f32 %v4333_v24, %v4304_v29  ;;  %4568 = vmatpush.bf16.msra.mxu1 %v5572_v38  ;;  %v8358_v24 = vld [vmem:[#allocation38_spill] sm:$0xff] }
 0xe13   :  { %v4424_v56 = vadd.f32 %v8184_v33, %v8358_v24  ;;  %v4426_v33 = vadd.f32 %v8198_v31, %v8360_v61 }
 0xe14   :  { %v8242_v41 = vadd.f32 %v4334_v39, %v8210_v54  ;;  %v5565_v54 = vld [vmem:[#allocation23 + $0x28] sm:$0xff] }
 0xe15   :  { %5362 = vmatmul.msk.f32.gmra.mxu1 %vm740_vm0, %v8126_v36  ;;  %4490 = vmatpush.bf16.msrb.mxu0 %v5565_v54 }
 0xe16   :  { %4569 = vmatpush.bf16.msra.mxu1 %v5571_v55 }
 0xe19   :  { %v4335_v47 = vpop.f32.mrf.mxu3  ;;  %4491 = vmatpush.bf16.msrb.mxu0 %v5564_v50 }
 0xe1a   :  { %v4336_v28 = vadd.f32 %v4335_v47, %v4306_v59  ;;  %4570 = vmatpush.bf16.msra.mxu1 %v5570_v32 }
 0xe1c   :  { %v8237_v17 = vadd.f32 %v4336_v28, %v8206_v52  ;;  %v5582_v52 = vld [vmem:[#allocation23 + $0xb0] sm:$0xff] }
 0xe1d   :  { %5363 = vmatmul.msk.f32.gmra.mxu1 %vm740_vm0, %v8133_v51  ;;  %4643 = vmatpush.bf16.msrb.mxu3 %v5582_v52  ;;  %v4675_v52 = vlaneseq }
 0xe1e   :  { %4387 = vmatpush.msra.mxu2 %v8237_v17  ;;  %4492 = vmatpush.bf16.msrb.mxu0 %v5563_v22 }
 0xe1f   :  { %4571 = vmatpush.bf16.msra.mxu1 %v5569_v1  ;;  %v8292_v54 = vshrl.u32 %v4675_v52, 7 }
 0xe20   :  { %4388 = vmatpush.msra.mxu2 %v8242_v41 }
 0xe21   :  { %4644 = vmatpush.bf16.msrb.mxu3 %v5581_v4  ;;  %vm4677_vm4 = vcmp.lt.s32.totalorder %v8292_v54, 1  ;;  %vm4690_vm5 = vcmp.lt.s32.totalorder %v8292_v54, 7 }
 0xe22   :  { %4389 = vmatpush.msra.mxu2 %v8246_v10 }
 0xe23   :  { %4572 = vmatpush.bf16.msra.mxu1 %v5568_v44 }
 0xe24   :  { %4390 = vmatpush.msra.mxu2 %v8250_v30 }
 0xe25   :  { %5364 = vmatmul.msk.f32.vlgmr.msra.gmra.mxu2 %vm740_vm0, %v8118_v14  ;;  %4645 = vmatpush.bf16.msrb.mxu3 %v5580_v46  ;;  %v5562_v14 = vld [vmem:[#allocation23 + $0x10] sm:$0xff] }
 0xe26   :  { %4493 = vmatpush.bf16.msrb.mxu0 %v5562_v14 }
 0xe29   :  { %4646 = vmatpush.bf16.msrb.mxu3 %v5579_v42 }
 0xe2a   :  { %4494 = vmatpush.bf16.msrb.mxu0 %v5561_v25 }
 0xe2d   :  { %5365 = vmatmul.msk.f32.gmra.mxu2 %vm740_vm0, %v8122_v13  ;;  %4647 = vmatpush.bf16.msrb.mxu3 %v5578_v20  ;;  %v5560_v13 = vld [vmem:[#allocation23] sm:$0xff] }
 0xe2e   :  { %4495 = vmatpush.bf16.msrb.mxu0 %v5560_v13 }
 0xe31   :  { %4648 = vmatpush.bf16.msrb.mxu3 %v5577_v45 }
 0xe35   :  { %5366 = vmatmul.msk.f32.gmra.mxu2 %vm740_vm0, %v8126_v36  ;;  %4649 = vmatpush.bf16.msrb.mxu3 %v5576_v0 }
 0xe3d   :  { %5367 = vmatmul.msk.f32.gmra.mxu2 %vm740_vm0, %v8133_v51 }
 0xe82   :  { %v4363_v36 = vpop.f32.mrf.mxu1 }
 0xe83   :  { %v4404_v51 = vsub.f32 %v8226_v49, %v4363_v36  ;;  %v4428_v43 = vadd.f32 %v4420_v60, %v4363_v36 }
 0xe85   :  { %4412 = vst [vmem:[#allocation25] sm:$0xff] %v4404_v51 }
 0xe8a   :  { %v4366_v9 = vpop.f32.mrf.mxu1 }
 0xe8b   :  { %v4405_v18 = vsub.f32 %v8222_v5, %v4366_v9  ;;  %v4429_v40 = vadd.f32 %v4421_v63, %v4366_v9 }
 0xe8d   :  { %4413 = vst [vmem:[#allocation25 + $0x8] sm:$0xff] %v4405_v18  ;;  %v4436_v6 = vpack.c.bf16 %v4429_v40, %v4428_v43 }
 0xe8f   :  { %4496 = vmatmul.bf16.vlgmr.msrb.gmra.mxu0 %v4436_v6  ;;  %4573 = vmatmul.bf16.vlgmr.msra.gmra.mxu1 %v4436_v6 }
 0xe90   :  { %4650 = vmatmul.bf16.vlgmr.msrb.gmra.mxu3 %v4436_v6 }
 0xe92   :  { %v4369_v27 = vpop.f32.mrf.mxu1 }
 0xe93   :  { %v4406_v49 = vsub.f32 %v8218_v7, %v4369_v27  ;;  %v4430_v12 = vadd.f32 %v4422_v23, %v4369_v27 }
 0xe95   :  { %4414 = vst [vmem:[#allocation25 + $0x10] sm:$0xff] %v4406_v49 }
 0xe9a   :  { %v4372_v26 = vpop.f32.mrf.mxu1 }
 0xe9b   :  { %v4407_v5 = vsub.f32 %v8215_v57, %v4372_v26  ;;  %v4431_v62 = vadd.f32 %v4423_v48, %v4372_v26 }
 0xe9d   :  { %4415 = vst [vmem:[#allocation25 + $0x18] sm:$0xff] %v4407_v5  ;;  %v4437_v21 = vpack.c.bf16 %v4431_v62, %v4430_v12 }
 0xe9f   :  { %4501 = vmatmul.bf16.gmra.mxu0 %v4437_v21  ;;  %4578 = vmatmul.bf16.gmra.mxu1 %v4437_v21 }
 0xea0   :  { %4655 = vmatmul.bf16.gmra.mxu3 %v4437_v21 }
 0xea8   :  { %v4392_v29 = vpop.f32.mrf.mxu2 }
 0xea9   :  { %v4408_v7 = vsub.f32 %v8250_v30, %v4392_v29  ;;  %v4432_v59 = vadd.f32 %v4424_v56, %v4392_v29 }
 0xeab   :  { %4416 = vst [vmem:[#allocation25 + $0x20] sm:$0xff] %v4408_v7 }
 0xeb0   :  { %v4395_v8 = vpop.f32.mrf.mxu2 }
 0xeb1   :  { %v4409_v57 = vsub.f32 %v8246_v10, %v4395_v8  ;;  %v4433_v47 = vadd.f32 %v4425_v11, %v4395_v8 }
 0xeb3   :  { %4417 = vst [vmem:[#allocation25 + $0x28] sm:$0xff] %v4409_v57  ;;  %v4438_v39 = vpack.c.bf16 %v4433_v47, %v4432_v59 }
 0xeb5   :  { %4506 = vmatmul.bf16.gmra.mxu0 %v4438_v39  ;;  %4583 = vmatmul.bf16.gmra.mxu1 %v4438_v39 }
 0xeb6   :  { %4660 = vmatmul.bf16.gmra.mxu3 %v4438_v39 }
 0xeb8   :  { %v4398_v28 = vpop.f32.mrf.mxu2 }
 0xeb9   :  { %v4410_v53 = vsub.f32 %v8242_v41, %v4398_v28  ;;  %v4434_v3 = vadd.f32 %v4426_v33, %v4398_v28 }
 0xebb   :  { %4418 = vst [vmem:[#allocation25 + $0x30] sm:$0xff] %v4410_v53 }
 0xec0   :  { %v4401_v35 = vpop.f32.mrf.mxu2 }
 0xec1   :  { %v4411_v2 = vsub.f32 %v8237_v17, %v4401_v35  ;;  %v4435_v19 = vadd.f32 %v4427_v37, %v4401_v35 }
 0xec3   :  { %4419 = vst [vmem:[#allocation25 + $0x38] sm:$0xff] %v4411_v2  ;;  %v4439_v10 = vpack.c.bf16 %v4435_v19, %v4434_v3 }
 0xec4   :  { %4744 = dma.vmem_to_hbm [thread:$0]  %s4737_s18, 1024, %s4739_s4, [#allocation4], %s6511_s26, %s6511_s26, %s6512_s27  }
 0xec5   :  { %4511 = vmatmul.bf16.gmra.mxu0 %v4439_v10  ;;  %4588 = vmatmul.bf16.gmra.mxu1 %v4439_v10 }
 0xec6   :  { %4665 = vmatmul.bf16.gmra.mxu3 %v4439_v10 }
 0xf0c   :  { %v4497_v31 = vpop.f32.mrf.mxu0  ;;  %v4574_v15 = vpop.f32.mrf.mxu1 }
 0xf0d   :  { %v4671_v38 = vrot.slane %v4497_v31, 7 }
 0xf13   :  { %v4651_v17 = vpop.f32.mrf.mxu3 }
 0xf14   :  { %v4499_v41 = vpop.f32.mrf.mxu0  ;;  %v4576_v30 = vpop.f32.mrf.mxu1  ;;  %v4686_v13 = vrot.slane %v4651_v17, 1 }
 0xf15   :  { %v4672_v50 = vrot.slane %v4499_v41, 7 }
 0xf17   :  { %v4680_v46 = vsel %vm4677_vm4, %v4671_v38, %v4672_v50 }
 0xf18   :  { %v4683_v20 = vadd.f32 %v4680_v46, %v4576_v30 }
 0xf1b   :  { %v4653_v58 = vpop.f32.mrf.mxu3 }
 0xf1c   :  { %v4502_v4 = vpop.f32.mrf.mxu0  ;;  %v4579_v22 = vpop.f32.mrf.mxu1  ;;  %v4687_v42 = vrot.slane %v4653_v58, 1 }
 0xf1d   :  { %v4673_v1 = vrot.slane %v4502_v4, 7 }
 0xf1e   :  { %v4693_v51 = vsel %vm4690_vm5, %v4686_v13, %v4687_v42 }
 0xf1f   :  { %v4679_v60 = vsel %vm4677_vm4, %v4672_v50, %v4673_v1 }
 0xf20   :  { %v4684_v6 = vadd.f32 %v4679_v60, %v4579_v22 }
 0xf23   :  { %v4656_v55 = vpop.f32.mrf.mxu3 }
 0xf24   :  { %v4688_v14 = vrot.slane %v4656_v55, 1  ;;  %v4504_v32 = vpop.f32.mrf.mxu0  ;;  %v4581_v18 = vpop.f32.mrf.mxu1 }
 0xf25   :  { %v4674_v25 = vrot.slane %v4504_v32, 7 }
 0xf26   :  { %v4692_v45 = vsel %vm4690_vm5, %v4687_v42, %v4688_v14 }
 0xf27   :  { %v4696_v44 = vadd.f32 %v4692_v45, %v4683_v20  ;;  %v4681_v0 = vsel %vm4677_vm4, %v4674_v25, %v4671_v38  ;;  %v4678_v9 = vsel %vm4677_vm4, %v4673_v1, %v4674_v25 }
 0xf28   :  { %v4682_v36 = vadd.f32 %v4681_v0, %v4574_v15  ;;  %v4685_v27 = vadd.f32 %v4678_v9, %v4581_v18 }
 0xf29   :  { %4700 = vst [vmem:[#allocation26 + $0x8] sm:$0xff] %v4696_v44 }
 0xf2a   :  { %v4695_v63 = vadd.f32 %v4693_v51, %v4682_v36 }
 0xf2b   :  { %v4658_v43 = vpop.f32.mrf.mxu3 }
 0xf2c   :  { %4699 = vst [vmem:[#allocation26] sm:$0xff] %v4695_v63  ;;  %v4689_v40 = vrot.slane %v4658_v43, 1 }
 0xf2e   :  { %v4691_v49 = vsel %vm4690_vm5, %v4688_v14, %v4689_v40  ;;  %v4694_v23 = vsel %vm4690_vm5, %v4689_v40, %v4686_v13 }
 0xf2f   :  { %v4697_v48 = vadd.f32 %v4691_v49, %v4684_v6  ;;  %v4698_v26 = vadd.f32 %v4694_v23, %v4685_v27 }
 0xf31   :  { %4701 = vst [vmem:[#allocation26 + $0x10] sm:$0xff] %v4697_v48 }
 0xf32   :  { %4702 = vst [vmem:[#allocation26 + $0x18] sm:$0xff] %v4698_v26  ;;  %v4507_v12 = vpop.f32.mrf.mxu0  ;;  %v4584_v5 = vpop.f32.mrf.mxu1 }
 0xf33   :  { %v4703_v34 = vrot.slane %v4507_v12, 7 }
 0xf39   :  { %v4661_v62 = vpop.f32.mrf.mxu3 }
 0xf3a   :  { %v4509_v21 = vpop.f32.mrf.mxu0  ;;  %v4586_v29 = vpop.f32.mrf.mxu1  ;;  %v4715_v16 = vrot.slane %v4661_v62, 1 }
 0xf3b   :  { %v4704_v56 = vrot.slane %v4509_v21, 7 }
 0xf3d   :  { %v4709_v11 = vsel %vm4677_vm4, %v4703_v34, %v4704_v56 }
 0xf3e   :  { %v4712_v28 = vadd.f32 %v4709_v11, %v4586_v29 }
 0xf41   :  { %v4663_v7 = vpop.f32.mrf.mxu3 }
 0xf42   :  { %v4512_v24 = vpop.f32.mrf.mxu0  ;;  %v4589_v8 = vpop.f32.mrf.mxu1  ;;  %v4716_v57 = vrot.slane %v4663_v7, 1 }
 0xf43   :  { %v4705_v61 = vrot.slane %v4512_v24, 7 }
 0xf44   :  { %v4721_v2 = vsel %vm4690_vm5, %v4715_v16, %v4716_v57 }
 0xf45   :  { %v4708_v19 = vsel %vm4677_vm4, %v4704_v56, %v4705_v61 }
 0xf46   :  { %v4713_v52 = vadd.f32 %v4708_v19, %v4589_v8 }
 0xf49   :  { %v4666_v59 = vpop.f32.mrf.mxu3 }
 0xf4a   :  { %v4717_v47 = vrot.slane %v4666_v59, 1  ;;  %v4514_v39 = vpop.f32.mrf.mxu0  ;;  %v4591_v17 = vpop.f32.mrf.mxu1 }
 0xf4b   :  { %v4706_v53 = vrot.slane %v4514_v39, 7 }
 0xf4c   :  { %v4720_v33 = vsel %vm4690_vm5, %v4716_v57, %v4717_v47 }
 0xf4d   :  { %v4724_v37 = vadd.f32 %v4720_v33, %v4712_v28  ;;  %v4710_v35 = vsel %vm4677_vm4, %v4706_v53, %v4703_v34  ;;  %v4707_v31 = vsel %vm4677_vm4, %v4705_v61, %v4706_v53 }
 0xf4e   :  { %v4711_v3 = vadd.f32 %v4710_v35, %v4584_v5  ;;  %v4714_v30 = vadd.f32 %v4707_v31, %v4591_v17 }
 0xf4f   :  { %4729 = vst [vmem:[#allocation26 + $0x28] sm:$0xff] %v4724_v37 }
 0xf50   :  { %v4723_v10 = vadd.f32 %v4721_v2, %v4711_v3 }
 0xf51   :  { %v4668_v15 = vpop.f32.mrf.mxu3 }
 0xf52   :  { %4728 = vst [vmem:[#allocation26 + $0x20] sm:$0xff] %v4723_v10  ;;  %v4718_v41 = vrot.slane %v4668_v15, 1 }
 0xf54   :  { %v4719_v58 = vsel %vm4690_vm5, %v4717_v47, %v4718_v41  ;;  %v4722_v4 = vsel %vm4690_vm5, %v4718_v41, %v4715_v16 }
 0xf55   :  { %v4725_v50 = vadd.f32 %v4719_v58, %v4713_v52  ;;  %v4726_v38 = vadd.f32 %v4722_v4, %v4714_v30 }
 0xf57   :  { %4730 = vst [vmem:[#allocation26 + $0x30] sm:$0xff] %v4725_v50 }
 0xf58   :  { %4731 = vst [vmem:[#allocation26 + $0x38] sm:$0xff] %v4726_v38 }
 0xf59   :  { %4757 = dma.vmem_to_hbm [thread:$0]  %s4750_s19, 1024, %s4752_s6, [#allocation27], %s6511_s26, %s6511_s26, %s6512_s27  }
 0xf5a   :  { %6506 = dma.done.wait [#allocation4], 1024  }
 0xf5b   :  { %6507 = vsyncadd [#allocation4], 4294966272 }
 0xf5c   :  { %6508 = dma.done.wait [#allocation27], 1024  }
 0xf5d   :  { %6509 = vsyncadd [#allocation27], 4294966272 }
 0xf5e   :  { %4766 = vsyncpa [#allocation3], 1 }
 0xf5f   :  { %4767 = vsyncpa [#allocation6], 1 }
 0xf60   :  { %4768 = vsyncpa [#allocation9], 1 }
 0xf61   :  { %4769 = vsyncpa [#allocation12], 1 }
 0xf62   :  { %4770 = vsyncpa [#allocation15], 1 }
 0xf63   :  { %4771 = vsyncpa [#allocation18], 1 }
 0xf64   :  { %4772 = vsyncpa [#allocation21], 1 }
 0xf65   :  { %4773 = vsyncpa [#allocation24], 1 }
 0xf66   :  { %4774 = vsyncpa [#allocation4], 1 }
 0xf67   :  { %4775 = vsyncpa [#allocation27], 1 }

</bundles_post_ra>
